<compile_context>
chip_gen: v5e
topology: v5e:2x2
jax: 0.10.0
libtpu: 0.0.40
codegen_flags: <defaults>
</compile_context>

<pallas_src>
import jax
import jax.numpy as jnp
from jax.experimental import pallas as pl
from jax.experimental.pallas import tpu as pltpu

C_IN = 1024
C_OUT = 192


def cbr_kernel(x_ref, w_ref, shift_ref, o_ref):
    # x_ref:     (bN, 1024, thw)  activation tile in its native dtype (f32/bf16)
    # w_ref:     (192, 1024)      bf16 conv weight with BN scale pre-folded
    # shift_ref: (192, 1)         f32 BN shift per output channel
    # o_ref:     (bN, 192, thw)   bf16 lane-dense output tile
    w = w_ref[...]
    shift = shift_ref[...]
    for b in range(x_ref.shape[0]):          # static unroll over batch sub-block
        x = x_ref[b].astype(jnp.bfloat16)    # in-VMEM cast; no HBM convert pass
        y = jnp.dot(w, x, preferred_element_type=jnp.float32)   # MXU, f32 acc
        y = y + shift                        # f32 epilogue, broadcast over lanes
        o_ref[b] = jnp.maximum(y, 0.0).astype(o_ref.dtype)      # cast at store


def _vmem_budget_bytes():
    # Generous on v5e/v6e (128 MiB physical VMEM), conservative on v7x
    # (64 MiB per TensorCore).  Falls back to the v7x number if unavailable.
    try:
        cap = int(pltpu.get_tpu_info().vmem_capacity_bytes)
    except Exception:
        cap = 64 * 1024 * 1024
    return int(min(44 * 1024 * 1024, 0.55 * cap))


def _pick_batch_block(n, n_hw, thw, lane_target=2048):
    # Largest divisor of n such that (a) the fused lane work per step stays
    # small enough to be worth batching and (b) we keep >= 2 grid steps when
    # possible so both v7x TensorCores get work.
    total = n * n_hw
    best = 1
    for bn in range(2, n + 1):
        if n % bn:
            continue
        if bn * thw > lane_target:
            continue
        if (n // bn) * n_hw < min(2, total):
            continue
        best = bn
    return best


def cbr1024_192_forward(x_nchw, weight, gamma, beta, running_mean, running_var,
                        eps=1e-5, out_dtype=jnp.bfloat16, thw_cap=4096):
    N, C_in, H, W = x_nchw.shape
    C_out = weight.shape[0]
    assert C_in == C_IN and C_out == C_OUT, (C_in, C_out)

    # Fold BN (inference, running stats) into the conv weight (scale) and a
    # per-output-channel shift; the ReLU epilogue is fused in the kernel.
    scale = (gamma.astype(jnp.float32)
             / jnp.sqrt(running_var.astype(jnp.float32) + eps))              # (192,)
    shift = beta.astype(jnp.float32) - running_mean.astype(jnp.float32) * scale
    w_folded = (weight.reshape(C_out, C_in).astype(jnp.float32)
                * scale[:, None]).astype(jnp.bfloat16)                       # (192,1024)
    shift2d = shift.reshape(C_out, 1)                                        # (192, 1)

    # Native NCHW: (N, C, H, W) -> (N, C, H*W) is a free contiguous reshape.
    # Activations stay in their native dtype (cast to bf16 inside the kernel).
    HW = H * W
    x3d = x_nchw.reshape(N, C_in, HW)
    in_bytes = jnp.dtype(x3d.dtype).itemsize
    out_bytes = jnp.dtype(out_dtype).itemsize

    # Spatial (lane) tile: multiple of 128, sized against the VMEM budget
    # (double-buffered input + output, plus the resident weight).
    budget = _vmem_budget_bytes()
    per_lane = 2 * (C_in * in_bytes + C_out * out_bytes)
    fixed = 2 * C_out * C_in * 2 + (1 << 16)
    thw_fit = max(128, ((budget - fixed) // per_lane) // 128 * 128)
    if HW < 128:
        thw = HW                                   # block equals full lane dim
    else:
        thw = int(min(thw_cap, thw_fit, ((HW + 127) // 128) * 128))
    n_hw = pl.cdiv(HW, thw)    # partial last tile handled by Pallas masking

    # Amortize per-step overhead on small spatial extents by blocking several
    # batch images per grid step (weight stays resident in VMEM).
    bN = _pick_batch_block(N, n_hw, thw)
    n_b = N // bN

    cost = pl.CostEstimate(
        flops=2 * N * C_out * C_in * HW,
        transcendentals=0,
        bytes_accessed=(N * C_in * HW * in_bytes       # activations
                        + C_out * C_in * 2             # folded weight (bf16)
                        + C_out * 4                    # shift
                        + N * C_out * HW * out_bytes), # output
    )

    out = pl.pallas_call(
        cbr_kernel,
        out_shape=jax.ShapeDtypeStruct((N, C_out, HW), out_dtype),
        grid_spec=pltpu.PrefetchScalarGridSpec(
            num_scalar_prefetch=0,
            grid=(n_b, n_hw),
            in_specs=[
                pl.BlockSpec((bN, C_in, thw), lambda n, j: (n, 0, j)),
                pl.BlockSpec((C_out, C_in), lambda n, j: (0, 0)),
                pl.BlockSpec((C_out, 1), lambda n, j: (0, 0)),
            ],
            out_specs=pl.BlockSpec((bN, C_out, thw), lambda n, j: (n, 0, j)),
        ),
        compiler_params=pltpu.CompilerParams(
            dimension_semantics=("parallel", "parallel"),
            vmem_limit_bytes=int(budget),
        ),
        cost_estimate=cost,
    )(x3d, w_folded, shift2d)

    return out.reshape(N, C_out, H, W)


def reference_forward_matched(x_nchw, weight, gamma, beta, running_mean,
                              running_var, eps=1e-5, out_dtype=jnp.bfloat16):
    # Same numerics as the kernel (bf16 operands, f32 accumulation, f32
    # epilogue, bf16 cast at the end) -> isolates tiling/indexing correctness.
    N, C_in, H, W = x_nchw.shape
    C_out = weight.shape[0]
    scale = gamma.astype(jnp.float32) / jnp.sqrt(running_var.astype(jnp.float32) + eps)
    shift = beta.astype(jnp.float32) - running_mean.astype(jnp.float32) * scale
    w_f = (weight.reshape(C_out, C_in).astype(jnp.float32)
           * scale[:, None]).astype(jnp.bfloat16)
    x_f = x_nchw.reshape(N, C_in, H * W).astype(jnp.bfloat16)
    y = jnp.einsum('oc,ncs->nos', w_f, x_f, preferred_element_type=jnp.float32)
    y = y + shift[None, :, None]
    return jnp.maximum(y, 0.0).astype(out_dtype).reshape(N, C_out, H, W)


def reference_forward_f32(x_nchw, weight, gamma, beta, running_mean,
                          running_var, eps=1e-5):
    # Full-f32 reference matching the PyTorch conv -> BN(eval) -> ReLU order;
    # loose sanity check for bf16 rounding.
    C_out, C_in = weight.shape[0], weight.shape[1]
    y = jnp.einsum('nchw,oc->nohw', x_nchw.astype(jnp.float32),
                   weight.reshape(C_out, C_in).astype(jnp.float32))
    scale = gamma / jnp.sqrt(running_var + eps)
    shift = beta - running_mean * scale
    y = y * scale[None, :, None, None] + shift[None, :, None, None]
    return jnp.maximum(y, 0.0)


if __name__ == "__main__":
    key = jax.random.PRNGKey(0)
    k_x, k_w, k_g, k_b, k_m, k_v = jax.random.split(key, 6)

    N, H, W = 2, 16, 16

    x = jax.random.normal(k_x, (N, C_IN, H, W), dtype=jnp.float32)
    weight = jax.random.normal(k_w, (C_OUT, C_IN, 1, 1), dtype=jnp.float32) * 0.02
    gamma = jax.random.uniform(k_g, (C_OUT,), minval=0.5, maxval=1.5)
    beta = jax.random.normal(k_b, (C_OUT,)) * 0.1
    running_mean = jax.random.normal(k_m, (C_OUT,)) * 0.1
    running_var = jax.random.uniform(k_v, (C_OUT,), minval=0.5, maxval=1.5)

    out = cbr1024_192_forward(x, weight, gamma, beta, running_mean, running_var)
    out = jax.block_until_ready(out)
    assert out.shape == (N, C_OUT, H, W), out.shape
    assert out.dtype == jnp.bfloat16, out.dtype
    out_f32 = out.astype(jnp.float32)

    ref = reference_forward_matched(x, weight, gamma, beta, running_mean,
                                    running_var).astype(jnp.float32)
    err = float(jnp.max(jnp.abs(out_f32 - ref)))
    assert jnp.allclose(out_f32, ref, atol=2e-2, rtol=2e-2), err

    ref32 = reference_forward_f32(x, weight, gamma, beta, running_mean, running_var)
    err32 = float(jnp.max(jnp.abs(out_f32 - ref32)))
    assert jnp.allclose(out_f32, ref32, atol=1e-1, rtol=1e-1), err32

    print("KERNEL_OK")
</pallas_src>

<mosaic_0001>
module attributes {stable_mosaic.version = 11 : i64} {
  func.func @cbr_kernel(%arg0: i32, %arg1: i32, %arg2: memref<1x1024x256xf32, #tpu.memory_space<vmem>>, %arg3: memref<192x1024xbf16, #tpu.memory_space<vmem>>, %arg4: memref<192x1xf32, #tpu.memory_space<vmem>>, %arg5: memref<1x192x256xbf16, #tpu.memory_space<vmem>>) attributes {dimension_semantics = [#tpu.dimension_semantics<parallel>, #tpu.dimension_semantics<parallel>], iteration_bounds = array<i64: 2, 1>, scalar_prefetch = 0 : i64, scratch_operands = 0 : i64, tpu.core_type = #tpu.core_type<tc>, window_params = [{transform_indices = @transform_0, window_bounds = array<i64: 1, 1024, 256>}, {pipeline_mode = #tpu.pipeline_mode<synchronous>, transform_indices = @transform_1, window_bounds = array<i64: 192, 1024>}, {pipeline_mode = #tpu.pipeline_mode<synchronous>, transform_indices = @transform_2, window_bounds = array<i64: 192, 1>}, {transform_indices = @transform_3, window_bounds = array<i64: 1, 192, 256>}]} {
    %c0 = arith.constant 0 : index
    %c0_0 = arith.constant 0 : index
    %0 = vector.load %arg3[%c0, %c0_0] : memref<192x1024xbf16, #tpu.memory_space<vmem>>, vector<192x1024xbf16>
    %c0_1 = arith.constant 0 : index
    %c0_2 = arith.constant 0 : index
    %1 = vector.load %arg4[%c0_1, %c0_2] : memref<192x1xf32, #tpu.memory_space<vmem>>, vector<192x1xf32>
    %c0_3 = arith.constant 0 : index
    %c0_4 = arith.constant 0 : index
    %c0_5 = arith.constant 0 : index
    %2 = vector.load %arg2[%c0_3, %c0_4, %c0_5] : memref<1x1024x256xf32, #tpu.memory_space<vmem>>, vector<1x1024x256xf32>
    %3 = vector.shape_cast %2 : vector<1x1024x256xf32> to vector<1024x256xf32>
    %4 = arith.truncf %3 : vector<1024x256xf32> to vector<1024x256xbf16>
    %cst = arith.constant dense<0.000000e+00> : vector<192x256xf32>
    %5 = tpu.matmul %0, %4, %cst {dimension_numbers = #tpu.dot_dimension_numbers<[1], [0], [0], [1], [0, 0, 1, 1], [], []>} : vector<192x1024xbf16>, vector<1024x256xbf16>, vector<192x256xf32> -> vector<192x256xf32>
    %6 = vector.broadcast %1 : vector<192x1xf32> to vector<192x256xf32>
    %7 = arith.addf %5, %6 : vector<192x256xf32>
    %cst_6 = arith.constant 0.000000e+00 : f32
    %8 = vector.broadcast %cst_6 : f32 to vector<192x256xf32>
    %9 = arith.maximumf %7, %8 : vector<192x256xf32>
    %10 = arith.truncf %9 : vector<192x256xf32> to vector<192x256xbf16>
    %c0_7 = arith.constant 0 : index
    %c0_8 = arith.constant 0 : index
    %c0_9 = arith.constant 0 : index
    %11 = vector.load %arg5[%c0_7, %c0_8, %c0_9] : memref<1x192x256xbf16, #tpu.memory_space<vmem>>, vector<1x192x256xbf16>
    %12 = vector.shape_cast %11 : vector<1x192x256xbf16> to vector<192x256xbf16>
    %13 = vector.shape_cast %10 : vector<192x256xbf16> to vector<1x192x256xbf16>
    tpu.vector_store %arg5[%c0_7, %c0_8, %c0_9], %13 {strides = array<i32>} : memref<1x192x256xbf16, #tpu.memory_space<vmem>>, vector<1x192x256xbf16>,
    return
  }
  func.func @transform_0(%arg0: i32, %arg1: i32) -> (i32, i32, i32) {
    %c0_i32 = arith.constant 0 : i32
    %c0_i32_0 = arith.constant 0 : i32
    return %arg0, %c0_i32, %arg1 : i32, i32, i32
  }
  func.func @transform_1(%arg0: i32, %arg1: i32) -> (i32, i32) {
    %c0_i32 = arith.constant 0 : i32
    %c0_i32_0 = arith.constant 0 : i32
    %c0_i32_1 = arith.constant 0 : i32
    return %c0_i32, %c0_i32_0 : i32, i32
  }
  func.func @transform_2(%arg0: i32, %arg1: i32) -> (i32, i32) {
    %c0_i32 = arith.constant 0 : i32
    %c0_i32_0 = arith.constant 0 : i32
    %c0_i32_1 = arith.constant 0 : i32
    return %c0_i32, %c0_i32_0 : i32, i32
  }
  func.func @transform_3(%arg0: i32, %arg1: i32) -> (i32, i32, i32) {
    %c0_i32 = arith.constant 0 : i32
    %c0_i32_0 = arith.constant 0 : i32
    return %arg0, %c0_i32, %arg1 : i32, i32, i32
  }
}

</mosaic_0001>

<bundles_post_ra>
// kernel: tpu_custom_call.1
= control target key start
LH: loop header
LB: loop body
LE: loop exit
PB: predicated region body
PF: predicated region fallthrough
CT: control target
= control target key end

     0   :  { %s4606_s0 = inlined_call_operand.hbm [shape: f32[2,1024,256], index: 0, kind: input, shape index: {}]   ;;  %s4607_s1 = inlined_call_operand.hbm [shape: bf16[192,1024], index: 1, kind: input, shape index: {}]   ;;  %s4608_s2 = inlined_call_operand.vmem [shape: f32[192,1], index: 2, kind: input, shape index: {}]   ;;  %s4609_s3 = inlined_call_operand.hbm [shape: bf16[2,192,256], index: 3, kind: output, shape index: {}]  }
   0x1   :  { %4703 = sst [smem:[#allocation109_spill]] %s4607_s1 }
   0x2   :  { %8 = vsyncpa [#allocation3], 0 }
   0x3   :  { %10 = vsyncpa [#allocation3 + $0x1], 0 }
   0x4   :  { %11 = vsyncpa [#allocation6], 0 }
   0x5   :  { %12 = vsyncpa [#allocation4], 0 }
   0x6   :  { %14 = vsyncpa [#allocation4 + $0x1], 0  ;;  %s3403_s12 = smov 0   ;;  %s3405_s13 = smov 0  }
   0x7   :  { %s3407_s14 = smov 0   ;;  %s3409_s15 = smov 0  }
   0x8   :  { %s3411_s16 = smov 0   ;;  %s3413_s17 = smov 0  }
   0x9 LB: > { %s2647_s18 = sadd.s32 4294967295, %s3373_s17   ;;  %s2648_s19 = sadd.s32 4294967294, %s3373_s17   ;;  %s3373_s17 = sphi %s3413_s17, %s20_s17   ;;  %s3369_s16 = sphi %s3411_s16, %s4924_s16   ;;  %s3365_s15 = sphi %s3409_s15, %s4923_s15   ;;  %s3361_s14 = sphi %s3407_s14, %s4922_s14   ;;  %s3357_s13 = sphi %s3405_s13, %s4921_s13   ;;  %s3353_s12 = sphi %s3403_s12, %s4920_s12  }
   0xa   : > { %p54_p0 = scmp.ne.s32.totalorder %s3357_s13, %s3353_s12  ;;  %p3437_p1 = scmp.eq.s32.totalorder %s2647_s18, 0 }
   0xb   : > { %p3441_p2 = scmp.eq.s32.totalorder %s2647_s18, 1  ;;  %p128_p3 = scmp.eq.s32.totalorder %s2648_s19, 1 }
   0xc   : > { %p3447_p4 = por %p3437_p1, %p54_p0  ;;  %p2649_p5 = scmp.ge.s32.totalorder %s3373_s17, 1 }
   0xd   : > { %p3452_p6 = por %p128_p3, %p54_p0  ;;  %p135_p7 = scmp.lt.s32.totalorder %s3373_s17, 3 }
   0xe   : > { %s4708_s1 = sld [smem:[#allocation109_spill]]  ;;  %s3375_s28 = smov [#allocation5]  }
   0xf   : > { %p3460_p8 = pnand %p2649_p5, %p135_p7  ;;  %s148_s29 = sshll.u32 %s3375_s28, 4  ;;  %s149_s29 = int_to_ptr.vmem [resolvable:$true] %s148_s29 }
  0x10   : > { %p2651_p11 = scmp.ge.s32.totalorder %s3373_s17, 2  ;;  %s3376_s30 = smov 512  }
  0x11   : > { %p3152_p9 = pneg %p3460_p8  ;;  %s3377_s4 = smov 32  }
  0x12   : > { %s32_s5 = sadd.s32 1, %s3369_s16  ;;  %s41_s6 = sadd.s32 1, %s3361_s14 }
  0x13   : > { %p3153_p10 = pnand %p3152_p9, %p3437_p1  ;;  %p34_p12 = scmp.ge.s32.totalorder %s32_s5, 2 }
  0x14   : > { %s146_s26 = sshll.u32 %s4708_s1, 4  ;;  %p48_p13 = scmp.ne.s32.totalorder %s3361_s14, %s3357_s13  ;;  %s147_s26 = int_to_ptr.hbm [resolvable:$true] %s146_s26 }
  0x15   : > { %3155 = dma.hbm_to_vmem [thread:$0]  (!%p3153_p10), %s147_s26, 12288, %s149_s29, [#allocation6], %s3376_s30, %s3376_s30, %s3377_s4  }
  0x16   : > { %p49_p0 = scmp.eq.s32.totalorder %s3373_s17, 0  ;;  %s4926_s5 = smov (%p34_p12, %s32_s5), 0 }
  0x17   : > { %p3482_p5 = por %p3441_p2, %p48_p13  ;;  %s36_s9 = ssub.s32 %s3369_s16, %s4926_s5 }
  0x18   : > { %p3476_p3 = por %p49_p0, %p48_p13  ;;  %p3165_p7 = scmp.lt.s32.totalorder %s3373_s17, 2 }
  0x19   : > { %p39_p9 = scmp.eq.s32.totalorder %s36_s9, 0  ;;  %s165_s10 = sand.u32 1, %s3361_s14  }
  0x1a   : > { %s2652_s11 = sshll.u32 %s165_s10, 11  ;;  %s3045_s19 = sshll.u32 %s3369_s16, 11 }
  0x1b   : > { %s3491_s18 = scalar_select %p39_p9, %s3361_s14, %s41_s6  }
  0x1c   : > { %s176_s26 = scalar_lea.hbm %s4606_s0, %s3045_s19  ;;  %s169_s28 = scalar_lea.vmem [#allocation2], %s2652_s11 }
  0x1d   : > { %s179_s29 = sshll.u32 %s169_s28, 4  ;;  %s177_s21 = sshll.u32 %s176_s26, 4  ;;  %s180_s29 = int_to_ptr.vmem [resolvable:$true] %s179_s29  ;;  %s178_s21 = int_to_ptr.hbm [resolvable:$true] %s177_s21 }
  0x1e   : > { %p3157_p2 = pnand %p3165_p7, %p3476_p3  ;;  %s166_s30 = scalar_lea.sflag [#allocation3], %s165_s10 }
  0x1f   : > { %s3378_s4 = smov 256   ;;  %s3379_s1 = smov 16  }
  0x20   : > { %3159 = dma.hbm_to_vmem [thread:$0]  (!%p3157_p2), %s178_s21, 32768, %s180_s29, %s166_s30, %s3378_s4, %s3378_s4, %s3379_s1  }
  0x21   : > { %191 = sbr.rel (%p3460_p8) target bundleno = 986 (0x3da), region = 32 }
  0x26   : > { %s3502_s6 = sand.u32 1, %s3357_s13  }
  0x27   : > { %s2656_s9 = sshll.u32 %s3502_s6, 11  ;;  %s194_s11 = scalar_lea.sflag [#allocation3], %s3502_s6 }
  0x28   : > { %s3506_s19 = scalar_lea.vmem [#allocation2], %s2656_s9 }
  0x29   : > { %3340 = dma.done.wait (%p3447_p4), %s194_s11, 32768  }
  0x2a   : > { %3342 = vsyncadd (%p3447_p4), %s194_s11, 4294934528 }
  0x2b   : > { %3344 = dma.done.wait (%p3437_p1), [#allocation6], 12288  }
  0x2c   : > { %3346 = vsyncadd (%p3437_p1), [#allocation6], 4294955008  ;;  %v376_v0 = vld [vmem:[%s3506_s19 + $0xe0] sm:$0xff]  ;;  %v378_v1 = vld [vmem:[%s3506_s19 + $0xf0] sm:$0xff]  ;;  %v3380_v29 = vmov 0   ;;  %s3143_s20 = smul.u32 192, %s3365_s15 }
  0x2d   : > { %v408_v2 = vld [vmem:[%s3506_s19 + $0x1e0] sm:$0xff]  ;;  %v618_v3 = vpack.c.bf16 %v378_v1, %v376_v0  ;;  %v410_v4 = vld [vmem:[%s3506_s19 + $0x1f0] sm:$0xff]  ;;  %3224 = vset.pattern.permute.xlu0 %v3380_v29  ;;  %3225 = vset.pattern.permute.xlu1 %v3380_v29  ;;  %s2533_s24 = scalar_lea.sflag [#allocation4], %s3502_s6  ;;  %s3307_s21 = scalar_lea.hbm %s4609_s3, 384 }
  0x2e   : > { %v440_v5 = vld [vmem:[%s3506_s19 + $0x2e0] sm:$0xff]  ;;  %v442_v6 = vld [vmem:[%s3506_s19 + $0x2f0] sm:$0xff]  ;;  %v634_v7 = vpack.c.bf16 %v410_v4, %v408_v2  ;;  %3226 = vset.pattern.permute.xlu2 %v3380_v29  ;;  %s2546_s7 = scalar_lea.hbm %s4609_s3, %s3143_s20 }
  0x2f   : > { %v650_v8 = vpack.c.bf16 %v442_v6, %v440_v5  ;;  %v472_v9 = vld [vmem:[%s3506_s19 + $0x3e0] sm:$0xff]  ;;  %v474_v10 = vld [vmem:[%s3506_s19 + $0x3f0] sm:$0xff]  ;;  %1332 = vmatpush.bf16.msra.mxu0 %v618_v3  ;;  %s2549_s15 = sshll.u32 %s2546_s7, 4  ;;  %s2550_s15 = int_to_ptr.hbm [resolvable:$true] %s2549_s15 }
  0x30   : > { %v372_v11 = vld [vmem:[%s3506_s19 + $0xc0] sm:$0xff]  ;;  %v666_v12 = vpack.c.bf16 %v474_v10, %v472_v9  ;;  %v374_v13 = vld [vmem:[%s3506_s19 + $0xd0] sm:$0xff]  ;;  %1401 = vmatpush.bf16.msra.mxu1 %v634_v7  ;;  %s3301_s25 = sshra.s32 %s2550_s15, 4  ;;  %s3302_s25 = int_to_ptr.hbm [resolvable:$true] %s3301_s25 }
  0x31   : > { %v404_v14 = vld [vmem:[%s3506_s19 + $0x1c0] sm:$0xff]  ;;  %v406_v15 = vld [vmem:[%s3506_s19 + $0x1d0] sm:$0xff]  ;;  %1470 = vmatpush.bf16.msra.mxu2 %v650_v8  ;;  %v616_v16 = vpack.c.bf16 %v374_v13, %v372_v11  ;;  %s3303_s26 = scalar_lea.hbm %s3302_s25, 192  ;;  %p3308_p10 = scmp.lt.s32.totalorder %s3302_s25, %s4609_s3 }
  0x32   : > { %v632_v17 = vpack.c.bf16 %v406_v15, %v404_v14  ;;  %v436_v18 = vld [vmem:[%s3506_s19 + $0x2c0] sm:$0xff]  ;;  %v438_v19 = vld [vmem:[%s3506_s19 + $0x2d0] sm:$0xff]  ;;  %1539 = vmatpush.bf16.msra.mxu3 %v666_v12  ;;  %p3304_p1 = scmp.ne.s32.totalorder %s3302_s25, %s3303_s26  ;;  %p3309_p12 = scmp.lt.s32.totalorder %s3307_s21, %s3303_s26 }
  0x33   : > { %v468_v20 = vld [vmem:[%s3506_s19 + $0x3c0] sm:$0xff]  ;;  %v648_v21 = vpack.c.bf16 %v438_v19, %v436_v18  ;;  %v470_v22 = vld [vmem:[%s3506_s19 + $0x3d0] sm:$0xff]  ;;  %1333 = vmatpush.bf16.msra.mxu0 %v616_v16 }
  0x34   : > { %v368_v23 = vld [vmem:[%s3506_s19 + $0xa0] sm:$0xff]  ;;  %v370_v24 = vld [vmem:[%s3506_s19 + $0xb0] sm:$0xff]  ;;  %v664_v25 = vpack.c.bf16 %v470_v22, %v468_v20  ;;  %1402 = vmatpush.bf16.msra.mxu1 %v632_v17  ;;  %p3305_p4 = pnand %p3304_p1, %p3482_p5  ;;  %p3310_p13 = por %p3309_p12, %p3308_p10 }
  0x35   : > { %v400_v26 = vld [vmem:[%s3506_s19 + $0x1a0] sm:$0xff]  ;;  %v402_v27 = vld [vmem:[%s3506_s19 + $0x1b0] sm:$0xff]  ;;  %v614_v30 = vpack.c.bf16 %v370_v24, %v368_v23  ;;  %1471 = vmatpush.bf16.msra.mxu2 %v648_v21 }
  0x36   : > { %v432_v28 = vld [vmem:[%s3506_s19 + $0x2a0] sm:$0xff]  ;;  %v434_v31 = vld [vmem:[%s3506_s19 + $0x2b0] sm:$0xff]  ;;  %v630_v34 = vpack.c.bf16 %v402_v27, %v400_v26  ;;  %1540 = vmatpush.bf16.msra.mxu3 %v664_v25  ;;  %p3306_p8 = pneg %p3305_p4 }
  0x37   : > { %v464_v32 = vld [vmem:[%s3506_s19 + $0x3a0] sm:$0xff]  ;;  %v466_v33 = vld [vmem:[%s3506_s19 + $0x3b0] sm:$0xff]  ;;  %v646_v35 = vpack.c.bf16 %v434_v31, %v432_v28  ;;  %1334 = vmatpush.bf16.msra.mxu0 %v614_v30 }
  0x38   : > { %v364_v36 = vld [vmem:[%s3506_s19 + $0x80] sm:$0xff]  ;;  %v366_v37 = vld [vmem:[%s3506_s19 + $0x90] sm:$0xff]  ;;  %v662_v39 = vpack.c.bf16 %v466_v33, %v464_v32  ;;  %1403 = vmatpush.bf16.msra.mxu1 %v630_v34  ;;  %p3311_p0 = pnand %p3310_p13, %p3306_p8 }
  0x39   : > { %v396_v38 = vld [vmem:[%s3506_s19 + $0x180] sm:$0xff]  ;;  %v398_v40 = vld [vmem:[%s3506_s19 + $0x190] sm:$0xff]  ;;  %v612_v45 = vpack.c.bf16 %v366_v37, %v364_v36  ;;  %1472 = vmatpush.bf16.msra.mxu2 %v646_v35 }
  0x3a   : > { %v428_v41 = vld [vmem:[%s3506_s19 + $0x280] sm:$0xff]  ;;  %v430_v42 = vld [vmem:[%s3506_s19 + $0x290] sm:$0xff]  ;;  %v628_v46 = vpack.c.bf16 %v398_v40, %v396_v38  ;;  %1541 = vmatpush.bf16.msra.mxu3 %v662_v39 }
  0x3b   : > { %v460_v43 = vld [vmem:[%s3506_s19 + $0x380] sm:$0xff]  ;;  %v462_v44 = vld [vmem:[%s3506_s19 + $0x390] sm:$0xff]  ;;  %v644_v47 = vpack.c.bf16 %v430_v42, %v428_v41  ;;  %1335 = vmatpush.bf16.msra.mxu0 %v612_v45  ;;  %v2668_v41 = vld [vmem:[#allocation5 + $0x8] sm:$0xf] }
  0x3c   : > { %v360_v48 = vld [vmem:[%s3506_s19 + $0x60] sm:$0xff]  ;;  %v362_v49 = vld [vmem:[%s3506_s19 + $0x70] sm:$0xff]  ;;  %v660_v51 = vpack.c.bf16 %v462_v44, %v460_v43  ;;  %1404 = vmatpush.bf16.msra.mxu1 %v628_v46  ;;  %v3051_v42 = vld [vmem:[#allocation5 + $0x24] sm:$0xf0] }
  0x3d   : > { %v392_v50 = vld [vmem:[%s3506_s19 + $0x160] sm:$0xff]  ;;  %v394_v52 = vld [vmem:[%s3506_s19 + $0x170] sm:$0xff]  ;;  %v610_v57 = vpack.c.bf16 %v362_v49, %v360_v48  ;;  %1473 = vmatpush.bf16.msra.mxu2 %v644_v47  ;;  %v3047_v43 = vld [vmem:[#allocation5 + $0xc] sm:$0xf] }
  0x3e   : > { %v424_v53 = vld [vmem:[%s3506_s19 + $0x260] sm:$0xff]  ;;  %v426_v54 = vld [vmem:[%s3506_s19 + $0x270] sm:$0xff]  ;;  %v626_v58 = vpack.c.bf16 %v394_v52, %v392_v50  ;;  %1542 = vmatpush.bf16.msra.mxu3 %v660_v51  ;;  %v2670_v45 = vld [vmem:[#allocation5 + $0x28] sm:$0xf0] }
  0x3f   : > { %v456_v55 = vld [vmem:[%s3506_s19 + $0x360] sm:$0xff]  ;;  %v458_v56 = vld [vmem:[%s3506_s19 + $0x370] sm:$0xff]  ;;  %v642_v59 = vpack.c.bf16 %v426_v54, %v424_v53  ;;  %1336 = vmatpush.bf16.msra.mxu0 %v610_v57 }
  0x40   : > { %v356_v60 = vld [vmem:[%s3506_s19 + $0x40] sm:$0xff]  ;;  %v358_v61 = vld [vmem:[%s3506_s19 + $0x50] sm:$0xff]  ;;  %v658_v63 = vpack.c.bf16 %v458_v56, %v456_v55  ;;  %1405 = vmatpush.bf16.msra.mxu1 %v626_v58  ;;  %v3596_v55 = vor.u32 %v3051_v42, %v2668_v41  ;;  %v2734_v41 = vld [vmem:[#allocation5 + $0xa8] sm:$0xf0] }
  0x41   : > { %v388_v62 = vld [vmem:[%s3506_s19 + $0x140] sm:$0xff]  ;;  %v390_v0 = vld [vmem:[%s3506_s19 + $0x150] sm:$0xff]  ;;  %v608_v5 = vpack.c.bf16 %v358_v61, %v356_v60  ;;  %1474 = vmatpush.bf16.msra.mxu2 %v642_v59  ;;  %v3601_v59 = vor.u32 %v3047_v43, %v2670_v45 }
  0x42   : > { %v420_v1 = vld [vmem:[%s3506_s19 + $0x240] sm:$0xff]  ;;  %v422_v2 = vld [vmem:[%s3506_s19 + $0x250] sm:$0xff]  ;;  %v624_v6 = vpack.c.bf16 %v390_v0, %v388_v62  ;;  %1543 = vmatpush.bf16.msra.mxu3 %v658_v63  ;;  %v325_v0 = vld [vmem:[%s4608_s2 + $0x8] sm:$0xff] }
  0x43   : > { %v452_v3 = vld [vmem:[%s3506_s19 + $0x340] sm:$0xff]  ;;  %v454_v4 = vld [vmem:[%s3506_s19 + $0x350] sm:$0xff]  ;;  %v640_v7 = vpack.c.bf16 %v422_v2, %v420_v1  ;;  %1337 = vmatpush.bf16.msra.mxu0 %v608_v5 }
  0x44   : > { %v352_v8 = vld [vmem:[%s3506_s19 + $0x20] sm:$0xff]  ;;  %v354_v9 = vld [vmem:[%s3506_s19 + $0x30] sm:$0xff]  ;;  %v656_v11 = vpack.c.bf16 %v454_v4, %v452_v3  ;;  %1406 = vmatpush.bf16.msra.mxu1 %v624_v6 }
  0x45   : > { %v384_v10 = vld [vmem:[%s3506_s19 + $0x120] sm:$0xff]  ;;  %v386_v12 = vld [vmem:[%s3506_s19 + $0x130] sm:$0xff]  ;;  %v606_v18 = vpack.c.bf16 %v354_v9, %v352_v8  ;;  %1475 = vmatpush.bf16.msra.mxu2 %v640_v7 }
  0x46   : > { %v416_v13 = vld [vmem:[%s3506_s19 + $0x220] sm:$0xff]  ;;  %v418_v14 = vld [vmem:[%s3506_s19 + $0x230] sm:$0xff]  ;;  %v622_v22 = vpack.c.bf16 %v386_v12, %v384_v10  ;;  %1544 = vmatpush.bf16.msra.mxu3 %v656_v11  ;;  %v2700_v12 = vld [vmem:[#allocation5 + $0x48] sm:$0xf] }
  0x47   : > { %v448_v15 = vld [vmem:[%s3506_s19 + $0x320] sm:$0xff]  ;;  %v450_v16 = vld [vmem:[%s3506_s19 + $0x330] sm:$0xff]  ;;  %v638_v23 = vpack.c.bf16 %v418_v14, %v416_v13  ;;  %1338 = vmatpush.bf16.msra.mxu0 %v606_v18  ;;  %v3059_v13 = vld [vmem:[#allocation5 + $0x64] sm:$0xf0] }
  0x48   : > { %v348_v17 = vld [vmem:[%s3506_s19] sm:$0xff]  ;;  %v350_v19 = vld [vmem:[%s3506_s19 + $0x10] sm:$0xff]  ;;  %v654_v27 = vpack.c.bf16 %v450_v16, %v448_v15  ;;  %1407 = vmatpush.bf16.msra.mxu1 %v622_v22  ;;  %v327_v14 = vld [vmem:[%s4608_s2 + $0x18] sm:$0xff] }
  0x49   : > { %v380_v20 = vld [vmem:[%s3506_s19 + $0x100] sm:$0xff]  ;;  %v382_v21 = vld [vmem:[%s3506_s19 + $0x110] sm:$0xff]  ;;  %v604_v35 = vpack.c.bf16 %v350_v19, %v348_v17  ;;  %1476 = vmatpush.bf16.msra.mxu2 %v638_v23  ;;  %v3055_v15 = vld [vmem:[#allocation5 + $0x4c] sm:$0xf]  ;;  %v3624_v19 = vor.u32 %v3059_v13, %v2700_v12 }
  0x4a   : > { %v412_v24 = vld [vmem:[%s3506_s19 + $0x200] sm:$0xff]  ;;  %v414_v25 = vld [vmem:[%s3506_s19 + $0x210] sm:$0xff]  ;;  %v620_v39 = vpack.c.bf16 %v382_v21, %v380_v20  ;;  %1545 = vmatpush.bf16.msra.mxu3 %v654_v27  ;;  %v2702_v16 = vld [vmem:[#allocation5 + $0x68] sm:$0xf0] }
  0x4b   : > { %v444_v26 = vld [vmem:[%s3506_s19 + $0x300] sm:$0xff]  ;;  %v446_v28 = vld [vmem:[%s3506_s19 + $0x310] sm:$0xff]  ;;  %v636_v40 = vpack.c.bf16 %v414_v25, %v412_v24  ;;  %1339 = vmatpush.bf16.msra.mxu0 %v604_v35  ;;  %v3626_v20 = vor.u32 %v3055_v15, %v2702_v16  ;;  %v333_v13 = vld [vmem:[%s4608_s2 + $0x48] sm:$0xff] }
  0x4c   : > { %v2660_v29 = vld [vmem:[#allocation5] sm:$0xf]  ;;  %v3046_v31 = vld [vmem:[#allocation5 + $0x4] sm:$0xf]  ;;  %v570_v33 = vld [vmem:[%s3506_s19 + $0x6f0] sm:$0xff]  ;;  %v652_v44 = vpack.c.bf16 %v446_v28, %v444_v26  ;;  %1408 = vmatpush.bf16.msra.mxu1 %v620_v39 }
  0x4d   : > { %v3050_v30 = vld [vmem:[#allocation5 + $0x1c] sm:$0xf0]  ;;  %v2662_v36 = vld [vmem:[#allocation5 + $0x20] sm:$0xf0]  ;;  %v602_v38 = vld [vmem:[%s3506_s19 + $0x7f0] sm:$0xff]  ;;  %1477 = vmatpush.bf16.msra.mxu2 %v636_v40 }
  0x4e   : > { %v568_v32 = vld [vmem:[%s3506_s19 + $0x6e0] sm:$0xff]  ;;  %v506_v48 = vld [vmem:[%s3506_s19 + $0x4f0] sm:$0xff]  ;;  %v3589_v49 = vor.u32 %v3050_v30, %v2660_v29  ;;  %v3594_v54 = vor.u32 %v3046_v31, %v2662_v36  ;;  %1546 = vmatpush.bf16.msra.mxu3 %v652_v44  ;;  %v3067_v39 = vld [vmem:[#allocation5 + $0xa4] sm:$0xf0] }
  0x4f   : > { %v324_v34 = vld [vmem:[%s4608_s2] sm:$0xff]  ;;  %v714_v46 = vpack.c.bf16 %v570_v33, %v568_v32  ;;  %v538_v52 = vld [vmem:[%s3506_s19 + $0x5f0] sm:$0xff]  ;;  %v3063_v40 = vld [vmem:[#allocation5 + $0x8c] sm:$0xf] }
  0x50   : > { %v600_v37 = vld [vmem:[%s3506_s19 + $0x7e0] sm:$0xff]  ;;  %734 = vperm.xlu0 %3224, %v324_v34   ;;  %v566_v56 = vld [vmem:[%s3506_s19 + $0x6d0] sm:$0xff]  ;;  %1340 = vmatmul.bf16.vlgmr.msra.gmra.mxu0 %v3589_v49  ;;  %v3649_v45 = vor.u32 %v3063_v40, %v2734_v41 }
  0x51   : > { %v504_v47 = vld [vmem:[%s3506_s19 + $0x4e0] sm:$0xff]  ;;  %v730_v50 = vpack.c.bf16 %v602_v38, %v600_v37  ;;  %v598_v58 = vld [vmem:[%s3506_s19 + $0x7d0] sm:$0xff]  ;;  %1746 = vmatpush.bf16.msrb.mxu2 %v714_v46  ;;  %1409 = vmatmul.bf16.vlgmr.msra.gmra.mxu1 %v3594_v54  ;;  %v2732_v38 = vld [vmem:[#allocation5 + $0x88] sm:$0xf] }
  0x52   : > { %v536_v51 = vld [vmem:[%s3506_s19 + $0x5e0] sm:$0xff]  ;;  %v682_v60 = vpack.c.bf16 %v506_v48, %v504_v47  ;;  %v502_v63 = vld [vmem:[%s3506_s19 + $0x4d0] sm:$0xff]  ;;  %1478 = vmatmul.bf16.vlgmr.msra.gmra.mxu2 %v3596_v55  ;;  %1547 = vmatmul.bf16.vlgmr.msra.gmra.mxu3 %v3601_v59  ;;  %v3647_v44 = vor.u32 %v3067_v39, %v2732_v38  ;;  %v331_v47 = vld [vmem:[%s4608_s2 + $0x38] sm:$0xff] }
  0x53   : > { %v564_v53 = vld [vmem:[%s3506_s19 + $0x6c0] sm:$0xff]  ;;  %v698_v61 = vpack.c.bf16 %v538_v52, %v536_v51  ;;  %1815 = vmatpush.bf16.msrb.mxu3 %v730_v50  ;;  %v534_v4 = vld [vmem:[%s3506_s19 + $0x5d0] sm:$0xff] }
  0x54   : > { %v596_v57 = vld [vmem:[%s3506_s19 + $0x7c0] sm:$0xff]  ;;  %v712_v1 = vpack.c.bf16 %v566_v56, %v564_v53  ;;  %1608 = vmatpush.bf16.msrb.mxu0 %v682_v60  ;;  %v326_v6 = vld [vmem:[%s4608_s2 + $0x10] sm:$0xff] }
  0x55   : > { %v500_v62 = vld [vmem:[%s3506_s19 + $0x4c0] sm:$0xff]  ;;  %v728_v2 = vpack.c.bf16 %v598_v58, %v596_v57  ;;  %1677 = vmatpush.bf16.msrb.mxu1 %v698_v61  ;;  %744 = vperm.xlu1 %3225, %v326_v6   ;;  %v562_v22 = vld [vmem:[%s3506_s19 + $0x6b0] sm:$0xff]  ;;  %v3075_v6 = vld [vmem:[#allocation5 + $0xe4] sm:$0xf0] }
  0x56   : > { %v532_v3 = vld [vmem:[%s3506_s19 + $0x5c0] sm:$0xff]  ;;  %v680_v5 = vpack.c.bf16 %v502_v63, %v500_v62  ;;  %1747 = vmatpush.bf16.msrb.mxu2 %v712_v1  ;;  %v498_v25 = vld [vmem:[%s3506_s19 + $0x4b0] sm:$0xff] }
  0x57   : > { %v696_v7 = vpack.c.bf16 %v534_v4, %v532_v3  ;;  %1816 = vmatpush.bf16.msrb.mxu3 %v728_v2  ;;  %v2692_v8 = vld [vmem:[#allocation5 + $0x40] sm:$0xf]  ;;  %v3054_v10 = vld [vmem:[#allocation5 + $0x44] sm:$0xf]  ;;  %v594_v27 = vld [vmem:[%s3506_s19 + $0x7b0] sm:$0xff] }
  0x58   : > { %739 = vperm.xlu0 %3224, %v325_v0   ;;  %1609 = vmatpush.bf16.msrb.mxu0 %v680_v5  ;;  %v3058_v9 = vld [vmem:[#allocation5 + $0x5c] sm:$0xf0]  ;;  %v2694_v11 = vld [vmem:[#allocation5 + $0x60] sm:$0xf0]  ;;  %v530_v31 = vld [vmem:[%s3506_s19 + $0x5b0] sm:$0xff] }
  0x59   : > { %1678 = vmatpush.bf16.msrb.mxu1 %v696_v7  ;;  %v3620_v17 = vor.u32 %v3058_v9, %v2692_v8  ;;  %v3622_v18 = vor.u32 %v3054_v10, %v2694_v11  ;;  %v560_v21 = vld [vmem:[%s3506_s19 + $0x6a0] sm:$0xff]  ;;  %v330_v32 = vld [vmem:[%s4608_s2 + $0x30] sm:$0xff]  ;;  %v329_v0 = vld [vmem:[%s4608_s2 + $0x28] sm:$0xff] }
  0x5a   : > { %v496_v23 = vld [vmem:[%s3506_s19 + $0x4a0] sm:$0xff]  ;;  %v710_v24 = vpack.c.bf16 %v562_v22, %v560_v21  ;;  %v558_v50 = vld [vmem:[%s3506_s19 + $0x690] sm:$0xff]  ;;  %v2764_v5 = vld [vmem:[#allocation5 + $0xc8] sm:$0xf] }
  0x5b   : > { %v592_v26 = vld [vmem:[%s3506_s19 + $0x7a0] sm:$0xff]  ;;  %v678_v28 = vpack.c.bf16 %v498_v25, %v496_v23  ;;  %v494_v52 = vld [vmem:[%s3506_s19 + $0x490] sm:$0xff]  ;;  %v3071_v7 = vld [vmem:[#allocation5 + $0xcc] sm:$0xf]  ;;  %v3676_v11 = vor.u32 %v3075_v6, %v2764_v5 }
  0x5c   : > { %v726_v29 = vpack.c.bf16 %v594_v27, %v592_v26  ;;  %v528_v30 = vld [vmem:[%s3506_s19 + $0x5a0] sm:$0xff]  ;;  %1748 = vmatpush.bf16.msrb.mxu2 %v710_v24  ;;  %v590_v58 = vld [vmem:[%s3506_s19 + $0x790] sm:$0xff]  ;;  %v2766_v8 = vld [vmem:[#allocation5 + $0xe8] sm:$0xf0] }
  0x5d   : > { %749 = vperm.xlu1 %3225, %v327_v14   ;;  %v694_v33 = vpack.c.bf16 %v530_v31, %v528_v30  ;;  %1610 = vmatpush.bf16.msrb.mxu0 %v678_v28  ;;  %v2724_v34 = vld [vmem:[#allocation5 + $0x80] sm:$0xf]  ;;  %v3062_v36 = vld [vmem:[#allocation5 + $0x84] sm:$0xf]  ;;  %v526_v62 = vld [vmem:[%s3506_s19 + $0x590] sm:$0xff]  ;;  %v3678_v12 = vor.u32 %v3071_v7, %v2766_v8 }
  0x5e   : > { %1817 = vmatpush.bf16.msrb.mxu3 %v726_v29  ;;  %v3066_v35 = vld [vmem:[#allocation5 + $0x9c] sm:$0xf0]  ;;  %v2726_v37 = vld [vmem:[#allocation5 + $0xa0] sm:$0xf0]  ;;  %v334_v14 = vld [vmem:[%s4608_s2 + $0x50] sm:$0xff] }
  0x5f   : > { %1679 = vmatpush.bf16.msrb.mxu1 %v694_v33  ;;  %v3643_v42 = vor.u32 %v3066_v35, %v2724_v34  ;;  %v3645_v43 = vor.u32 %v3062_v36, %v2726_v37  ;;  %v328_v46 = vld [vmem:[%s4608_s2 + $0x20] sm:$0xff]  ;;  %v2796_v23 = vld [vmem:[#allocation5 + $0x108] sm:$0xf]  ;;  %v3079_v25 = vld [vmem:[#allocation5 + $0x10c] sm:$0xf] }
  0x60   : > { %1345 = vmatmul.bf16.gmra.mxu0 %v3620_v17  ;;  %764 = vperm.xlu0 %3224, %v330_v32   ;;  %v556_v48 = vld [vmem:[%s3506_s19 + $0x680] sm:$0xff]  ;;  %v3083_v24 = vld [vmem:[#allocation5 + $0x124] sm:$0xf0]  ;;  %v2798_v26 = vld [vmem:[#allocation5 + $0x128] sm:$0xf0] }
  0x61   : > { %1414 = vmatmul.bf16.gmra.mxu1 %v3622_v18  ;;  %754 = vperm.xlu2 %3226, %v328_v46   ;;  %v492_v51 = vld [vmem:[%s3506_s19 + $0x480] sm:$0xff]  ;;  %v708_v53 = vpack.c.bf16 %v558_v50, %v556_v48  ;;  %v3694_v29 = vor.u32 %v3083_v24, %v2796_v23  ;;  %v3696_v30 = vor.u32 %v3079_v25, %v2798_v26  ;;  %v554_v32 = vld [vmem:[%s3506_s19 + $0x670] sm:$0xff] }
  0x62   : > { %1483 = vmatmul.bf16.gmra.mxu2 %v3624_v19  ;;  %1552 = vmatmul.bf16.gmra.mxu3 %v3626_v20  ;;  %v676_v56 = vpack.c.bf16 %v494_v52, %v492_v51  ;;  %v588_v57 = vld [vmem:[%s3506_s19 + $0x780] sm:$0xff]  ;;  %v490_v35 = vld [vmem:[%s3506_s19 + $0x470] sm:$0xff] }
  0x63   : > { %v724_v60 = vpack.c.bf16 %v590_v58, %v588_v57  ;;  %v524_v61 = vld [vmem:[%s3506_s19 + $0x580] sm:$0xff]  ;;  %1749 = vmatpush.bf16.msrb.mxu2 %v708_v53  ;;  %v586_v37 = vld [vmem:[%s3506_s19 + $0x770] sm:$0xff]  ;;  %v3091_v57 = vld [vmem:[#allocation5 + $0x164] sm:$0xf0] }
  0x64   : > { %1611 = vmatpush.bf16.msrb.mxu0 %v676_v56  ;;  %v692_v63 = vpack.c.bf16 %v526_v62, %v524_v61  ;;  %v2756_v1 = vld [vmem:[#allocation5 + $0xc0] sm:$0xf]  ;;  %v3070_v3 = vld [vmem:[#allocation5 + $0xc4] sm:$0xf]  ;;  %v522_v41 = vld [vmem:[%s3506_s19 + $0x570] sm:$0xff] }
  0x65   : > { %769 = vperm.xlu1 %3225, %v331_v47   ;;  %1818 = vmatpush.bf16.msrb.mxu3 %v724_v60  ;;  %v3074_v2 = vld [vmem:[#allocation5 + $0xdc] sm:$0xf0]  ;;  %v2758_v4 = vld [vmem:[#allocation5 + $0xe0] sm:$0xf0]  ;;  %v2828_v56 = vld [vmem:[#allocation5 + $0x148] sm:$0xf] }
  0x66   : > { %1680 = vmatpush.bf16.msrb.mxu1 %v692_v63  ;;  %v3672_v9 = vor.u32 %v3074_v2, %v2756_v1  ;;  %v3674_v10 = vor.u32 %v3070_v3, %v2758_v4  ;;  %v2788_v15 = vld [vmem:[#allocation5 + $0x100] sm:$0xf]  ;;  %v3078_v21 = vld [vmem:[#allocation5 + $0x104] sm:$0xf]  ;;  %v3087_v58 = vld [vmem:[#allocation5 + $0x14c] sm:$0xf]  ;;  %v3720_v63 = vor.u32 %v3091_v57, %v2828_v56 }
  0x67   : > { %v3082_v16 = vld [vmem:[#allocation5 + $0x11c] sm:$0xf0]  ;;  %v2790_v22 = vld [vmem:[#allocation5 + $0x120] sm:$0xf0]  ;;  %v2830_v60 = vld [vmem:[#allocation5 + $0x168] sm:$0xf0] }
  0x68   : > { %779 = vperm.xlu0 %3224, %v333_v13   ;;  %v3690_v27 = vor.u32 %v3082_v16, %v2788_v15  ;;  %v3692_v28 = vor.u32 %v3078_v21, %v2790_v22  ;;  %v552_v31 = vld [vmem:[%s3506_s19 + $0x660] sm:$0xff]  ;;  %4714 = vst [vmem:[#allocation13_spill] sm:$0xff] %v3720_v63  ;;  %v337_v1 = vld [vmem:[%s4608_s2 + $0x68] sm:$0xff]  ;;  %v550_v3 = vld [vmem:[%s3506_s19 + $0x650] sm:$0xff] }
  0x69   : > { %759 = vperm.xlu2 %3226, %v329_v0   ;;  %v488_v33 = vld [vmem:[%s3506_s19 + $0x460] sm:$0xff]  ;;  %v706_v34 = vpack.c.bf16 %v554_v32, %v552_v31  ;;  %v3722_v0 = vor.u32 %v3087_v58, %v2830_v60  ;;  %v486_v6 = vld [vmem:[%s3506_s19 + $0x450] sm:$0xff]  ;;  %v2860_v31 = vld [vmem:[#allocation5 + $0x188] sm:$0xf] }
  0x6a   : > { %v584_v36 = vld [vmem:[%s3506_s19 + $0x760] sm:$0xff]  ;;  %v674_v38 = vpack.c.bf16 %v490_v35, %v488_v33  ;;  %v582_v13 = vld [vmem:[%s3506_s19 + $0x750] sm:$0xff]  ;;  %v3099_v32 = vld [vmem:[#allocation5 + $0x1a4] sm:$0xf0] }
  0x6b   : > { %v722_v39 = vpack.c.bf16 %v586_v37, %v584_v36  ;;  %v520_v40 = vld [vmem:[%s3506_s19 + $0x560] sm:$0xff]  ;;  %1750 = vmatpush.bf16.msrb.mxu2 %v706_v34  ;;  %4715 = vst [vmem:[#allocation14_spill] sm:$0xff] %v3722_v0  ;;  %v518_v21 = vld [vmem:[%s3506_s19 + $0x550] sm:$0xff]  ;;  %v3095_v33 = vld [vmem:[#allocation5 + $0x18c] sm:$0xf]  ;;  %v3746_v37 = vor.u32 %v3099_v32, %v2860_v31 }
  0x6c   : > { %v332_v46 = vld [vmem:[%s4608_s2 + $0x40] sm:$0xff]  ;;  %v690_v47 = vpack.c.bf16 %v522_v41, %v520_v40  ;;  %1612 = vmatpush.bf16.msrb.mxu0 %v674_v38  ;;  %v2862_v34 = vld [vmem:[#allocation5 + $0x1a8] sm:$0xf0]  ;;  %v2924_v31 = vld [vmem:[#allocation5 + $0x208] sm:$0xf] }
  0x6d   : > { %784 = vperm.xlu1 %3225, %v334_v14   ;;  %v336_v48 = vld [vmem:[%s4608_s2 + $0x60] sm:$0xff]  ;;  %1819 = vmatpush.bf16.msrb.mxu3 %v722_v39  ;;  %v335_v14 = vld [vmem:[%s4608_s2 + $0x58] sm:$0xff]  ;;  %4718 = vst [vmem:[#allocation17_spill] sm:$0xff] %v3746_v37  ;;  %v3748_v38 = vor.u32 %v3095_v33, %v2862_v34  ;;  %v3115_v32 = vld [vmem:[#allocation5 + $0x224] sm:$0xf0] }
  0x6e   : > { %1681 = vmatpush.bf16.msrb.mxu1 %v690_v47  ;;  %v2820_v50 = vld [vmem:[#allocation5 + $0x140] sm:$0xf]  ;;  %v3086_v52 = vld [vmem:[#allocation5 + $0x144] sm:$0xf]  ;;  %v339_v39 = vld [vmem:[%s4608_s2 + $0x78] sm:$0xff] }
  0x6f   : > { %v3090_v51 = vld [vmem:[#allocation5 + $0x15c] sm:$0xf0]  ;;  %v2822_v53 = vld [vmem:[#allocation5 + $0x160] sm:$0xf0]  ;;  %4719 = vst [vmem:[#allocation18_spill] sm:$0xff] %v3748_v38 }
  0x70   : > { %1350 = vmatmul.bf16.gmra.mxu0 %v3643_v42  ;;  %794 = vperm.xlu0 %3224, %v336_v48   ;;  %v3716_v61 = vor.u32 %v3090_v51, %v2820_v50  ;;  %v3718_v62 = vor.u32 %v3086_v52, %v2822_v53  ;;  %v548_v2 = vld [vmem:[%s3506_s19 + $0x640] sm:$0xff]  ;;  %v2892_v48 = vld [vmem:[#allocation5 + $0x1c8] sm:$0xf]  ;;  %v3103_v51 = vld [vmem:[#allocation5 + $0x1cc] sm:$0xf] }
  0x71   : > { %1419 = vmatmul.bf16.gmra.mxu1 %v3645_v43  ;;  %774 = vperm.xlu2 %3226, %v332_v46   ;;  %v704_v4 = vpack.c.bf16 %v550_v3, %v548_v2  ;;  %v484_v5 = vld [vmem:[%s3506_s19 + $0x440] sm:$0xff]  ;;  %v3107_v50 = vld [vmem:[#allocation5 + $0x1e4] sm:$0xf0]  ;;  %v2894_v52 = vld [vmem:[#allocation5 + $0x1e8] sm:$0xf0] }
  0x72   : > { %1488 = vmatmul.bf16.gmra.mxu2 %v3647_v44  ;;  %1557 = vmatmul.bf16.gmra.mxu3 %v3649_v45  ;;  %4712 = vst [vmem:[#allocation11_spill] sm:$0xff] %v3716_v61  ;;  %v580_v7 = vld [vmem:[%s3506_s19 + $0x740] sm:$0xff]  ;;  %v672_v8 = vpack.c.bf16 %v486_v6, %v484_v5  ;;  %v3761_v57 = vor.u32 %v3107_v50, %v2892_v48  ;;  %v546_v2 = vld [vmem:[%s3506_s19 + $0x630] sm:$0xff]  ;;  %v3111_v33 = vld [vmem:[#allocation5 + $0x20c] sm:$0xf] }
  0x73   : > { %4713 = vst [vmem:[#allocation12_spill] sm:$0xff] %v3718_v62  ;;  %v516_v15 = vld [vmem:[%s3506_s19 + $0x540] sm:$0xff]  ;;  %1751 = vmatpush.bf16.msrb.mxu2 %v704_v4  ;;  %v720_v16 = vpack.c.bf16 %v582_v13, %v580_v7  ;;  %v3763_v58 = vor.u32 %v3103_v51, %v2894_v52  ;;  %v482_v5 = vld [vmem:[%s3506_s19 + $0x430] sm:$0xff]  ;;  %v2926_v34 = vld [vmem:[#allocation5 + $0x228] sm:$0xf0] }
  0x74   : > { %1613 = vmatpush.bf16.msrb.mxu0 %v672_v8  ;;  %v688_v22 = vpack.c.bf16 %v518_v21, %v516_v15  ;;  %v2852_v23 = vld [vmem:[#allocation5 + $0x180] sm:$0xf]  ;;  %v3094_v25 = vld [vmem:[#allocation5 + $0x184] sm:$0xf]  ;;  %4722 = vst [vmem:[#allocation21_spill] sm:$0xff] %v3761_v57  ;;  %v578_v7 = vld [vmem:[%s3506_s19 + $0x730] sm:$0xff]  ;;  %v3792_v50 = vor.u32 %v3111_v33, %v2926_v34 }
  0x75   : > { %799 = vperm.xlu1 %3225, %v337_v1   ;;  %1820 = vmatpush.bf16.msrb.mxu3 %v720_v16  ;;  %v3098_v24 = vld [vmem:[#allocation5 + $0x19c] sm:$0xf0]  ;;  %v2854_v26 = vld [vmem:[#allocation5 + $0x1a0] sm:$0xf0]  ;;  %4723 = vst [vmem:[#allocation22_spill] sm:$0xff] %v3763_v58  ;;  %v514_v16 = vld [vmem:[%s3506_s19 + $0x530] sm:$0xff] }
  0x76   : > { %1682 = vmatpush.bf16.msrb.mxu1 %v688_v22  ;;  %v3742_v35 = vor.u32 %v3098_v24, %v2852_v23  ;;  %v3744_v36 = vor.u32 %v3094_v25, %v2854_v26  ;;  %v2884_v40 = vld [vmem:[#allocation5 + $0x1c0] sm:$0xf]  ;;  %v3102_v46 = vld [vmem:[#allocation5 + $0x1c4] sm:$0xf]  ;;  %4728 = vst [vmem:[#allocation27_spill] sm:$0xff] %v3792_v50  ;;  %v342_v51 = vld [vmem:[%s4608_s2 + $0x90] sm:$0xff] }
  0x77   : > { %v3106_v41 = vld [vmem:[#allocation5 + $0x1dc] sm:$0xf0]  ;;  %v2886_v47 = vld [vmem:[#allocation5 + $0x1e0] sm:$0xf0]  ;;  %v574_v34 = vld [vmem:[%s3506_s19 + $0x710] sm:$0xff] }
  0x78   : > { %4716 = vst [vmem:[#allocation15_spill] sm:$0xff] %v3742_v35  ;;  %809 = vperm.xlu0 %3224, %v339_v39   ;;  %v3757_v53 = vor.u32 %v3106_v41, %v2884_v40  ;;  %v3759_v56 = vor.u32 %v3102_v46, %v2886_v47  ;;  %v340_v60 = vld [vmem:[%s4608_s2 + $0x80] sm:$0xff]  ;;  %v3789_v46 = vor.u32 %v3115_v32, %v2924_v31  ;;  %v478_v32 = vld [vmem:[%s3506_s19 + $0x410] sm:$0xff] }
  0x79   : > { %789 = vperm.xlu2 %3226, %v335_v14   ;;  %4717 = vst [vmem:[#allocation16_spill] sm:$0xff] %v3744_v36  ;;  %v544_v1 = vld [vmem:[%s3506_s19 + $0x620] sm:$0xff]  ;;  %v338_v14 = vld [vmem:[%s4608_s2 + $0x70] sm:$0xff] }
  0x7a   : > { %4720 = vst [vmem:[#allocation19_spill] sm:$0xff] %v3757_v53  ;;  %v480_v3 = vld [vmem:[%s3506_s19 + $0x420] sm:$0xff]  ;;  %v702_v4 = vpack.c.bf16 %v546_v2, %v544_v1 }
  0x7b   : > { %4721 = vst [vmem:[#allocation20_spill] sm:$0xff] %v3759_v56  ;;  %v576_v6 = vld [vmem:[%s3506_s19 + $0x720] sm:$0xff]  ;;  %v670_v8 = vpack.c.bf16 %v482_v5, %v480_v3 }
  0x7c   : > { %v718_v13 = vpack.c.bf16 %v578_v7, %v576_v6  ;;  %1752 = vmatpush.bf16.msrb.mxu2 %v702_v4  ;;  %v512_v15 = vld [vmem:[%s3506_s19 + $0x520] sm:$0xff]  ;;  %4727 = vst [vmem:[#allocation26_spill] sm:$0xff] %v3789_v46 }
  0x7d   : > { %814 = vperm.xlu1 %3225, %v340_v60   ;;  %1614 = vmatpush.bf16.msrb.mxu0 %v670_v8  ;;  %v686_v21 = vpack.c.bf16 %v514_v16, %v512_v15  ;;  %v2916_v23 = vld [vmem:[#allocation5 + $0x200] sm:$0xf]  ;;  %v3110_v25 = vld [vmem:[#allocation5 + $0x204] sm:$0xf]  ;;  %v343_v60 = vld [vmem:[%s4608_s2 + $0x98] sm:$0xff] }
  0x7e   : > { %1821 = vmatpush.bf16.msrb.mxu3 %v718_v13  ;;  %v3114_v24 = vld [vmem:[#allocation5 + $0x21c] sm:$0xf0]  ;;  %v2918_v26 = vld [vmem:[#allocation5 + $0x220] sm:$0xf0] }
  0x7f   : > { %1683 = vmatpush.bf16.msrb.mxu1 %v686_v21  ;;  %v3785_v39 = vor.u32 %v3114_v24, %v2916_v23  ;;  %v3787_v41 = vor.u32 %v3110_v25, %v2918_v26  ;;  %v2948_v13 = vld [vmem:[#allocation5 + $0x240] sm:$0xf]  ;;  %v3118_v16 = vld [vmem:[#allocation5 + $0x244] sm:$0xf]  ;;  %v542_v24 = vld [vmem:[%s3506_s19 + $0x610] sm:$0xff] }
  0x80   : > { %1355 = vmatmul.bf16.gmra.mxu0 %v3672_v9  ;;  %824 = vperm.xlu0 %3224, %v342_v51   ;;  %v2950_v21 = vld [vmem:[#allocation5 + $0x260] sm:$0xf0] }
  0x81   : > { %1424 = vmatmul.bf16.gmra.mxu1 %v3674_v10  ;;  %804 = vperm.xlu2 %3226, %v338_v14   ;;  %4725 = vst [vmem:[#allocation24_spill] sm:$0xff] %v3785_v39  ;;  %v3122_v14 = vld [vmem:[#allocation5 + $0x25c] sm:$0xf0] }
  0x82   : > { %1493 = vmatmul.bf16.gmra.mxu2 %v3676_v11  ;;  %1562 = vmatmul.bf16.gmra.mxu3 %v3678_v12  ;;  %4726 = vst [vmem:[#allocation25_spill] sm:$0xff] %v3787_v41  ;;  %v540_v23 = vld [vmem:[%s3506_s19 + $0x600] sm:$0xff] }
  0x83   : > { %v476_v25 = vld [vmem:[%s3506_s19 + $0x400] sm:$0xff]  ;;  %v700_v31 = vpack.c.bf16 %v542_v24, %v540_v23  ;;  %v3822_v23 = vor.u32 %v3118_v16, %v2950_v21 }
  0x84   : > { %v572_v33 = vld [vmem:[%s3506_s19 + $0x700] sm:$0xff] }
  0x85   : > { %829 = vperm.xlu1 %3225, %v343_v60   ;;  %v716_v51 = vpack.c.bf16 %v574_v34, %v572_v33  ;;  %v3119_v60 = vld [vmem:[#allocation5 + $0x24c] sm:$0xf]  ;;  %1753 = vmatpush.bf16.msrb.mxu2 %v700_v31  ;;  %4732 = vst [vmem:[#allocation31_spill] sm:$0xff] %v3822_v23  ;;  %v508_v34 = vld [vmem:[%s3506_s19 + $0x500] sm:$0xff] }
  0x87   : > { %1822 = vmatpush.bf16.msrb.mxu3 %v716_v51 }
  0x90   : > { %1360 = vmatmul.bf16.gmra.mxu0 %v3690_v27 }
  0x91   : > { %1429 = vmatmul.bf16.gmra.mxu1 %v3692_v28 }
  0x92   : > { %1498 = vmatmul.bf16.gmra.mxu2 %v3694_v29  ;;  %1567 = vmatmul.bf16.gmra.mxu3 %v3696_v30 }
  0xa0   : > { %1365 = vmatmul.bf16.gmra.mxu0 %v3716_v61  ;;  %v391_v61 = vld [vmem:[%s3506_s19 + $0x158] sm:$0xff] }
  0xa1   : > { %1434 = vmatmul.bf16.gmra.mxu1 %v3718_v62 }
  0xa2   : > { %1503 = vmatmul.bf16.gmra.mxu2 %v3720_v63  ;;  %1572 = vmatmul.bf16.gmra.mxu3 %v3722_v0 }
  0xb0   : > { %1370 = vmatmul.bf16.gmra.mxu0 %v3742_v35 }
  0xb1   : > { %1439 = vmatmul.bf16.gmra.mxu1 %v3744_v36  ;;  %v3088_v36 = vld [vmem:[#allocation5 + $0x154] sm:$0xf] }
  0xb2   : > { %1508 = vmatmul.bf16.gmra.mxu2 %v3746_v37  ;;  %1577 = vmatmul.bf16.gmra.mxu3 %v3748_v38  ;;  %v399_v37 = vld [vmem:[%s3506_s19 + $0x198] sm:$0xff] }
  0xc0   : > { %1375 = vmatmul.bf16.gmra.mxu0 %v3757_v53 }
  0xc1   : > { %1444 = vmatmul.bf16.gmra.mxu1 %v3759_v56 }
  0xc2   : > { %1513 = vmatmul.bf16.gmra.mxu2 %v3761_v57  ;;  %1582 = vmatmul.bf16.gmra.mxu3 %v3763_v58  ;;  %v3783_v22 = vpop.permute.xlu0 %734  ;;  %v3064_v58 = vld [vmem:[#allocation5 + $0x94] sm:$0xf] }
  0xc3   : > { %4724 = vst [vmem:[#allocation23_spill] sm:$0xff] %v3783_v22 }
  0xc7   : > { %v3812_v26 = vpop.permute.xlu1 %744 }
  0xc8   : > { %4730 = vst [vmem:[#allocation29_spill] sm:$0xff] %v3812_v26 }
  0xca   : > { %v3804_v1 = vpop.permute.xlu0 %739 }
  0xcb   : > { %4729 = vst [vmem:[#allocation28_spill] sm:$0xff] %v3804_v1 }
  0xcd   : > { %v1341_v40 = vpop.f32.mrf.mxu0 }
  0xce   : > { %v1342_v47 = vadd.f32 %v1341_v40, %v3783_v22  ;;  %v1410_v48 = vpop.f32.mrf.mxu1  ;;  %v2956_v40 = vld [vmem:[#allocation5 + $0x248] sm:$0xf]  ;;  %v407_v22 = vld [vmem:[%s3506_s19 + $0x1d8] sm:$0xff] }
  0xcf   : > { %v3840_v16 = vpop.permute.xlu1 %749 }
  0xd0   : > { %v1411_v52 = vadd.f32 %v1410_v48, %v1342_v47  ;;  %1380 = vmatmul.bf16.gmra.mxu0 %v3785_v39  ;;  %v3123_v47 = vld [vmem:[#allocation5 + $0x264] sm:$0xf0]  ;;  %v668_v48 = vpack.c.bf16 %v478_v32, %v476_v25  ;;  %4735 = vst [vmem:[#allocation34_spill] sm:$0xff] %v3840_v16 }
  0xd1   : > { %1449 = vmatmul.bf16.gmra.mxu1 %v3787_v41  ;;  %v3824_v24 = vor.u32 %v3123_v47, %v2956_v40 }
  0xd2   : > { %1518 = vmatmul.bf16.gmra.mxu2 %v3789_v46  ;;  %1587 = vmatmul.bf16.gmra.mxu3 %v3792_v50 }
  0xd3   : > { %1615 = vmatpush.bf16.msrb.mxu0 %v668_v48  ;;  %4733 = vst [vmem:[#allocation32_spill] sm:$0xff] %v3824_v24 }
  0xd5   : > { %v1479_v2 = vpop.f32.mrf.mxu2  ;;  %v1548_v4 = vpop.f32.mrf.mxu3 }
  0xd6   : > { %v1480_v3 = vadd.f32 %v1479_v2, %v1411_v52  ;;  %v1343_v5 = vpop.f32.mrf.mxu0  ;;  %v1412_v7 = vpop.f32.mrf.mxu1  ;;  %v341_v52 = vld [vmem:[%s4608_s2 + $0x88] sm:$0xff] }
  0xd7   : > { %v1344_v6 = vadd.f32 %v1343_v5, %v3804_v1  ;;  %v2958_v2 = vld [vmem:[#allocation5 + $0x268] sm:$0xf0]  ;;  %819 = vperm.xlu2 %3226, %v341_v52   ;;  %v510_v52 = vld [vmem:[%s3506_s19 + $0x510] sm:$0xff] }
  0xd8   : > { %v3807_v8 = vadd.f32 %v1548_v4, %v1480_v3  ;;  %v3820_v4 = vor.u32 %v3122_v14, %v2948_v13  ;;  %v3827_v33 = vor.u32 %v3119_v60, %v2958_v2  ;;  %v684_v14 = vpack.c.bf16 %v510_v52, %v508_v34  ;;  %v2988_v34 = vld [vmem:[#allocation5 + $0x288] sm:$0xf] }
  0xd9   : > { %v1413_v15 = vadd.f32 %v1412_v7, %v1344_v6  ;;  %v3131_v52 = vld [vmem:[#allocation5 + $0x2a4] sm:$0xf0] }
  0xda   : > { %4731 = vst [vmem:[#allocation30_spill] sm:$0xff] %v3820_v4  ;;  %1684 = vmatpush.bf16.msrb.mxu1 %v684_v14  ;;  %v3127_v14 = vld [vmem:[#allocation5 + $0x28c] sm:$0xf] }
  0xdb   : > { %4734 = vst [vmem:[#allocation33_spill] sm:$0xff] %v3827_v33 }
  0xdd   : > { %v1481_v3 = vpop.f32.mrf.mxu2  ;;  %v1550_v6 = vpop.f32.mrf.mxu3 }
  0xde   : > { %v1482_v5 = vadd.f32 %v1481_v3, %v1413_v15  ;;  %v1346_v7 = vpop.f32.mrf.mxu0  ;;  %v1415_v32 = vpop.f32.mrf.mxu1  ;;  %v345_v15 = vld [vmem:[%s4608_s2 + $0xa8] sm:$0xff] }
  0xdf   : > { %v1347_v25 = vadd.f32 %v1346_v7, %v3812_v26  ;;  %839 = vperm.xlu0 %3224, %v345_v15   ;;  %v3130_v7 = vld [vmem:[#allocation5 + $0x29c] sm:$0xf0]  ;;  %v2990_v15 = vld [vmem:[#allocation5 + $0x2a8] sm:$0xf0] }
  0xe0   : > { %v3829_v31 = vadd.f32 %v1550_v6, %v1482_v5  ;;  %1385 = vmatmul.bf16.gmra.mxu0 %v3820_v4  ;;  %v3845_v5 = vpop.permute.xlu2 %754  ;;  %v2980_v6 = vld [vmem:[#allocation5 + $0x280] sm:$0xf] }
  0xe1   : > { %v1416_v13 = vadd.f32 %v1415_v32, %v1347_v25  ;;  %1454 = vmatmul.bf16.gmra.mxu1 %v3822_v23  ;;  %4736 = vst [vmem:[#allocation35_spill] sm:$0xff] %v3845_v5  ;;  %v3126_v25 = vld [vmem:[#allocation5 + $0x284] sm:$0xf] }
  0xe2   : > { %1523 = vmatmul.bf16.gmra.mxu2 %v3824_v24  ;;  %1592 = vmatmul.bf16.gmra.mxu3 %v3827_v33  ;;  %v2982_v32 = vld [vmem:[#allocation5 + $0x2a0] sm:$0xf0]  ;;  %v3854_v24 = vor.u32 %v3127_v14, %v2990_v15  ;;  %v379_v14 = vld [vmem:[%s3506_s19 + $0xf8] sm:$0xff]  ;;  %v473_v15 = vld [vmem:[%s3506_s19 + $0x3e8] sm:$0xff] }
  0xe4   : > { %4740 = vst [vmem:[#allocation39_spill] sm:$0xff] %v3854_v24 }
  0xe5   : > { %v1484_v21 = vpop.f32.mrf.mxu2  ;;  %v1553_v47 = vpop.f32.mrf.mxu3 }
  0xe6   : > { %v1485_v40 = vadd.f32 %v1484_v21, %v1416_v13  ;;  %v1348_v48 = vpop.f32.mrf.mxu0  ;;  %v1417_v60 = vpop.f32.mrf.mxu1  ;;  %v3847_v13 = vor.u32 %v3130_v7, %v2980_v6  ;;  %v441_v7 = vld [vmem:[%s3506_s19 + $0x2e8] sm:$0xff] }
  0xe7   : > { %v1349_v51 = vadd.f32 %v1348_v48, %v3840_v16 }
  0xe8   : > { %v3843_v2 = vadd.f32 %v1553_v47, %v1485_v40  ;;  %4737 = vst [vmem:[#allocation36_spill] sm:$0xff] %v3847_v13  ;;  %v3849_v47 = vor.u32 %v3126_v25, %v2982_v32  ;;  %v443_v25 = vld [vmem:[%s3506_s19 + $0x2f8] sm:$0xff]  ;;  %v377_v32 = vld [vmem:[%s3506_s19 + $0xe8] sm:$0xff] }
  0xe9   : > { %v1418_v3 = vadd.f32 %v1417_v60, %v1349_v51  ;;  %v3851_v51 = vor.u32 %v3131_v52, %v2988_v34  ;;  %v3868_v34 = vpop.permute.xlu2 %759  ;;  %v651_v52 = vpack.c.bf16 %v443_v25, %v441_v7  ;;  %v344_v7 = vld [vmem:[%s4608_s2 + $0xa0] sm:$0xff] }
  0xea   : > { %4738 = vst [vmem:[#allocation37_spill] sm:$0xff] %v3849_v47  ;;  %834 = vperm.xlu2 %3226, %v344_v7  }
  0xeb   : > { %4739 = vst [vmem:[#allocation38_spill] sm:$0xff] %v3851_v51  ;;  %2022 = vmatpush.bf16.msra.mxu2 %v651_v52  ;;  %v3014_v52 = vld [vmem:[#allocation5 + $0x2e0] sm:$0xf0] }
  0xec   : > { %4741 = vst [vmem:[#allocation40_spill] sm:$0xff] %v3868_v34 }
  0xed   : > { %v1486_v33 = vpop.f32.mrf.mxu2  ;;  %v1555_v48 = vpop.f32.mrf.mxu3 }
  0xee   : > { %v1487_v21 = vadd.f32 %v1486_v33, %v1418_v3  ;;  %v1351_v40 = vpop.f32.mrf.mxu0  ;;  %v1420_v16 = vpop.f32.mrf.mxu1  ;;  %v346_v33 = vld [vmem:[%s4608_s2 + $0xb0] sm:$0xff] }
  0xef   : > { %v1352_v60 = vadd.f32 %v1351_v40, %v3845_v5  ;;  %844 = vperm.xlu1 %3225, %v346_v33   ;;  %v411_v5 = vld [vmem:[%s3506_s19 + $0x1f8] sm:$0xff] }
  0xf0   : > { %v3859_v3 = vadd.f32 %v1555_v48, %v1487_v21  ;;  %1390 = vmatmul.bf16.gmra.mxu0 %v3847_v13  ;;  %v475_v21 = vld [vmem:[%s3506_s19 + $0x3f8] sm:$0xff]  ;;  %v619_v48 = vpack.c.bf16 %v379_v14, %v377_v32  ;;  %v409_v13 = vld [vmem:[%s3506_s19 + $0x1e8] sm:$0xff] }
  0xf1   : > { %v1421_v6 = vadd.f32 %v1420_v16, %v1352_v60  ;;  %1459 = vmatmul.bf16.gmra.mxu1 %v3849_v47  ;;  %v667_v40 = vpack.c.bf16 %v475_v21, %v473_v15  ;;  %v635_v14 = vpack.c.bf16 %v411_v5, %v409_v13  ;;  %v3138_v15 = vld [vmem:[#allocation5 + $0x2dc] sm:$0xf0]  ;;  %v3134_v21 = vld [vmem:[#allocation5 + $0x2c4] sm:$0xf] }
  0xf2   : > { %1528 = vmatmul.bf16.gmra.mxu2 %v3851_v51  ;;  %1597 = vmatmul.bf16.gmra.mxu3 %v3854_v24  ;;  %v3885_v7 = vor.u32 %v3134_v21, %v3014_v52 }
  0xf3   : > { %1884 = vmatpush.bf16.msra.mxu0 %v619_v48  ;;  %2091 = vmatpush.bf16.msra.mxu3 %v667_v40  ;;  %v3881_v48 = vpop.permute.xlu0 %764  ;;  %v3135_v40 = vld [vmem:[#allocation5 + $0x2cc] sm:$0xf] }
  0xf4   : > { %1953 = vmatpush.bf16.msra.mxu1 %v635_v14  ;;  %4742 = vst [vmem:[#allocation41_spill] sm:$0xff] %v3881_v48 }
  0xf5   : > { %v1489_v16 = vpop.f32.mrf.mxu2  ;;  %v1558_v33 = vpop.f32.mrf.mxu3  ;;  %4744 = vst [vmem:[#allocation43_spill] sm:$0xff] %v3885_v7 }
  0xf6   : > { %v1490_v60 = vadd.f32 %v1489_v16, %v1421_v6  ;;  %v1353_v47 = vpop.f32.mrf.mxu0  ;;  %v1422_v51 = vpop.f32.mrf.mxu1  ;;  %v3012_v6 = vld [vmem:[#allocation5 + $0x2c0] sm:$0xf]  ;;  %v3020_v16 = vld [vmem:[#allocation5 + $0x2c8] sm:$0xf] }
  0xf7   : > { %v1354_v24 = vadd.f32 %v1353_v47, %v3868_v34  ;;  %v3139_v47 = vld [vmem:[#allocation5 + $0x2e4] sm:$0xf0]  ;;  %v3022_v34 = vld [vmem:[#allocation5 + $0x2e8] sm:$0xf0]  ;;  %v3883_v4 = vor.u32 %v3138_v15, %v3012_v6 }
  0xf8   : > { %v3877_v25 = vadd.f32 %v1558_v33, %v1490_v60 }
  0xf9   : > { %v1423_v32 = vadd.f32 %v1422_v51, %v1354_v24  ;;  %4743 = vst [vmem:[#allocation42_spill] sm:$0xff] %v3883_v4  ;;  %v3887_v24 = vor.u32 %v3139_v47, %v3020_v16  ;;  %v3890_v51 = vor.u32 %v3135_v40, %v3022_v34  ;;  %v2676_v16 = vld [vmem:[#allocation5 + $0x10] sm:$0xf] }
  0xfa   : > { %v3052_v47 = vld [vmem:[#allocation5 + $0x2c] sm:$0xf0] }
  0xfb   : > { %4745 = vst [vmem:[#allocation44_spill] sm:$0xff] %v3887_v24 }
  0xfc   : > { %4746 = vst [vmem:[#allocation45_spill] sm:$0xff] %v3890_v51 }
  0xfd   : > { %v1491_v23 = vpop.f32.mrf.mxu2  ;;  %v1560_v33 = vpop.f32.mrf.mxu3 }
  0xfe   : > { %v1492_v60 = vadd.f32 %v1491_v23, %v1423_v32  ;;  %v1356_v26 = vpop.f32.mrf.mxu0  ;;  %v1425_v5 = vpop.f32.mrf.mxu1 }
  0xff   : > { %v1357_v13 = vadd.f32 %v1356_v26, %v3881_v48  ;;  %v3898_v23 = vpop.permute.xlu1 %769  ;;  %v3053_v48 = vld [vmem:[#allocation5 + $0x34] sm:$0xf0] }
 0x100   : > { %v3892_v14 = vadd.f32 %v1560_v33, %v1492_v60  ;;  %1395 = vmatmul.bf16.gmra.mxu0 %v3883_v4  ;;  %4747 = vst [vmem:[#allocation46_spill] sm:$0xff] %v3898_v23  ;;  %v3048_v60 = vld [vmem:[#allocation5 + $0x14] sm:$0xf]  ;;  %v2684_v4 = vld [vmem:[#allocation5 + $0x18] sm:$0xf] }
 0x101   : > { %v1426_v1 = vadd.f32 %v1425_v5, %v1357_v13  ;;  %1464 = vmatmul.bf16.gmra.mxu1 %v3885_v7  ;;  %v2678_v33 = vld [vmem:[#allocation5 + $0x30] sm:$0xf0]  ;;  %v437_v5 = vld [vmem:[%s3506_s19 + $0x2c8] sm:$0xff]  ;;  %v439_v13 = vld [vmem:[%s3506_s19 + $0x2d8] sm:$0xff] }
 0x102   : > { %1533 = vmatmul.bf16.gmra.mxu2 %v3887_v24  ;;  %1602 = vmatmul.bf16.gmra.mxu3 %v3890_v51  ;;  %v373_v51 = vld [vmem:[%s3506_s19 + $0xc8] sm:$0xff]  ;;  %v649_v24 = vpack.c.bf16 %v439_v13, %v437_v5  ;;  %v375_v7 = vld [vmem:[%s3506_s19 + $0xd8] sm:$0xff]  ;;  %v3914_v5 = vor.u32 %v3052_v47, %v2676_v16 }
 0x103   : > { %v617_v50 = vpack.c.bf16 %v375_v7, %v373_v51 }
 0x104   : > { %2023 = vmatpush.bf16.msra.mxu2 %v649_v24  ;;  %4749 = vst [vmem:[#allocation48_spill] sm:$0xff] %v3914_v5 }
 0x105   : > { %v1494_v32 = vpop.f32.mrf.mxu2  ;;  %v1563_v34 = vpop.f32.mrf.mxu3  ;;  %1885 = vmatpush.bf16.msra.mxu0 %v617_v50 }
 0x106   : > { %v1495_v26 = vadd.f32 %v1494_v32, %v1426_v1  ;;  %v1358_v6 = vpop.f32.mrf.mxu0  ;;  %v1427_v21 = vpop.f32.mrf.mxu1  ;;  %v469_v1 = vld [vmem:[%s3506_s19 + $0x3c8] sm:$0xff]  ;;  %v471_v32 = vld [vmem:[%s3506_s19 + $0x3d8] sm:$0xff] }
 0x107   : > { %v1359_v15 = vadd.f32 %v1358_v6, %v3898_v23  ;;  %v665_v46 = vpack.c.bf16 %v471_v32, %v469_v1  ;;  %v3049_v6 = vld [vmem:[#allocation5 + $0x1c] sm:$0xf]  ;;  %v3916_v1 = vor.u32 %v3048_v60, %v2678_v33  ;;  %v3918_v32 = vor.u32 %v3053_v48, %v2684_v4  ;;  %v3931_v4 = vpop.permute.xlu0 %779 }
 0x108   : > { %v3901_v52 = vadd.f32 %v1563_v34, %v1495_v26  ;;  %v347_v26 = vld [vmem:[%s4608_s2 + $0xb8] sm:$0xff]  ;;  %v3912_v34 = vpop.permute.xlu2 %774  ;;  %4753 = vst [vmem:[#allocation52_spill] sm:$0xff] %v3931_v4 }
 0x109   : > { %v1428_v40 = vadd.f32 %v1427_v21, %v1359_v15  ;;  %4748 = vst [vmem:[#allocation47_spill] sm:$0xff] %v3912_v34  ;;  %v2686_v15 = vld [vmem:[#allocation5 + $0x38] sm:$0xf0]  ;;  %849 = vperm.xlu2 %3226, %v347_v26   ;;  %2092 = vmatpush.bf16.msra.mxu3 %v665_v46  ;;  %v405_v26 = vld [vmem:[%s3506_s19 + $0x1c8] sm:$0xff] }
 0x10a   : > { %4750 = vst [vmem:[#allocation49_spill] sm:$0xff] %v3916_v1  ;;  %v3921_v39 = vor.u32 %v3049_v6, %v2686_v15  ;;  %v633_v46 = vpack.c.bf16 %v407_v22, %v405_v26  ;;  %v2708_v22 = vld [vmem:[#allocation5 + $0x50] sm:$0xf]  ;;  %v3056_v15 = vld [vmem:[#allocation5 + $0x54] sm:$0xf] }
 0x10b   : > { %4751 = vst [vmem:[#allocation50_spill] sm:$0xff] %v3918_v32  ;;  %v3057_v26 = vld [vmem:[#allocation5 + $0x5c] sm:$0xf] }
 0x10c   : > { %4752 = vst [vmem:[#allocation51_spill] sm:$0xff] %v3921_v39  ;;  %1954 = vmatpush.bf16.msra.mxu1 %v633_v46  ;;  %v2718_v46 = vld [vmem:[#allocation5 + $0x78] sm:$0xf0] }
 0x10d   : > { %v1496_v21 = vpop.f32.mrf.mxu2  ;;  %v1565_v7 = vpop.f32.mrf.mxu3 }
 0x10e   : > { %v1497_v13 = vadd.f32 %v1496_v21, %v1428_v40  ;;  %v1361_v51 = vpop.f32.mrf.mxu0  ;;  %v1430_v23 = vpop.f32.mrf.mxu1  ;;  %v2710_v21 = vld [vmem:[#allocation5 + $0x70] sm:$0xf0] }
 0x10f   : > { %v1362_v41 = vadd.f32 %v1361_v51, %v3912_v34  ;;  %v3936_v51 = vpop.permute.xlu1 %784  ;;  %v3068_v34 = vld [vmem:[#allocation5 + $0xac] sm:$0xf0] }
 0x110   : > { %v3923_v24 = vadd.f32 %v1565_v7, %v1497_v13  ;;  %1616 = vmatmul.bf16.vlgmr.msrb.gmra.mxu0 %v3914_v5  ;;  %v2716_v13 = vld [vmem:[#allocation5 + $0x58] sm:$0xf]  ;;  %4754 = vst [vmem:[#allocation53_spill] sm:$0xff] %v3936_v51  ;;  %v2740_v5 = vld [vmem:[#allocation5 + $0x90] sm:$0xf] }
 0x111   : > { %v1431_v50 = vadd.f32 %v1430_v23, %v1362_v41  ;;  %1685 = vmatmul.bf16.vlgmr.msrb.gmra.mxu1 %v3916_v1  ;;  %v3060_v23 = vld [vmem:[#allocation5 + $0x6c] sm:$0xf0]  ;;  %v3061_v7 = vld [vmem:[#allocation5 + $0x74] sm:$0xf0] }
 0x112   : > { %1754 = vmatmul.bf16.vlgmr.msrb.gmra.mxu2 %v3918_v32  ;;  %1823 = vmatmul.bf16.vlgmr.msrb.gmra.mxu3 %v3921_v39  ;;  %v3945_v32 = vor.u32 %v3057_v26, %v2718_v46  ;;  %v467_v26 = vld [vmem:[%s3506_s19 + $0x3b8] sm:$0xff] }
 0x114   : > { %4758 = vst [vmem:[#allocation57_spill] sm:$0xff] %v3945_v32 }
 0x115   : > { %v1499_v48 = vpop.f32.mrf.mxu2  ;;  %v1568_v47 = vpop.f32.mrf.mxu3 }
 0x116   : > { %v1500_v16 = vadd.f32 %v1499_v48, %v1431_v50  ;;  %v1363_v40 = vpop.f32.mrf.mxu0  ;;  %v1432_v33 = vpop.f32.mrf.mxu1  ;;  %v3938_v50 = vor.u32 %v3060_v23, %v2708_v22  ;;  %v435_v22 = vld [vmem:[%s3506_s19 + $0x2b8] sm:$0xff]  ;;  %v369_v23 = vld [vmem:[%s3506_s19 + $0xa8] sm:$0xff] }
 0x117   : > { %v1364_v60 = vadd.f32 %v1363_v40, %v3931_v4  ;;  %v3940_v40 = vor.u32 %v3056_v15, %v2710_v21  ;;  %v3956_v15 = vpop.permute.xlu2 %789 }
 0x118   : > { %v3934_v6 = vadd.f32 %v1568_v47, %v1500_v16  ;;  %4755 = vst [vmem:[#allocation54_spill] sm:$0xff] %v3938_v50 }
 0x119   : > { %v1433_v41 = vadd.f32 %v1432_v33, %v1364_v60  ;;  %4756 = vst [vmem:[#allocation55_spill] sm:$0xff] %v3940_v40  ;;  %v3942_v60 = vor.u32 %v3061_v7, %v2716_v13  ;;  %v371_v13 = vld [vmem:[%s3506_s19 + $0xb8] sm:$0xff]  ;;  %v465_v7 = vld [vmem:[%s3506_s19 + $0x3a8] sm:$0xff] }
 0x11a   : > { %4759 = vst [vmem:[#allocation58_spill] sm:$0xff] %v3956_v15 }
 0x11b   : > { %4757 = vst [vmem:[#allocation56_spill] sm:$0xff] %v3942_v60 }
 0x11d   : > { %v1501_v39 = vpop.f32.mrf.mxu2  ;;  %v1570_v16 = vpop.f32.mrf.mxu3 }
 0x11e   : > { %v1502_v48 = vadd.f32 %v1501_v39, %v1433_v41  ;;  %v1366_v47 = vpop.f32.mrf.mxu0  ;;  %v1435_v33 = vpop.f32.mrf.mxu1  ;;  %v433_v41 = vld [vmem:[%s3506_s19 + $0x2a8] sm:$0xff] }
 0x11f   : > { %v1367_v4 = vadd.f32 %v1366_v47, %v3936_v51  ;;  %v647_v21 = vpack.c.bf16 %v435_v22, %v433_v41  ;;  %v401_v41 = vld [vmem:[%s3506_s19 + $0x1a8] sm:$0xff]  ;;  %v403_v22 = vld [vmem:[%s3506_s19 + $0x1b8] sm:$0xff] }
 0x120   : > { %v3947_v1 = vadd.f32 %v1570_v16, %v1502_v48  ;;  %1621 = vmatmul.bf16.gmra.mxu0 %v3938_v50  ;;  %v615_v48 = vpack.c.bf16 %v371_v13, %v369_v23  ;;  %v631_v51 = vpack.c.bf16 %v403_v22, %v401_v41  ;;  %v2742_v23 = vld [vmem:[#allocation5 + $0xb0] sm:$0xf0]  ;;  %v2748_v13 = vld [vmem:[#allocation5 + $0x98] sm:$0xf] }
 0x121   : > { %v1436_v39 = vadd.f32 %v1435_v33, %v1367_v4  ;;  %1690 = vmatmul.bf16.gmra.mxu1 %v3940_v40  ;;  %v663_v4 = vpack.c.bf16 %v467_v26, %v465_v7  ;;  %2024 = vmatpush.bf16.msra.mxu2 %v647_v21  ;;  %v3966_v7 = vpop.permute.xlu0 %794  ;;  %v3065_v21 = vld [vmem:[#allocation5 + $0x9c] sm:$0xf] }
 0x122   : > { %1759 = vmatmul.bf16.gmra.mxu2 %v3942_v60  ;;  %1828 = vmatmul.bf16.gmra.mxu3 %v3945_v32  ;;  %4760 = vst [vmem:[#allocation59_spill] sm:$0xff] %v3966_v7  ;;  %v2750_v26 = vld [vmem:[#allocation5 + $0xb8] sm:$0xf0] }
 0x123   : > { %1886 = vmatpush.bf16.msra.mxu0 %v615_v48  ;;  %2093 = vmatpush.bf16.msra.mxu3 %v663_v4  ;;  %v3968_v48 = vor.u32 %v3068_v34, %v2740_v5  ;;  %v3975_v22 = vor.u32 %v3065_v21, %v2750_v26  ;;  %v2772_v26 = vld [vmem:[#allocation5 + $0xd0] sm:$0xf] }
 0x124   : > { %1955 = vmatpush.bf16.msra.mxu1 %v631_v51 }
 0x125   : > { %v1504_v46 = vpop.f32.mrf.mxu2  ;;  %v1573_v47 = vpop.f32.mrf.mxu3  ;;  %4761 = vst [vmem:[#allocation60_spill] sm:$0xff] %v3968_v48 }
 0x126   : > { %v1505_v16 = vadd.f32 %v1504_v46, %v1436_v39  ;;  %v1368_v33 = vpop.f32.mrf.mxu0  ;;  %v1437_v60 = vpop.f32.mrf.mxu1  ;;  %v3069_v39 = vld [vmem:[#allocation5 + $0xb4] sm:$0xf0]  ;;  %4764 = vst [vmem:[#allocation63_spill] sm:$0xff] %v3975_v22 }
 0x127   : > { %v1369_v32 = vadd.f32 %v1368_v33, %v3956_v15  ;;  %v3970_v33 = vor.u32 %v3064_v58, %v2742_v23  ;;  %v3983_v58 = vpop.permute.xlu1 %799 }
 0x128   : > { %v3962_v40 = vadd.f32 %v1573_v47, %v1505_v16  ;;  %4765 = vst [vmem:[#allocation64_spill] sm:$0xff] %v3983_v58 }
 0x129   : > { %v1438_v50 = vadd.f32 %v1437_v60, %v1369_v32  ;;  %4762 = vst [vmem:[#allocation61_spill] sm:$0xff] %v3970_v33  ;;  %v3972_v32 = vor.u32 %v3069_v39, %v2748_v13 }
 0x12b   : > { %4763 = vst [vmem:[#allocation62_spill] sm:$0xff] %v3972_v32 }
 0x12d   : > { %v1506_v46 = vpop.f32.mrf.mxu2  ;;  %v1575_v16 = vpop.f32.mrf.mxu3 }
 0x12e   : > { %v1507_v4 = vadd.f32 %v1506_v46, %v1438_v50  ;;  %v1371_v47 = vpop.f32.mrf.mxu0  ;;  %v1440_v60 = vpop.f32.mrf.mxu1  ;;  %v3076_v46 = vld [vmem:[#allocation5 + $0xec] sm:$0xf0] }
 0x12f   : > { %v1372_v41 = vadd.f32 %v1371_v47, %v3966_v7  ;;  %v429_v47 = vld [vmem:[%s3506_s19 + $0x288] sm:$0xff]  ;;  %v3077_v7 = vld [vmem:[#allocation5 + $0xf4] sm:$0xf0] }
 0x130   : > { %v3977_v51 = vadd.f32 %v1575_v16, %v1507_v4  ;;  %1626 = vmatmul.bf16.gmra.mxu0 %v3968_v48  ;;  %v3072_v16 = vld [vmem:[#allocation5 + $0xd4] sm:$0xf]  ;;  %v463_v48 = vld [vmem:[%s3506_s19 + $0x398] sm:$0xff] }
 0x131   : > { %v1441_v15 = vadd.f32 %v1440_v60, %v1372_v41  ;;  %1695 = vmatmul.bf16.gmra.mxu1 %v3970_v33  ;;  %v431_v60 = vld [vmem:[%s3506_s19 + $0x298] sm:$0xff]  ;;  %v365_v41 = vld [vmem:[%s3506_s19 + $0x88] sm:$0xff] }
 0x132   : > { %1764 = vmatmul.bf16.gmra.mxu2 %v3972_v32  ;;  %1833 = vmatmul.bf16.gmra.mxu3 %v3975_v22  ;;  %v645_v22 = vpack.c.bf16 %v431_v60, %v429_v47  ;;  %v367_v32 = vld [vmem:[%s3506_s19 + $0x98] sm:$0xff]  ;;  %v461_v33 = vld [vmem:[%s3506_s19 + $0x388] sm:$0xff] }
 0x133   : > { %v613_v57 = vpack.c.bf16 %v367_v32, %v365_v41  ;;  %v661_v56 = vpack.c.bf16 %v463_v48, %v461_v33 }
 0x134   : > { %2025 = vmatpush.bf16.msra.mxu2 %v645_v22  ;;  %v397_v22 = vld [vmem:[%s3506_s19 + $0x188] sm:$0xff] }
 0x135   : > { %v1509_v34 = vpop.f32.mrf.mxu2  ;;  %v1578_v50 = vpop.f32.mrf.mxu3  ;;  %1887 = vmatpush.bf16.msra.mxu0 %v613_v57  ;;  %2094 = vmatpush.bf16.msra.mxu3 %v661_v56  ;;  %v629_v56 = vpack.c.bf16 %v399_v37, %v397_v22  ;;  %v2804_v37 = vld [vmem:[#allocation5 + $0x110] sm:$0xf]  ;;  %v3081_v22 = vld [vmem:[#allocation5 + $0x11c] sm:$0xf] }
 0x136   : > { %v1510_v5 = vadd.f32 %v1509_v34, %v1441_v15  ;;  %v1373_v23 = vpop.f32.mrf.mxu0  ;;  %v1442_v39 = vpop.f32.mrf.mxu1  ;;  %v2774_v15 = vld [vmem:[#allocation5 + $0xf0] sm:$0xf0]  ;;  %v2780_v34 = vld [vmem:[#allocation5 + $0xd8] sm:$0xf] }
 0x137   : > { %v1374_v13 = vadd.f32 %v1373_v23, %v3983_v58  ;;  %v3994_v23 = vpop.permute.xlu2 %804  ;;  %v3998_v53 = vor.u32 %v3072_v16, %v2774_v15  ;;  %v4000_v38 = vor.u32 %v3077_v7, %v2780_v34  ;;  %1956 = vmatpush.bf16.msra.mxu1 %v629_v56  ;;  %v4013_v7 = vpop.permute.xlu0 %809  ;;  %v2814_v56 = vld [vmem:[#allocation5 + $0x138] sm:$0xf0] }
 0x138   : > { %v3986_v21 = vadd.f32 %v1578_v50, %v1510_v5  ;;  %4766 = vst [vmem:[#allocation65_spill] sm:$0xff] %v3994_v23  ;;  %v3073_v5 = vld [vmem:[#allocation5 + $0xdc] sm:$0xf] }
 0x139   : > { %v1443_v4 = vadd.f32 %v1442_v39, %v1374_v13  ;;  %v2782_v50 = vld [vmem:[#allocation5 + $0xf8] sm:$0xf0]  ;;  %v3996_v39 = vor.u32 %v3076_v46, %v2772_v26  ;;  %4768 = vst [vmem:[#allocation67_spill] sm:$0xff] %v3998_v53 }
 0x13a   : > { %4769 = vst [vmem:[#allocation68_spill] sm:$0xff] %v4000_v38  ;;  %v4003_v32 = vor.u32 %v3073_v5, %v2782_v50  ;;  %v3084_v50 = vld [vmem:[#allocation5 + $0x12c] sm:$0xf0] }
 0x13b   : > { %4767 = vst [vmem:[#allocation66_spill] sm:$0xff] %v3996_v39 }
 0x13c   : > { %4770 = vst [vmem:[#allocation69_spill] sm:$0xff] %v4003_v32 }
 0x13d   : > { %v1511_v13 = vpop.f32.mrf.mxu2  ;;  %v1580_v60 = vpop.f32.mrf.mxu3  ;;  %4771 = vst [vmem:[#allocation70_spill] sm:$0xff] %v4013_v7 }
 0x13e   : > { %v1512_v47 = vadd.f32 %v1511_v13, %v1443_v4  ;;  %v1376_v58 = vpop.f32.mrf.mxu0  ;;  %v1445_v48 = vpop.f32.mrf.mxu1  ;;  %v3080_v13 = vld [vmem:[#allocation5 + $0x114] sm:$0xf] }
 0x13f   : > { %v1377_v33 = vadd.f32 %v1376_v58, %v3994_v23  ;;  %v3092_v23 = vld [vmem:[#allocation5 + $0x16c] sm:$0xf0] }
 0x140   : > { %v4005_v41 = vadd.f32 %v1580_v60, %v1512_v47  ;;  %1631 = vmatmul.bf16.gmra.mxu0 %v3996_v39  ;;  %v2806_v47 = vld [vmem:[#allocation5 + $0x130] sm:$0xf0]  ;;  %v2812_v60 = vld [vmem:[#allocation5 + $0x118] sm:$0xf]  ;;  %v2836_v39 = vld [vmem:[#allocation5 + $0x150] sm:$0xf] }
 0x141   : > { %v1446_v57 = vadd.f32 %v1445_v48, %v1377_v33  ;;  %1700 = vmatmul.bf16.gmra.mxu1 %v3998_v53  ;;  %v3085_v48 = vld [vmem:[#allocation5 + $0x134] sm:$0xf0]  ;;  %v4018_v33 = vpop.permute.xlu1 %814 }
 0x142   : > { %1769 = vmatmul.bf16.gmra.mxu2 %v4000_v38  ;;  %1838 = vmatmul.bf16.gmra.mxu3 %v4003_v32  ;;  %4772 = vst [vmem:[#allocation71_spill] sm:$0xff] %v4018_v33  ;;  %v4027_v38 = vor.u32 %v3081_v22, %v2814_v56  ;;  %v459_v22 = vld [vmem:[%s3506_s19 + $0x378] sm:$0xff] }
 0x144   : > { %4776 = vst [vmem:[#allocation75_spill] sm:$0xff] %v4027_v38 }
 0x145   : > { %v1514_v58 = vpop.f32.mrf.mxu2  ;;  %v1583_v46 = vpop.f32.mrf.mxu3 }
 0x146   : > { %v1515_v26 = vadd.f32 %v1514_v58, %v1446_v57  ;;  %v1378_v4 = vpop.f32.mrf.mxu0  ;;  %v1447_v15 = vpop.f32.mrf.mxu1  ;;  %v4020_v57 = vor.u32 %v3084_v50, %v2804_v37  ;;  %v427_v37 = vld [vmem:[%s3506_s19 + $0x278] sm:$0xff]  ;;  %v361_v50 = vld [vmem:[%s3506_s19 + $0x68] sm:$0xff] }
 0x147   : > { %v1379_v16 = vadd.f32 %v1378_v4, %v4013_v7  ;;  %v4022_v4 = vor.u32 %v3080_v13, %v2806_v47  ;;  %v4038_v13 = vpop.permute.xlu2 %819 }
 0x148   : > { %v4016_v34 = vadd.f32 %v1583_v46, %v1515_v26  ;;  %4773 = vst [vmem:[#allocation72_spill] sm:$0xff] %v4020_v57 }
 0x149   : > { %v1448_v5 = vadd.f32 %v1447_v15, %v1379_v16  ;;  %4774 = vst [vmem:[#allocation73_spill] sm:$0xff] %v4022_v4  ;;  %v4024_v16 = vor.u32 %v3085_v48, %v2812_v60  ;;  %v363_v60 = vld [vmem:[%s3506_s19 + $0x78] sm:$0xff]  ;;  %v457_v48 = vld [vmem:[%s3506_s19 + $0x368] sm:$0xff] }
 0x14a   : > { %4777 = vst [vmem:[#allocation76_spill] sm:$0xff] %v4038_v13 }
 0x14b   : > { %4775 = vst [vmem:[#allocation74_spill] sm:$0xff] %v4024_v16 }
 0x14d   : > { %v1516_v32 = vpop.f32.mrf.mxu2  ;;  %v1585_v26 = vpop.f32.mrf.mxu3 }
 0x14e   : > { %v1517_v58 = vadd.f32 %v1516_v32, %v1448_v5  ;;  %v1381_v46 = vpop.f32.mrf.mxu0  ;;  %v1450_v15 = vpop.f32.mrf.mxu1  ;;  %v425_v5 = vld [vmem:[%s3506_s19 + $0x268] sm:$0xff] }
 0x14f   : > { %v1382_v7 = vadd.f32 %v1381_v46, %v4018_v33  ;;  %v643_v47 = vpack.c.bf16 %v427_v37, %v425_v5  ;;  %v393_v5 = vld [vmem:[%s3506_s19 + $0x168] sm:$0xff]  ;;  %v395_v37 = vld [vmem:[%s3506_s19 + $0x178] sm:$0xff] }
 0x150   : > { %v4029_v53 = vadd.f32 %v1585_v26, %v1517_v58  ;;  %1636 = vmatmul.bf16.gmra.mxu0 %v4020_v57  ;;  %v611_v58 = vpack.c.bf16 %v363_v60, %v361_v50  ;;  %v627_v33 = vpack.c.bf16 %v395_v37, %v393_v5  ;;  %v2838_v50 = vld [vmem:[#allocation5 + $0x170] sm:$0xf0]  ;;  %v2844_v60 = vld [vmem:[#allocation5 + $0x158] sm:$0xf] }
 0x151   : > { %v1451_v32 = vadd.f32 %v1450_v15, %v1382_v7  ;;  %1705 = vmatmul.bf16.gmra.mxu1 %v4022_v4  ;;  %v659_v7 = vpack.c.bf16 %v459_v22, %v457_v48  ;;  %2026 = vmatpush.bf16.msra.mxu2 %v643_v47  ;;  %v4048_v48 = vpop.permute.xlu0 %824  ;;  %v3089_v47 = vld [vmem:[#allocation5 + $0x15c] sm:$0xf] }
 0x152   : > { %1774 = vmatmul.bf16.gmra.mxu2 %v4024_v16  ;;  %1843 = vmatmul.bf16.gmra.mxu3 %v4027_v38  ;;  %4778 = vst [vmem:[#allocation77_spill] sm:$0xff] %v4048_v48  ;;  %v2846_v22 = vld [vmem:[#allocation5 + $0x178] sm:$0xf0] }
 0x153   : > { %1888 = vmatpush.bf16.msra.mxu0 %v611_v58  ;;  %2095 = vmatpush.bf16.msra.mxu3 %v659_v7  ;;  %v4050_v58 = vor.u32 %v3092_v23, %v2836_v39  ;;  %v4057_v37 = vor.u32 %v3089_v47, %v2846_v22  ;;  %v2868_v22 = vld [vmem:[#allocation5 + $0x190] sm:$0xf] }
 0x154   : > { %1957 = vmatpush.bf16.msra.mxu1 %v627_v33 }
 0x155   : > { %v1519_v56 = vpop.f32.mrf.mxu2  ;;  %v1588_v46 = vpop.f32.mrf.mxu3  ;;  %4779 = vst [vmem:[#allocation78_spill] sm:$0xff] %v4050_v58 }
 0x156   : > { %v1520_v26 = vadd.f32 %v1519_v56, %v1451_v32  ;;  %v1383_v15 = vpop.f32.mrf.mxu0  ;;  %v1452_v16 = vpop.f32.mrf.mxu1  ;;  %v3093_v32 = vld [vmem:[#allocation5 + $0x174] sm:$0xf0]  ;;  %4782 = vst [vmem:[#allocation81_spill] sm:$0xff] %v4057_v37 }
 0x157   : > { %v1384_v38 = vadd.f32 %v1383_v15, %v4038_v13  ;;  %v4052_v15 = vor.u32 %v3088_v36, %v2838_v50  ;;  %v4065_v36 = vpop.permute.xlu1 %829 }
 0x158   : > { %v4044_v4 = vadd.f32 %v1588_v46, %v1520_v26  ;;  %4783 = vst [vmem:[#allocation82_spill] sm:$0xff] %v4065_v36 }
 0x159   : > { %v1453_v57 = vadd.f32 %v1452_v16, %v1384_v38  ;;  %4780 = vst [vmem:[#allocation79_spill] sm:$0xff] %v4052_v15  ;;  %v4054_v38 = vor.u32 %v3093_v32, %v2844_v60 }
 0x15b   : > { %4781 = vst [vmem:[#allocation80_spill] sm:$0xff] %v4054_v38 }
 0x15d   : > { %v1521_v56 = vpop.f32.mrf.mxu2  ;;  %v1590_v26 = vpop.f32.mrf.mxu3 }
 0x15e   : > { %v1522_v7 = vadd.f32 %v1521_v56, %v1453_v57  ;;  %v1386_v46 = vpop.f32.mrf.mxu0  ;;  %v1455_v16 = vpop.f32.mrf.mxu1  ;;  %v3100_v56 = vld [vmem:[#allocation5 + $0x1ac] sm:$0xf0] }
 0x15f   : > { %v1387_v5 = vadd.f32 %v1386_v46, %v4048_v48  ;;  %v421_v46 = vld [vmem:[%s3506_s19 + $0x248] sm:$0xff]  ;;  %v3101_v48 = vld [vmem:[#allocation5 + $0x1b4] sm:$0xf0] }
 0x160   : > { %v4059_v33 = vadd.f32 %v1590_v26, %v1522_v7  ;;  %1641 = vmatmul.bf16.gmra.mxu0 %v4050_v58  ;;  %v3096_v26 = vld [vmem:[#allocation5 + $0x194] sm:$0xf]  ;;  %v455_v58 = vld [vmem:[%s3506_s19 + $0x358] sm:$0xff] }
 0x161   : > { %v1456_v13 = vadd.f32 %v1455_v16, %v1387_v5  ;;  %1710 = vmatmul.bf16.gmra.mxu1 %v4052_v15  ;;  %v423_v16 = vld [vmem:[%s3506_s19 + $0x258] sm:$0xff]  ;;  %v357_v5 = vld [vmem:[%s3506_s19 + $0x48] sm:$0xff] }
 0x162   : > { %1779 = vmatmul.bf16.gmra.mxu2 %v4054_v38  ;;  %1848 = vmatmul.bf16.gmra.mxu3 %v4057_v37  ;;  %v641_v37 = vpack.c.bf16 %v423_v16, %v421_v46  ;;  %v359_v38 = vld [vmem:[%s3506_s19 + $0x58] sm:$0xff]  ;;  %v453_v15 = vld [vmem:[%s3506_s19 + $0x348] sm:$0xff] }
 0x163   : > { %v609_v35 = vpack.c.bf16 %v359_v38, %v357_v5  ;;  %v657_v0 = vpack.c.bf16 %v455_v58, %v453_v15 }
 0x164   : > { %2027 = vmatpush.bf16.msra.mxu2 %v641_v37  ;;  %v389_v37 = vld [vmem:[%s3506_s19 + $0x148] sm:$0xff] }
 0x165   : > { %v1524_v23 = vpop.f32.mrf.mxu2  ;;  %v1593_v57 = vpop.f32.mrf.mxu3  ;;  %1889 = vmatpush.bf16.msra.mxu0 %v609_v35  ;;  %2096 = vmatpush.bf16.msra.mxu3 %v657_v0  ;;  %v625_v0 = vpack.c.bf16 %v391_v61, %v389_v37  ;;  %v2900_v61 = vld [vmem:[#allocation5 + $0x1d0] sm:$0xf]  ;;  %v3105_v37 = vld [vmem:[#allocation5 + $0x1dc] sm:$0xf] }
 0x166   : > { %v1525_v39 = vadd.f32 %v1524_v23, %v1456_v13  ;;  %v1388_v50 = vpop.f32.mrf.mxu0  ;;  %v1457_v32 = vpop.f32.mrf.mxu1  ;;  %v2870_v13 = vld [vmem:[#allocation5 + $0x1b0] sm:$0xf0]  ;;  %v2876_v23 = vld [vmem:[#allocation5 + $0x198] sm:$0xf] }
 0x167   : > { %v1389_v60 = vadd.f32 %v1388_v50, %v4065_v36  ;;  %v4076_v50 = vpop.permute.xlu2 %834  ;;  %v4080_v63 = vor.u32 %v3096_v26, %v2870_v13  ;;  %v4082_v62 = vor.u32 %v3101_v48, %v2876_v23  ;;  %1958 = vmatpush.bf16.msra.mxu1 %v625_v0  ;;  %v4095_v48 = vpop.permute.xlu0 %839  ;;  %v2910_v0 = vld [vmem:[#allocation5 + $0x1f8] sm:$0xf0] }
 0x168   : > { %v4068_v47 = vadd.f32 %v1593_v57, %v1525_v39  ;;  %4784 = vst [vmem:[#allocation83_spill] sm:$0xff] %v4076_v50  ;;  %v3097_v39 = vld [vmem:[#allocation5 + $0x19c] sm:$0xf] }
 0x169   : > { %v1458_v7 = vadd.f32 %v1457_v32, %v1389_v60  ;;  %v2878_v57 = vld [vmem:[#allocation5 + $0x1b8] sm:$0xf0]  ;;  %v4078_v32 = vor.u32 %v3100_v56, %v2868_v22  ;;  %4786 = vst [vmem:[#allocation85_spill] sm:$0xff] %v4080_v63 }
 0x16a   : > { %4787 = vst [vmem:[#allocation86_spill] sm:$0xff] %v4082_v62  ;;  %v4085_v38 = vor.u32 %v3097_v39, %v2878_v57  ;;  %v3108_v57 = vld [vmem:[#allocation5 + $0x1ec] sm:$0xf0] }
 0x16b   : > { %4785 = vst [vmem:[#allocation84_spill] sm:$0xff] %v4078_v32 }
 0x16c   : > { %4788 = vst [vmem:[#allocation87_spill] sm:$0xff] %v4085_v38 }
 0x16d   : > { %v1526_v60 = vpop.f32.mrf.mxu2  ;;  %v1595_v16 = vpop.f32.mrf.mxu3  ;;  %4789 = vst [vmem:[#allocation88_spill] sm:$0xff] %v4095_v48 }
 0x16e   : > { %v1527_v46 = vadd.f32 %v1526_v60, %v1458_v7  ;;  %v1391_v36 = vpop.f32.mrf.mxu0  ;;  %v1460_v58 = vpop.f32.mrf.mxu1  ;;  %v3104_v60 = vld [vmem:[#allocation5 + $0x1d4] sm:$0xf] }
 0x16f   : > { %v1392_v15 = vadd.f32 %v1391_v36, %v4076_v50  ;;  %v387_v50 = vld [vmem:[%s3506_s19 + $0x138] sm:$0xff] }
 0x170   : > { %v4087_v5 = vadd.f32 %v1595_v16, %v1527_v46  ;;  %1646 = vmatmul.bf16.gmra.mxu0 %v4078_v32  ;;  %v2902_v46 = vld [vmem:[#allocation5 + $0x1f0] sm:$0xf0]  ;;  %v2908_v16 = vld [vmem:[#allocation5 + $0x1d8] sm:$0xf]  ;;  %v385_v32 = vld [vmem:[%s3506_s19 + $0x128] sm:$0xff] }
 0x171   : > { %v1461_v35 = vadd.f32 %v1460_v58, %v1392_v15  ;;  %1715 = vmatmul.bf16.gmra.mxu1 %v4080_v63  ;;  %v3109_v58 = vld [vmem:[#allocation5 + $0x1f4] sm:$0xf0]  ;;  %v4100_v15 = vpop.permute.xlu1 %844 }
 0x172   : > { %1784 = vmatmul.bf16.gmra.mxu2 %v4082_v62  ;;  %1853 = vmatmul.bf16.gmra.mxu3 %v4085_v38  ;;  %4790 = vst [vmem:[#allocation89_spill] sm:$0xff] %v4100_v15  ;;  %v4109_v62 = vor.u32 %v3105_v37, %v2910_v0  ;;  %v451_v37 = vld [vmem:[%s3506_s19 + $0x338] sm:$0xff] }
 0x174   : > { %4794 = vst [vmem:[#allocation93_spill] sm:$0xff] %v4109_v62 }
 0x175   : > { %v1529_v36 = vpop.f32.mrf.mxu2  ;;  %v1598_v56 = vpop.f32.mrf.mxu3 }
 0x176   : > { %v1530_v22 = vadd.f32 %v1529_v36, %v1461_v35  ;;  %v1393_v7 = vpop.f32.mrf.mxu0  ;;  %v1462_v13 = vpop.f32.mrf.mxu1  ;;  %v4102_v35 = vor.u32 %v3108_v57, %v2900_v61  ;;  %v419_v61 = vld [vmem:[%s3506_s19 + $0x238] sm:$0xff]  ;;  %v353_v57 = vld [vmem:[%s3506_s19 + $0x28] sm:$0xff] }
 0x177   : > { %v1394_v26 = vadd.f32 %v1393_v7, %v4095_v48  ;;  %v4104_v7 = vor.u32 %v3104_v60, %v2902_v46  ;;  %v4120_v60 = vpop.permute.xlu2 %849 }
 0x178   : > { %v4098_v23 = vadd.f32 %v1598_v56, %v1530_v22  ;;  %4791 = vst [vmem:[#allocation90_spill] sm:$0xff] %v4102_v35 }
 0x179   : > { %v1463_v39 = vadd.f32 %v1462_v13, %v1394_v26  ;;  %4792 = vst [vmem:[#allocation91_spill] sm:$0xff] %v4104_v7  ;;  %v4106_v26 = vor.u32 %v3109_v58, %v2908_v16  ;;  %v355_v16 = vld [vmem:[%s3506_s19 + $0x38] sm:$0xff]  ;;  %v449_v58 = vld [vmem:[%s3506_s19 + $0x328] sm:$0xff] }
 0x17a   : > { %4796 = vst [vmem:[#allocation95_spill] sm:$0xff] %v4120_v60 }
 0x17b   : > { %4793 = vst [vmem:[#allocation92_spill] sm:$0xff] %v4106_v26 }
 0x17d   : > { %v1531_v38 = vpop.f32.mrf.mxu2  ;;  %v1600_v22 = vpop.f32.mrf.mxu3 }
 0x17e   : > { %v1532_v36 = vadd.f32 %v1531_v38, %v1463_v39  ;;  %v1396_v56 = vpop.f32.mrf.mxu0  ;;  %v1465_v13 = vpop.f32.mrf.mxu1  ;;  %v417_v39 = vld [vmem:[%s3506_s19 + $0x228] sm:$0xff] }
 0x17f   : > { %v1397_v48 = vadd.f32 %v1396_v56, %v4100_v15  ;;  %v639_v46 = vpack.c.bf16 %v419_v61, %v417_v39  ;;  %v2932_v61 = vld [vmem:[#allocation5 + $0x210] sm:$0xf]  ;;  %v3112_v15 = vld [vmem:[#allocation5 + $0x214] sm:$0xf] }
 0x180   : > { %v4111_v63 = vadd.f32 %v1600_v22, %v1532_v36  ;;  %1651 = vmatmul.bf16.gmra.mxu0 %v4102_v35  ;;  %v607_v36 = vpack.c.bf16 %v355_v16, %v353_v57  ;;  %v3116_v35 = vld [vmem:[#allocation5 + $0x22c] sm:$0xf0]  ;;  %v2934_v57 = vld [vmem:[#allocation5 + $0x230] sm:$0xf0]  ;;  %v2940_v16 = vld [vmem:[#allocation5 + $0x218] sm:$0xf] }
 0x181   : > { %v1466_v38 = vadd.f32 %v1465_v13, %v1397_v48  ;;  %1720 = vmatmul.bf16.gmra.mxu1 %v4104_v7  ;;  %v655_v48 = vpack.c.bf16 %v451_v37, %v449_v58  ;;  %2028 = vmatpush.bf16.msra.mxu2 %v639_v46  ;;  %v3117_v58 = vld [vmem:[#allocation5 + $0x234] sm:$0xf0]  ;;  %v3113_v37 = vld [vmem:[#allocation5 + $0x21c] sm:$0xf] }
 0x182   : > { %4795 = vst [vmem:[#allocation94_spill] sm:$0xff] %v4111_v63  ;;  %1789 = vmatmul.bf16.gmra.mxu2 %v4106_v26  ;;  %1858 = vmatmul.bf16.gmra.mxu3 %v4109_v62  ;;  %v4130_v63 = vor.u32 %v3116_v35, %v2932_v61 }
 0x183   : > { %1890 = vmatpush.bf16.msra.mxu0 %v607_v36  ;;  %2097 = vmatpush.bf16.msra.mxu3 %v655_v48 }
 0x184   : > { %4798 = vst [vmem:[#allocation97_spill] sm:$0xff] %v4130_v63 }
 0x185   : > { %v1534_v0 = vpop.f32.mrf.mxu2  ;;  %v1603_v56 = vpop.f32.mrf.mxu3 }
 0x186   : > { %v1535_v22 = vadd.f32 %v1534_v0, %v1466_v38  ;;  %v1398_v13 = vpop.f32.mrf.mxu0  ;;  %v1467_v26 = vpop.f32.mrf.mxu1  ;;  %v623_v38 = vpack.c.bf16 %v387_v50, %v385_v32  ;;  %v2942_v0 = vld [vmem:[#allocation5 + $0x238] sm:$0xf0] }
 0x187   : > { %v1399_v62 = vadd.f32 %v1398_v13, %v4120_v60  ;;  %v4137_v60 = vor.u32 %v3113_v37, %v2942_v0  ;;  %v3120_v37 = vld [vmem:[#allocation5 + $0x254] sm:$0xf] }
 0x188   : > { %v4126_v7 = vadd.f32 %v1603_v56, %v1535_v22  ;;  %1959 = vmatpush.bf16.msra.mxu1 %v623_v38  ;;  %v4132_v56 = vor.u32 %v3112_v15, %v2934_v57  ;;  %v2966_v0 = vld [vmem:[#allocation5 + $0x270] sm:$0xf0] }
 0x189   : > { %v1468_v39 = vadd.f32 %v1467_v26, %v1399_v62  ;;  %v4134_v62 = vor.u32 %v3117_v58, %v2940_v16  ;;  %4801 = vst [vmem:[#allocation100_spill] sm:$0xff] %v4137_v60  ;;  %v2964_v16 = vld [vmem:[#allocation5 + $0x250] sm:$0xf] }
 0x18a   : > { %4797 = vst [vmem:[#allocation96_spill] sm:$0xff] %v4126_v7  ;;  %v3124_v58 = vld [vmem:[#allocation5 + $0x26c] sm:$0xf0] }
 0x18b   : > { %4799 = vst [vmem:[#allocation98_spill] sm:$0xff] %v4132_v56 }
 0x18c   : > { %4800 = vst [vmem:[#allocation99_spill] sm:$0xff] %v4134_v62 }
 0x18d   : > { %v1536_v46 = vpop.f32.mrf.mxu2  ;;  %v1605_v48 = vpop.f32.mrf.mxu3 }
 0x18e   : > { %v1537_v36 = vadd.f32 %v1536_v46, %v1468_v39  ;;  %v1617_v22 = vpop.f32.mrf.mxu0  ;;  %v1686_v13 = vpop.f32.mrf.mxu1  ;;  %v2972_v46 = vld [vmem:[#allocation5 + $0x258] sm:$0xf] }
 0x18f   : > { %v1618_v26 = vadd.f32 %v1617_v22, %v3807_v8  ;;  %v415_v22 = vld [vmem:[%s3506_s19 + $0x218] sm:$0xff] }
 0x190   : > { %v4139_v7 = vadd.f32 %v1605_v48, %v1537_v36  ;;  %1656 = vmatmul.bf16.gmra.mxu0 %v4130_v63  ;;  %v3125_v36 = vld [vmem:[#allocation5 + $0x274] sm:$0xf0]  ;;  %v413_v48 = vld [vmem:[%s3506_s19 + $0x208] sm:$0xff]  ;;  %v4156_v63 = vor.u32 %v3120_v37, %v2966_v0 }
 0x191   : > { %v1687_v50 = vadd.f32 %v1686_v13, %v1618_v26  ;;  %1725 = vmatmul.bf16.gmra.mxu1 %v4132_v56  ;;  %v349_v26 = vld [vmem:[%s3506_s19 + $0x8] sm:$0xff]  ;;  %v637_v13 = vpack.c.bf16 %v415_v22, %v413_v48 }
 0x192   : > { %4802 = vst [vmem:[#allocation101_spill] sm:$0xff] %v4139_v7  ;;  %1794 = vmatmul.bf16.gmra.mxu2 %v4134_v62  ;;  %1863 = vmatmul.bf16.gmra.mxu3 %v4137_v60  ;;  %v447_v60 = vld [vmem:[%s3506_s19 + $0x318] sm:$0xff]  ;;  %v4158_v7 = vor.u32 %v3125_v36, %v2972_v46 }
 0x193   : > { %v3121_v62 = vld [vmem:[#allocation5 + $0x25c] sm:$0xf]  ;;  %2029 = vmatpush.bf16.msra.mxu2 %v637_v13 }
 0x195   : > { %v1755_v32 = vpop.f32.mrf.mxu2  ;;  %v1824_v8 = vpop.f32.mrf.mxu3 }
 0x196   : > { %v1756_v15 = vadd.f32 %v1755_v32, %v1687_v50  ;;  %v1619_v35 = vpop.f32.mrf.mxu0  ;;  %v1688_v61 = vpop.f32.mrf.mxu1  ;;  %v351_v50 = vld [vmem:[%s3506_s19 + $0x18] sm:$0xff]  ;;  %v445_v32 = vld [vmem:[%s3506_s19 + $0x308] sm:$0xff] }
 0x197   : > { %v1620_v39 = vadd.f32 %v1619_v35, %v3829_v31  ;;  %v2974_v31 = vld [vmem:[#allocation5 + $0x278] sm:$0xf0]  ;;  %v605_v35 = vpack.c.bf16 %v351_v50, %v349_v26  ;;  %v653_v56 = vpack.c.bf16 %v447_v60, %v445_v32  ;;  %v2996_v50 = vld [vmem:[#allocation5 + $0x290] sm:$0xf] }
 0x198   : > { %v4146_v57 = vadd.f32 %v1824_v8, %v1756_v15  ;;  %v4154_v8 = vor.u32 %v3124_v58, %v2964_v16  ;;  %v4161_v26 = vor.u32 %v3121_v62, %v2974_v31  ;;  %v381_v58 = vld [vmem:[%s3506_s19 + $0x108] sm:$0xff]  ;;  %v3132_v32 = vld [vmem:[#allocation5 + $0x2ac] sm:$0xf0]  ;;  %v3128_v31 = vld [vmem:[#allocation5 + $0x294] sm:$0xf] }
 0x199   : > { %v1689_v38 = vadd.f32 %v1688_v61, %v1620_v39  ;;  %1891 = vmatpush.bf16.msra.mxu0 %v605_v35  ;;  %2098 = vmatpush.bf16.msra.mxu3 %v653_v56  ;;  %v2998_v35 = vld [vmem:[#allocation5 + $0x2b0] sm:$0xf0] }
 0x19a   : > { %4803 = vst [vmem:[#allocation102_spill] sm:$0xff] %v4146_v57 }
 0x19d   : > { %v1757_v15 = vpop.f32.mrf.mxu2  ;;  %v1826_v61 = vpop.f32.mrf.mxu3 }
 0x19e   : > { %v1758_v39 = vadd.f32 %v1757_v15, %v1689_v38  ;;  %v1622_v57 = vpop.f32.mrf.mxu0  ;;  %v1691_v22 = vpop.f32.mrf.mxu1  ;;  %v383_v38 = vld [vmem:[%s3506_s19 + $0x118] sm:$0xff] }
 0x19f   : > { %v1623_v48 = vadd.f32 %v1622_v57, %v3843_v2  ;;  %v621_v37 = vpack.c.bf16 %v383_v38, %v381_v58  ;;  %v3004_v15 = vld [vmem:[#allocation5 + $0x298] sm:$0xf]  ;;  %v4174_v58 = vor.u32 %v3132_v32, %v2996_v50  ;;  %v505_v32 = vld [vmem:[%s3506_s19 + $0x4e8] sm:$0xff] }
 0x1a0   : > { %v4163_v60 = vadd.f32 %v1826_v61, %v1758_v39  ;;  %1661 = vmatmul.bf16.gmra.mxu0 %v4154_v8  ;;  %v3133_v39 = vld [vmem:[#allocation5 + $0x2b4] sm:$0xf0]  ;;  %v3129_v61 = vld [vmem:[#allocation5 + $0x29c] sm:$0xf] }
 0x1a1   : > { %v1692_v16 = vadd.f32 %v1691_v22, %v1623_v48  ;;  %1730 = vmatmul.bf16.gmra.mxu1 %v4156_v63  ;;  %v3006_v48 = vld [vmem:[#allocation5 + $0x2b8] sm:$0xf0]  ;;  %4804 = vst [vmem:[#allocation103_spill] sm:$0xff] %v4174_v58 }
 0x1a2   : > { %1799 = vmatmul.bf16.gmra.mxu2 %v4158_v7  ;;  %1868 = vmatmul.bf16.gmra.mxu3 %v4161_v26  ;;  %v571_v50 = vld [vmem:[%s3506_s19 + $0x6f8] sm:$0xff] }
 0x1a3   : > { %1960 = vmatpush.bf16.msra.mxu1 %v621_v37  ;;  %v4176_v37 = vor.u32 %v3128_v31, %v2998_v35  ;;  %v507_v35 = vld [vmem:[%s3506_s19 + $0x4f8] sm:$0xff] }
 0x1a5   : > { %v1760_v56 = vpop.f32.mrf.mxu2  ;;  %v1829_v57 = vpop.f32.mrf.mxu3  ;;  %4805 = vst [vmem:[#allocation104_spill] sm:$0xff] %v4176_v37 }
 0x1a6   : > { %v1761_v2 = vadd.f32 %v1760_v56, %v1692_v16  ;;  %v1624_v62 = vpop.f32.mrf.mxu0  ;;  %v1693_v46 = vpop.f32.mrf.mxu1  ;;  %v4178_v56 = vor.u32 %v3133_v39, %v3004_v15  ;;  %v603_v15 = vld [vmem:[%s3506_s19 + $0x7f8] sm:$0xff] }
 0x1a7   : > { %v1625_v0 = vadd.f32 %v1624_v62, %v3859_v3  ;;  %v4181_v62 = vor.u32 %v3129_v61, %v3006_v48  ;;  %v683_v61 = vpack.c.bf16 %v507_v35, %v505_v32  ;;  %v3030_v32 = vld [vmem:[#allocation5 + $0x2f0] sm:$0xf0]  ;;  %v3036_v35 = vld [vmem:[#allocation5 + $0x2d8] sm:$0xf] }
 0x1a8   : > { %v4172_v36 = vadd.f32 %v1829_v57, %v1761_v2  ;;  %4806 = vst [vmem:[#allocation105_spill] sm:$0xff] %v4178_v56 }
 0x1a9   : > { %v1694_v13 = vadd.f32 %v1693_v46, %v1625_v0  ;;  %4807 = vst [vmem:[#allocation106_spill] sm:$0xff] %v4181_v62  ;;  %2160 = vmatpush.bf16.msrb.mxu0 %v683_v61 }
 0x1ad   : > { %v1762_v22 = vpop.f32.mrf.mxu2  ;;  %v1831_v3 = vpop.f32.mrf.mxu3 }
 0x1ae   : > { %v1763_v16 = vadd.f32 %v1762_v22, %v1694_v13  ;;  %v1627_v38 = vpop.f32.mrf.mxu0  ;;  %v1696_v57 = vpop.f32.mrf.mxu1  ;;  %v569_v13 = vld [vmem:[%s3506_s19 + $0x6e8] sm:$0xff] }
 0x1af   : > { %v1628_v2 = vadd.f32 %v1627_v38, %v3877_v25  ;;  %v715_v31 = vpack.c.bf16 %v571_v50, %v569_v13  ;;  %v601_v25 = vld [vmem:[%s3506_s19 + $0x7e8] sm:$0xff]  ;;  %v3028_v50 = vld [vmem:[#allocation5 + $0x2d0] sm:$0xf] }
 0x1b0   : > { %v4183_v0 = vadd.f32 %v1831_v3, %v1763_v16  ;;  %1666 = vmatmul.bf16.gmra.mxu0 %v4174_v58  ;;  %v731_v48 = vpack.c.bf16 %v603_v15, %v601_v25  ;;  %v3141_v25 = vld [vmem:[#allocation5 + $0x2f4] sm:$0xf0]  ;;  %v3137_v15 = vld [vmem:[#allocation5 + $0x2dc] sm:$0xf] }
 0x1b1   : > { %v1697_v46 = vadd.f32 %v1696_v57, %v1628_v2  ;;  %1735 = vmatmul.bf16.gmra.mxu1 %v4176_v37  ;;  %2298 = vmatpush.bf16.msrb.mxu2 %v715_v31  ;;  %v537_v37 = vld [vmem:[%s3506_s19 + $0x5e8] sm:$0xff] }
 0x1b2   : > { %4808 = vst [vmem:[#allocation107_spill] sm:$0xff] %v4183_v0  ;;  %1804 = vmatmul.bf16.gmra.mxu2 %v4178_v56  ;;  %1873 = vmatmul.bf16.gmra.mxu3 %v4181_v62  ;;  %v3140_v62 = vld [vmem:[#allocation5 + $0x2ec] sm:$0xf0]  ;;  %v3136_v56 = vld [vmem:[#allocation5 + $0x2d4] sm:$0xf]  ;;  %v539_v0 = vld [vmem:[%s3506_s19 + $0x5f8] sm:$0xff] }
 0x1b3   : > { %2367 = vmatpush.bf16.msrb.mxu3 %v731_v48  ;;  %v4200_v58 = vor.u32 %v3140_v62, %v3028_v50 }
 0x1b5   : > { %v1765_v39 = vpop.f32.mrf.mxu2  ;;  %v1834_v16 = vpop.f32.mrf.mxu3 }
 0x1b6   : > { %v1766_v22 = vadd.f32 %v1765_v39, %v1697_v46  ;;  %v1629_v3 = vpop.f32.mrf.mxu0  ;;  %v1698_v2 = vpop.f32.mrf.mxu1  ;;  %v699_v46 = vpack.c.bf16 %v539_v0, %v537_v37  ;;  %v3038_v39 = vld [vmem:[#allocation5 + $0x2f8] sm:$0xf0] }
 0x1b7   : > { %v1630_v38 = vadd.f32 %v1629_v3, %v3892_v14 }
 0x1b8   : > { %v4196_v57 = vadd.f32 %v1834_v16, %v1766_v22  ;;  %2229 = vmatpush.bf16.msrb.mxu1 %v699_v46  ;;  %v4202_v22 = vor.u32 %v3136_v56, %v3030_v32  ;;  %v4204_v16 = vor.u32 %v3141_v25, %v3036_v35  ;;  %v565_v46 = vld [vmem:[%s3506_s19 + $0x6c8] sm:$0xff] }
 0x1b9   : > { %v1699_v13 = vadd.f32 %v1698_v2, %v1630_v38  ;;  %v4207_v2 = vor.u32 %v3137_v15, %v3038_v39  ;;  %v567_v15 = vld [vmem:[%s3506_s19 + $0x6d8] sm:$0xff]  ;;  %v501_v39 = vld [vmem:[%s3506_s19 + $0x4c8] sm:$0xff] }
 0x1bb   : > { %4809 = vst [vmem:[#allocation108_spill] sm:$0xff] %v4207_v2 }
 0x1bd   : > { %v1767_v31 = vpop.f32.mrf.mxu2  ;;  %v1836_v61 = vpop.f32.mrf.mxu3 }
 0x1be   : > { %v1768_v14 = vadd.f32 %v1767_v31, %v1699_v13  ;;  %v1632_v48 = vpop.f32.mrf.mxu0  ;;  %v1701_v38 = vpop.f32.mrf.mxu1  ;;  %v713_v31 = vpack.c.bf16 %v567_v15, %v565_v46  ;;  %v535_v46 = vld [vmem:[%s3506_s19 + $0x5d8] sm:$0xff] }
 0x1bf   : > { %v1633_v3 = vadd.f32 %v1632_v48, %v3901_v52  ;;  %v599_v48 = vld [vmem:[%s3506_s19 + $0x7d8] sm:$0xff] }
 0x1c0   : > { %v4209_v37 = vadd.f32 %v1836_v61, %v1768_v14  ;;  %1671 = vmatmul.bf16.gmra.mxu0 %v4200_v58  ;;  %v503_v14 = vld [vmem:[%s3506_s19 + $0x4d8] sm:$0xff]  ;;  %v597_v61 = vld [vmem:[%s3506_s19 + $0x7c8] sm:$0xff]  ;;  %2299 = vmatpush.bf16.msrb.mxu2 %v713_v31 }
 0x1c1   : > { %v1702_v62 = vadd.f32 %v1701_v38, %v1633_v3  ;;  %1740 = vmatmul.bf16.gmra.mxu1 %v4202_v22  ;;  %v681_v3 = vpack.c.bf16 %v503_v14, %v501_v39  ;;  %v729_v38 = vpack.c.bf16 %v599_v48, %v597_v61 }
 0x1c2   : > { %1809 = vmatmul.bf16.gmra.mxu2 %v4204_v16  ;;  %1878 = vmatmul.bf16.gmra.mxu3 %v4207_v2 }
 0x1c3   : > { %2161 = vmatpush.bf16.msrb.mxu0 %v681_v3  ;;  %2368 = vmatpush.bf16.msrb.mxu3 %v729_v38 }
 0x1c5   : > { %v1770_v52 = vpop.f32.mrf.mxu2  ;;  %v1839_v0 = vpop.f32.mrf.mxu3 }
 0x1c6   : > { %v1771_v56 = vadd.f32 %v1770_v52, %v1702_v62  ;;  %v1634_v13 = vpop.f32.mrf.mxu0  ;;  %v1703_v32 = vpop.f32.mrf.mxu1 }
 0x1c7   : > { %v1635_v50 = vadd.f32 %v1634_v13, %v3923_v24 }
 0x1c8   : > { %v4216_v35 = vadd.f32 %v1839_v0, %v1771_v56 }
 0x1c9   : > { %v1704_v25 = vadd.f32 %v1703_v32, %v1635_v50  ;;  %v533_v32 = vld [vmem:[%s3506_s19 + $0x5c8] sm:$0xff] }
 0x1cd   : > { %v1772_v62 = vpop.f32.mrf.mxu2  ;;  %v1841_v2 = vpop.f32.mrf.mxu3 }
 0x1ce   : > { %v1773_v52 = vadd.f32 %v1772_v62, %v1704_v25  ;;  %v1637_v24 = vpop.f32.mrf.mxu0  ;;  %v1706_v0 = vpop.f32.mrf.mxu1  ;;  %v697_v25 = vpack.c.bf16 %v535_v46, %v533_v32  ;;  %v593_v32 = vld [vmem:[%s3506_s19 + $0x7a8] sm:$0xff] }
 0x1cf   : > { %v1638_v56 = vadd.f32 %v1637_v24, %v3934_v6  ;;  %v563_v24 = vld [vmem:[%s3506_s19 + $0x6b8] sm:$0xff] }
 0x1d0   : > { %v4225_v13 = vadd.f32 %v1841_v2, %v1773_v52  ;;  %1892 = vmatmul.bf16.vlgmr.msra.gmra.mxu0 %v3589_v49  ;;  %2230 = vmatpush.bf16.msrb.mxu1 %v697_v25  ;;  %v561_v52 = vld [vmem:[%s3506_s19 + $0x6a8] sm:$0xff] }
 0x1d1   : > { %v1707_v50 = vadd.f32 %v1706_v0, %v1638_v56  ;;  %1961 = vmatmul.bf16.vlgmr.msra.gmra.mxu1 %v3594_v54  ;;  %v497_v56 = vld [vmem:[%s3506_s19 + $0x4a8] sm:$0xff]  ;;  %v711_v0 = vpack.c.bf16 %v563_v24, %v561_v52 }
 0x1d2   : > { %2030 = vmatmul.bf16.vlgmr.msra.gmra.mxu2 %v3596_v55  ;;  %2099 = vmatmul.bf16.vlgmr.msra.gmra.mxu3 %v3601_v59 }
 0x1d3   : > { %2300 = vmatpush.bf16.msrb.mxu2 %v711_v0 }
 0x1d5   : > { %v1775_v15 = vpop.f32.mrf.mxu2  ;;  %v1844_v31 = vpop.f32.mrf.mxu3 }
 0x1d6   : > { %v1776_v39 = vadd.f32 %v1775_v15, %v1707_v50  ;;  %v1639_v6 = vpop.f32.mrf.mxu0  ;;  %v1708_v14 = vpop.f32.mrf.mxu1  ;;  %v499_v50 = vld [vmem:[%s3506_s19 + $0x4b8] sm:$0xff] }
 0x1d7   : > { %v1640_v2 = vadd.f32 %v1639_v6, %v3947_v1  ;;  %v679_v25 = vpack.c.bf16 %v499_v50, %v497_v56 }
 0x1d8   : > { %v4234_v49 = vadd.f32 %v1844_v31, %v1776_v39 }
 0x1d9   : > { %v1709_v54 = vadd.f32 %v1708_v14, %v1640_v2  ;;  %2162 = vmatpush.bf16.msrb.mxu0 %v679_v25  ;;  %v529_v2 = vld [vmem:[%s3506_s19 + $0x5a8] sm:$0xff]  ;;  %v531_v14 = vld [vmem:[%s3506_s19 + $0x5b8] sm:$0xff] }
 0x1da   : > { %v493_v25 = vld [vmem:[%s3506_s19 + $0x488] sm:$0xff] }
 0x1dd   : > { %v1777_v55 = vpop.f32.mrf.mxu2  ;;  %v1846_v59 = vpop.f32.mrf.mxu3 }
 0x1de   : > { %v1778_v61 = vadd.f32 %v1777_v55, %v1709_v54  ;;  %v1642_v48 = vpop.f32.mrf.mxu0  ;;  %v1711_v38 = vpop.f32.mrf.mxu1  ;;  %v695_v54 = vpack.c.bf16 %v531_v14, %v529_v2 }
 0x1df   : > { %v1643_v3 = vadd.f32 %v1642_v48, %v3962_v40  ;;  %v595_v40 = vld [vmem:[%s3506_s19 + $0x7b8] sm:$0xff] }
 0x1e0   : > { %v4237_v62 = vadd.f32 %v1846_v59, %v1778_v61  ;;  %1897 = vmatmul.bf16.gmra.mxu0 %v3620_v17  ;;  %v727_v15 = vpack.c.bf16 %v595_v40, %v593_v32  ;;  %2231 = vmatpush.bf16.msrb.mxu1 %v695_v54 }
 0x1e1   : > { %v1712_v1 = vadd.f32 %v1711_v38, %v1643_v3  ;;  %1966 = vmatmul.bf16.gmra.mxu1 %v3622_v18 }
 0x1e2   : > { %2035 = vmatmul.bf16.gmra.mxu2 %v3624_v19  ;;  %2104 = vmatmul.bf16.gmra.mxu3 %v3626_v20 }
 0x1e3   : > { %2369 = vmatpush.bf16.msrb.mxu3 %v727_v15  ;;  %v495_v15 = vld [vmem:[%s3506_s19 + $0x498] sm:$0xff] }
 0x1e5   : > { %v1780_v46 = vpop.f32.mrf.mxu2  ;;  %v1849_v17 = vpop.f32.mrf.mxu3 }
 0x1e6   : > { %v1781_v39 = vadd.f32 %v1780_v46, %v1712_v1  ;;  %v1644_v31 = vpop.f32.mrf.mxu0  ;;  %v1713_v19 = vpop.f32.mrf.mxu1  ;;  %v559_v46 = vld [vmem:[%s3506_s19 + $0x698] sm:$0xff] }
 0x1e7   : > { %v1645_v18 = vadd.f32 %v1644_v31, %v3977_v51 }
 0x1e8   : > { %v4250_v20 = vadd.f32 %v1849_v17, %v1781_v39  ;;  %v589_v39 = vld [vmem:[%s3506_s19 + $0x788] sm:$0xff]  ;;  %v677_v17 = vpack.c.bf16 %v495_v15, %v493_v25 }
 0x1e9   : > { %v1714_v6 = vadd.f32 %v1713_v19, %v1645_v18  ;;  %v585_v15 = vld [vmem:[%s3506_s19 + $0x768] sm:$0xff] }
 0x1ea   : > { %2163 = vmatpush.bf16.msrb.mxu0 %v677_v17 }
 0x1ed   : > { %v1782_v55 = vpop.f32.mrf.mxu2  ;;  %v1851_v59 = vpop.f32.mrf.mxu3 }
 0x1ee   : > { %v1783_v61 = vadd.f32 %v1782_v55, %v1714_v6  ;;  %v1647_v48 = vpop.f32.mrf.mxu0  ;;  %v1716_v38 = vpop.f32.mrf.mxu1  ;;  %v525_v55 = vld [vmem:[%s3506_s19 + $0x588] sm:$0xff] }
 0x1ef   : > { %v1648_v3 = vadd.f32 %v1647_v48, %v3986_v21 }
 0x1f0   : > { %v4255_v51 = vadd.f32 %v1851_v59, %v1783_v61  ;;  %1902 = vmatmul.bf16.gmra.mxu0 %v3643_v42  ;;  %v557_v42 = vld [vmem:[%s3506_s19 + $0x688] sm:$0xff]  ;;  %v527_v61 = vld [vmem:[%s3506_s19 + $0x598] sm:$0xff] }
 0x1f1   : > { %v1717_v1 = vadd.f32 %v1716_v38, %v1648_v3  ;;  %1971 = vmatmul.bf16.gmra.mxu1 %v3645_v43  ;;  %v709_v43 = vpack.c.bf16 %v559_v46, %v557_v42  ;;  %v693_v59 = vpack.c.bf16 %v527_v61, %v525_v55  ;;  %v555_v42 = vld [vmem:[%s3506_s19 + $0x678] sm:$0xff]  ;;  %v489_v46 = vld [vmem:[%s3506_s19 + $0x468] sm:$0xff] }
 0x1f2   : > { %2040 = vmatmul.bf16.gmra.mxu2 %v3647_v44  ;;  %2109 = vmatmul.bf16.gmra.mxu3 %v3649_v45  ;;  %v591_v44 = vld [vmem:[%s3506_s19 + $0x798] sm:$0xff] }
 0x1f3   : > { %v725_v45 = vpack.c.bf16 %v591_v44, %v589_v39  ;;  %2301 = vmatpush.bf16.msrb.mxu2 %v709_v43  ;;  %2232 = vmatpush.bf16.msrb.mxu1 %v693_v59  ;;  %v491_v43 = vld [vmem:[%s3506_s19 + $0x478] sm:$0xff] }
 0x1f4   : > { %v675_v44 = vpack.c.bf16 %v491_v43, %v489_v46  ;;  %v581_v43 = vld [vmem:[%s3506_s19 + $0x748] sm:$0xff] }
 0x1f5   : > { %v1785_v52 = vpop.f32.mrf.mxu2  ;;  %v1854_v24 = vpop.f32.mrf.mxu3  ;;  %2370 = vmatpush.bf16.msrb.mxu3 %v725_v45 }
 0x1f6   : > { %v1786_v21 = vadd.f32 %v1785_v52, %v1717_v1  ;;  %v1649_v56 = vpop.f32.mrf.mxu0  ;;  %v1718_v50 = vpop.f32.mrf.mxu1  ;;  %2164 = vmatpush.bf16.msrb.mxu0 %v675_v44 }
 0x1f7   : > { %v1650_v0 = vadd.f32 %v1649_v56, %v4005_v41 }
 0x1f8   : > { %v4262_v32 = vadd.f32 %v1854_v24, %v1786_v21 }
 0x1f9   : > { %v1719_v40 = vadd.f32 %v1718_v50, %v1650_v0 }
 0x1fd   : > { %v1787_v31 = vpop.f32.mrf.mxu2  ;;  %v1856_v19 = vpop.f32.mrf.mxu3 }
 0x1fe   : > { %v1788_v18 = vadd.f32 %v1787_v31, %v1719_v40  ;;  %v1652_v41 = vpop.f32.mrf.mxu0  ;;  %v1721_v2 = vpop.f32.mrf.mxu1  ;;  %v553_v40 = vld [vmem:[%s3506_s19 + $0x668] sm:$0xff] }
 0x1ff   : > { %v1653_v6 = vadd.f32 %v1652_v41, %v4016_v34  ;;  %v707_v25 = vpack.c.bf16 %v555_v42, %v553_v40  ;;  %v523_v41 = vld [vmem:[%s3506_s19 + $0x578] sm:$0xff]  ;;  %v485_v42 = vld [vmem:[%s3506_s19 + $0x448] sm:$0xff] }
 0x200   : > { %v4271_v14 = vadd.f32 %v1856_v19, %v1788_v18  ;;  %1907 = vmatmul.bf16.gmra.mxu0 %v3672_v9  ;;  %v521_v19 = vld [vmem:[%s3506_s19 + $0x568] sm:$0xff]  ;;  %v551_v40 = vld [vmem:[%s3506_s19 + $0x658] sm:$0xff] }
 0x201   : > { %v1722_v54 = vadd.f32 %v1721_v2, %v1653_v6  ;;  %1976 = vmatmul.bf16.gmra.mxu1 %v3674_v10  ;;  %2302 = vmatpush.bf16.msrb.mxu2 %v707_v25  ;;  %v691_v6 = vpack.c.bf16 %v523_v41, %v521_v19  ;;  %v487_v25 = vld [vmem:[%s3506_s19 + $0x458] sm:$0xff]  ;;  %v4816_v19 = vld [vmem:[#allocation16_spill] sm:$0xff]  ;;  %v4817_v41 = vld [vmem:[#allocation17_spill] sm:$0xff] }
 0x202   : > { %2045 = vmatmul.bf16.gmra.mxu2 %v3676_v11  ;;  %2114 = vmatmul.bf16.gmra.mxu3 %v3678_v12 }
 0x203   : > { %2233 = vmatpush.bf16.msrb.mxu1 %v691_v6  ;;  %v517_v6 = vld [vmem:[%s3506_s19 + $0x548] sm:$0xff] }
 0x205   : > { %v1790_v48 = vpop.f32.mrf.mxu2  ;;  %v1859_v38 = vpop.f32.mrf.mxu3 }
 0x206   : > { %v1791_v3 = vadd.f32 %v1790_v48, %v1722_v54  ;;  %v1654_v34 = vpop.f32.mrf.mxu0  ;;  %v1723_v52 = vpop.f32.mrf.mxu1 }
 0x207   : > { %v1655_v1 = vadd.f32 %v1654_v34, %v4029_v53  ;;  %v4811_v34 = vld [vmem:[#allocation12_spill] sm:$0xff] }
 0x208   : > { %v4280_v9 = vadd.f32 %v1859_v38, %v1791_v3  ;;  %v4810_v38 = vld [vmem:[#allocation11_spill] sm:$0xff] }
 0x209   : > { %v1724_v10 = vadd.f32 %v1723_v52, %v1655_v1  ;;  %v4812_v1 = vld [vmem:[#allocation13_spill] sm:$0xff]  ;;  %v4813_v52 = vld [vmem:[#allocation14_spill] sm:$0xff] }
 0x20d   : > { %v1792_v11 = vpop.f32.mrf.mxu2  ;;  %v1861_v12 = vpop.f32.mrf.mxu3 }
 0x20e   : > { %v1793_v21 = vadd.f32 %v1792_v11, %v1724_v10  ;;  %v1657_v24 = vpop.f32.mrf.mxu0  ;;  %v1726_v0 = vpop.f32.mrf.mxu1 }
 0x20f   : > { %v1658_v56 = vadd.f32 %v1657_v24, %v4044_v4  ;;  %v587_v4 = vld [vmem:[%s3506_s19 + $0x778] sm:$0xff] }
 0x210   : > { %v4283_v50 = vadd.f32 %v1861_v12, %v1793_v21  ;;  %1912 = vmatmul.bf16.gmra.mxu0 %v3690_v27  ;;  %v723_v17 = vpack.c.bf16 %v587_v4, %v585_v15  ;;  %v583_v15 = vld [vmem:[%s3506_s19 + $0x758] sm:$0xff]  ;;  %v673_v4 = vpack.c.bf16 %v487_v25, %v485_v42  ;;  %v4823_v42 = vld [vmem:[#allocation19_spill] sm:$0xff]  ;;  %v4825_v25 = vld [vmem:[#allocation21_spill] sm:$0xff] }
 0x211   : > { %v1727_v53 = vadd.f32 %v1726_v0, %v1658_v56  ;;  %1981 = vmatmul.bf16.gmra.mxu1 %v3692_v28 }
 0x212   : > { %2050 = vmatmul.bf16.gmra.mxu2 %v3694_v29  ;;  %2119 = vmatmul.bf16.gmra.mxu3 %v3696_v30 }
 0x213   : > { %2371 = vmatpush.bf16.msrb.mxu3 %v723_v17  ;;  %2165 = vmatpush.bf16.msrb.mxu0 %v673_v4  ;;  %v547_v4 = vld [vmem:[%s3506_s19 + $0x638] sm:$0xff] }
 0x215   : > { %v1795_v39 = vpop.f32.mrf.mxu2  ;;  %v1864_v27 = vpop.f32.mrf.mxu3 }
 0x216   : > { %v1796_v45 = vadd.f32 %v1795_v39, %v1727_v53  ;;  %v1659_v31 = vpop.f32.mrf.mxu0  ;;  %v1728_v29 = vpop.f32.mrf.mxu1  ;;  %v549_v53 = vld [vmem:[%s3506_s19 + $0x648] sm:$0xff]  ;;  %v721_v39 = vpack.c.bf16 %v583_v15, %v581_v43  ;;  %v4826_v43 = vld [vmem:[#allocation22_spill] sm:$0xff] }
 0x217   : > { %v1660_v28 = vadd.f32 %v1659_v31, %v4059_v33  ;;  %v705_v46 = vpack.c.bf16 %v551_v40, %v549_v53  ;;  %v545_v15 = vld [vmem:[%s3506_s19 + $0x628] sm:$0xff] }
 0x218   : > { %v4296_v30 = vadd.f32 %v1864_v27, %v1796_v45  ;;  %2372 = vmatpush.bf16.msrb.mxu3 %v721_v39  ;;  %v481_v39 = vld [vmem:[%s3506_s19 + $0x428] sm:$0xff] }
 0x219   : > { %v1729_v18 = vadd.f32 %v1728_v29, %v1660_v28  ;;  %2303 = vmatpush.bf16.msrb.mxu2 %v705_v46  ;;  %v4824_v46 = vld [vmem:[#allocation20_spill] sm:$0xff] }
 0x21d   : > { %v1797_v2 = vpop.f32.mrf.mxu2  ;;  %v1866_v55 = vpop.f32.mrf.mxu3 }
 0x21e   : > { %v1798_v54 = vadd.f32 %v1797_v2, %v1729_v18  ;;  %v1662_v61 = vpop.f32.mrf.mxu0  ;;  %v1731_v48 = vpop.f32.mrf.mxu1  ;;  %v4815_v18 = vld [vmem:[#allocation15_spill] sm:$0xff]  ;;  %v519_v2 = vld [vmem:[%s3506_s19 + $0x558] sm:$0xff] }
 0x21f   : > { %v1663_v59 = vadd.f32 %v1662_v61, %v4068_v47 }
 0x220   : > { %v4301_v33 = vadd.f32 %v1866_v55, %v1798_v54  ;;  %1917 = vmatmul.bf16.gmra.mxu0 %v4810_v38  ;;  %v4818_v54 = vld [vmem:[#allocation18_spill] sm:$0xff]  ;;  %v689_v55 = vpack.c.bf16 %v519_v2, %v517_v6  ;;  %v4827_v6 = vld [vmem:[#allocation101_spill] sm:$0xff] }
 0x221   : > { %v1732_v3 = vadd.f32 %v1731_v48, %v1663_v59  ;;  %1986 = vmatmul.bf16.gmra.mxu1 %v4811_v34 }
 0x222   : > { %2055 = vmatmul.bf16.gmra.mxu2 %v4812_v1  ;;  %2124 = vmatmul.bf16.gmra.mxu3 %v4813_v52 }
 0x223   : > { %2234 = vmatpush.bf16.msrb.mxu1 %v689_v55 }
 0x225   : > { %v1800_v10 = vpop.f32.mrf.mxu2  ;;  %v1869_v11 = vpop.f32.mrf.mxu3 }
 0x226   : > { %v1801_v47 = vadd.f32 %v1800_v10, %v1732_v3  ;;  %v1664_v21 = vpop.f32.mrf.mxu0  ;;  %v1733_v24 = vpop.f32.mrf.mxu1  ;;  %v4819_v3 = vld [vmem:[#allocation94_spill] sm:$0xff] }
 0x227   : > { %v1665_v12 = vadd.f32 %v1664_v21, %v4087_v5 }
 0x228   : > { %v4308_v56 = vadd.f32 %v1869_v11, %v1801_v47 }
 0x229   : > { %v1734_v0 = vadd.f32 %v1733_v24, %v1665_v12  ;;  %v4821_v12 = vld [vmem:[#allocation96_spill] sm:$0xff] }
 0x22d   : > { %v1802_v44 = vpop.f32.mrf.mxu2  ;;  %v1871_v45 = vpop.f32.mrf.mxu3 }
 0x22e   : > { %v1803_v17 = vadd.f32 %v1802_v44, %v1734_v0  ;;  %v1667_v5 = vpop.f32.mrf.mxu0  ;;  %v1736_v31 = vpop.f32.mrf.mxu1  ;;  %v703_v44 = vpack.c.bf16 %v547_v4, %v545_v15  ;;  %v4835_v4 = vld [vmem:[#allocation28_spill] sm:$0xff] }
 0x22f   : > { %v1668_v27 = vadd.f32 %v1667_v5, %v4098_v23  ;;  %v579_v5 = vld [vmem:[%s3506_s19 + $0x738] sm:$0xff] }
 0x230   : > { %v4317_v28 = vadd.f32 %v1871_v45, %v1803_v17  ;;  %1922 = vmatmul.bf16.gmra.mxu0 %v4815_v18  ;;  %v483_v17 = vld [vmem:[%s3506_s19 + $0x438] sm:$0xff]  ;;  %v577_v45 = vld [vmem:[%s3506_s19 + $0x728] sm:$0xff]  ;;  %2304 = vmatpush.bf16.msrb.mxu2 %v703_v44 }
 0x231   : > { %v1737_v29 = vadd.f32 %v1736_v31, %v1668_v27  ;;  %1991 = vmatmul.bf16.gmra.mxu1 %v4816_v19  ;;  %v671_v31 = vpack.c.bf16 %v483_v17, %v481_v39 }
 0x232   : > { %4814 = vst [vmem:[#allocation11_spill] sm:$0xff] %v4317_v28  ;;  %2060 = vmatmul.bf16.gmra.mxu2 %v4817_v41  ;;  %2129 = vmatmul.bf16.gmra.mxu3 %v4818_v54  ;;  %v4897_v28 = vld [vmem:[#allocation90_spill] sm:$0xff] }
 0x233   : > { %2166 = vmatpush.bf16.msrb.mxu0 %v671_v31  ;;  %v477_v31 = vld [vmem:[%s3506_s19 + $0x408] sm:$0xff] }
 0x235   : > { %v1805_v61 = vpop.f32.mrf.mxu2  ;;  %v1874_v48 = vpop.f32.mrf.mxu3 }
 0x236   : > { %v1806_v59 = vadd.f32 %v1805_v61, %v1737_v29  ;;  %v1669_v23 = vpop.f32.mrf.mxu0  ;;  %v1738_v34 = vpop.f32.mrf.mxu1  ;;  %v719_v29 = vpack.c.bf16 %v579_v5, %v577_v45  ;;  %v513_v61 = vld [vmem:[%s3506_s19 + $0x528] sm:$0xff] }
 0x237   : > { %v1670_v38 = vadd.f32 %v1669_v23, %v4819_v3  ;;  %v541_v5 = vld [vmem:[%s3506_s19 + $0x608] sm:$0xff] }
 0x238   : > { %v4326_v1 = vadd.f32 %v1874_v48, %v1806_v59  ;;  %2373 = vmatpush.bf16.msrb.mxu3 %v719_v29  ;;  %v515_v59 = vld [vmem:[%s3506_s19 + $0x538] sm:$0xff] }
 0x239   : > { %v1739_v52 = vadd.f32 %v1738_v34, %v1670_v38  ;;  %v687_v23 = vpack.c.bf16 %v515_v59, %v513_v61 }
 0x23a   : > { %4820 = vst [vmem:[#allocation12_spill] sm:$0xff] %v4326_v1 }
 0x23b   : > { %2235 = vmatpush.bf16.msrb.mxu1 %v687_v23  ;;  %v4836_v23 = vld [vmem:[#allocation29_spill] sm:$0xff] }
 0x23d   : > { %v1807_v10 = vpop.f32.mrf.mxu2  ;;  %v1876_v11 = vpop.f32.mrf.mxu3 }
 0x23e   : > { %v1808_v47 = vadd.f32 %v1807_v10, %v1739_v52  ;;  %v1672_v21 = vpop.f32.mrf.mxu0  ;;  %v1741_v0 = vpop.f32.mrf.mxu1  ;;  %v4829_v10 = vld [vmem:[#allocation23_spill] sm:$0xff] }
 0x23f   : > { %v1673_v24 = vadd.f32 %v1672_v21, %v4821_v12 }
 0x240   : > { %v4329_v53 = vadd.f32 %v1876_v11, %v1808_v47  ;;  %1927 = vmatmul.bf16.gmra.mxu0 %v4823_v42  ;;  %v4834_v42 = vld [vmem:[#allocation27_spill] sm:$0xff] }
 0x241   : > { %v1742_v40 = vadd.f32 %v1741_v0, %v1673_v24  ;;  %1996 = vmatmul.bf16.gmra.mxu1 %v4824_v46  ;;  %v4831_v24 = vld [vmem:[#allocation24_spill] sm:$0xff]  ;;  %v4832_v0 = vld [vmem:[#allocation25_spill] sm:$0xff] }
 0x242   : > { %4822 = vst [vmem:[#allocation13_spill] sm:$0xff] %v4329_v53  ;;  %2065 = vmatmul.bf16.gmra.mxu2 %v4825_v25  ;;  %2134 = vmatmul.bf16.gmra.mxu3 %v4826_v43  ;;  %v4891_v53 = vld [vmem:[#allocation84_spill] sm:$0xff] }
 0x245   : > { %v1810_v27 = vpop.f32.mrf.mxu2  ;;  %v1879_v19 = vpop.f32.mrf.mxu3 }
 0x246   : > { %v1811_v18 = vadd.f32 %v1810_v27, %v1742_v40  ;;  %v1674_v41 = vpop.f32.mrf.mxu0  ;;  %v1743_v54 = vpop.f32.mrf.mxu1  ;;  %v4833_v40 = vld [vmem:[#allocation26_spill] sm:$0xff] }
 0x247   : > { %v1675_v2 = vadd.f32 %v1674_v41, %v4827_v6  ;;  %v543_v27 = vld [vmem:[%s3506_s19 + $0x618] sm:$0xff] }
 0x248   : > { %v4342_v55 = vadd.f32 %v1879_v19, %v1811_v18  ;;  %v701_v29 = vpack.c.bf16 %v543_v27, %v541_v5  ;;  %v479_v18 = vld [vmem:[%s3506_s19 + $0x418] sm:$0xff]  ;;  %v573_v19 = vld [vmem:[%s3506_s19 + $0x708] sm:$0xff] }
 0x249   : > { %v1744_v48 = vadd.f32 %v1743_v54, %v1675_v2  ;;  %v575_v41 = vld [vmem:[%s3506_s19 + $0x718] sm:$0xff]  ;;  %v669_v6 = vpack.c.bf16 %v479_v18, %v477_v31  ;;  %v4842_v18 = vld [vmem:[#allocation35_spill] sm:$0xff] }
 0x24a   : > { %4828 = vst [vmem:[#allocation14_spill] sm:$0xff] %v4342_v55  ;;  %v717_v2 = vpack.c.bf16 %v575_v41, %v573_v19  ;;  %2305 = vmatpush.bf16.msrb.mxu2 %v701_v29 }
 0x24b   : > { %2167 = vmatpush.bf16.msrb.mxu0 %v669_v6 }
 0x24c   : > { %2374 = vmatpush.bf16.msrb.mxu3 %v717_v2 }
 0x24d   : > { %v1812_v3 = vpop.f32.mrf.mxu2  ;;  %v1881_v34 = vpop.f32.mrf.mxu3 }
 0x24e   : > { %v1813_v38 = vadd.f32 %v1812_v3, %v1744_v48  ;;  %v1893_v52 = vpop.f32.mrf.mxu0  ;;  %v1962_v11 = vpop.f32.mrf.mxu1 }
 0x24f   : > { %v1894_v47 = vadd.f32 %v1893_v52, %v4829_v10  ;;  %v509_v52 = vld [vmem:[%s3506_s19 + $0x508] sm:$0xff]  ;;  %v511_v10 = vld [vmem:[%s3506_s19 + $0x518] sm:$0xff]  ;;  %s3142_s19 = smul.u32 192, %s3502_s6 }
 0x250   : > { %v4347_v21 = vadd.f32 %v1881_v34, %v1813_v38  ;;  %1932 = vmatmul.bf16.gmra.mxu0 %v4831_v24  ;;  %v4838_v24 = vld [vmem:[#allocation31_spill] sm:$0xff] }
 0x251   : > { %v1963_v12 = vadd.f32 %v1962_v11, %v1894_v47  ;;  %2001 = vmatmul.bf16.gmra.mxu1 %v4832_v0  ;;  %v4837_v11 = vld [vmem:[#allocation30_spill] sm:$0xff]  ;;  %v4839_v0 = vld [vmem:[#allocation32_spill] sm:$0xff]  ;;  %s4484_s1 = scalar_lea.vmem [#allocation7], %s3142_s19 }
 0x252   : > { %4830 = vst [vmem:[#allocation15_spill] sm:$0xff] %v4347_v21  ;;  %2070 = vmatmul.bf16.gmra.mxu2 %v4833_v40  ;;  %2139 = vmatmul.bf16.gmra.mxu3 %v4834_v42  ;;  %v4840_v40 = vld [vmem:[#allocation33_spill] sm:$0xff]  ;;  %v4885_v21 = vld [vmem:[#allocation78_spill] sm:$0xff]  ;;  %s2547_s10 = sshll.u32 %s4484_s1, 4  ;;  %s2548_s10 = int_to_ptr.vmem [resolvable:$true] %s2547_s10 }
 0x255   : > { %v2031_v46 = vpop.f32.mrf.mxu2  ;;  %v2100_v43 = vpop.f32.mrf.mxu3 }
 0x256   : > { %v2032_v25 = vadd.f32 %v2031_v46, %v1963_v12  ;;  %v1895_v15 = vpop.f32.mrf.mxu0  ;;  %v1964_v44 = vpop.f32.mrf.mxu1  ;;  %v685_v12 = vpack.c.bf16 %v511_v10, %v509_v52  ;;  %v4847_v10 = vld [vmem:[#allocation40_spill] sm:$0xff] }
 0x257   : > { %v1896_v39 = vadd.f32 %v1895_v15, %v4835_v4  ;;  %v4841_v15 = vld [vmem:[#allocation34_spill] sm:$0xff] }
 0x258   : > { %v4354_v17 = vadd.f32 %v2100_v43, %v2032_v25  ;;  %2236 = vmatpush.bf16.msrb.mxu1 %v685_v12 }
 0x259   : > { %v1965_v45 = vadd.f32 %v1964_v44, %v1896_v39 }
 0x25d   : > { %v2033_v54 = vpop.f32.mrf.mxu2  ;;  %v2102_v59 = vpop.f32.mrf.mxu3 }
 0x25e   : > { %v2034_v61 = vadd.f32 %v2033_v54, %v1965_v45  ;;  %v1898_v48 = vpop.f32.mrf.mxu0  ;;  %v1967_v38 = vpop.f32.mrf.mxu1  ;;  %v4843_v54 = vld [vmem:[#allocation36_spill] sm:$0xff] }
 0x25f   : > { %v1899_v3 = vadd.f32 %v1898_v48, %v4836_v23  ;;  %v4846_v48 = vld [vmem:[#allocation39_spill] sm:$0xff] }
 0x260   : > { %v4363_v34 = vadd.f32 %v2102_v59, %v2034_v61  ;;  %1937 = vmatmul.bf16.gmra.mxu0 %v4837_v11  ;;  %v4844_v61 = vld [vmem:[#allocation37_spill] sm:$0xff]  ;;  %v4845_v59 = vld [vmem:[#allocation38_spill] sm:$0xff] }
 0x261   : > { %v1968_v47 = vadd.f32 %v1967_v38, %v1899_v3  ;;  %2006 = vmatmul.bf16.gmra.mxu1 %v4838_v24 }
 0x262   : > { %2075 = vmatmul.bf16.gmra.mxu2 %v4839_v0  ;;  %2144 = vmatmul.bf16.gmra.mxu3 %v4840_v40 }
 0x265   : > { %v2036_v42 = vpop.f32.mrf.mxu2  ;;  %v2105_v25 = vpop.f32.mrf.mxu3 }
 0x266   : > { %v2037_v46 = vadd.f32 %v2036_v42, %v1968_v47  ;;  %v1900_v43 = vpop.f32.mrf.mxu0  ;;  %v1969_v39 = vpop.f32.mrf.mxu1 }
 0x267   : > { %v1901_v4 = vadd.f32 %v1900_v43, %v4841_v15 }
 0x268   : > { %v4372_v44 = vadd.f32 %v2105_v25, %v2037_v46  ;;  %v4848_v25 = vld [vmem:[#allocation41_spill] sm:$0xff] }
 0x269   : > { %v1970_v45 = vadd.f32 %v1969_v39, %v1901_v4 }
 0x26d   : > { %v2038_v5 = vpop.f32.mrf.mxu2  ;;  %v2107_v31 = vpop.f32.mrf.mxu3 }
 0x26e   : > { %v2039_v27 = vadd.f32 %v2038_v5, %v1970_v45  ;;  %v1903_v29 = vpop.f32.mrf.mxu0  ;;  %v1972_v41 = vpop.f32.mrf.mxu1  ;;  %v4849_v45 = vld [vmem:[#allocation42_spill] sm:$0xff]  ;;  %v4850_v5 = vld [vmem:[#allocation43_spill] sm:$0xff] }
 0x26f   : > { %v1904_v19 = vadd.f32 %v1903_v29, %v4842_v18 }
 0x270   : > { %v4375_v6 = vadd.f32 %v2107_v31, %v2039_v27  ;;  %1942 = vmatmul.bf16.gmra.mxu0 %v4843_v54  ;;  %v4851_v27 = vld [vmem:[#allocation44_spill] sm:$0xff]  ;;  %v4852_v31 = vld [vmem:[#allocation45_spill] sm:$0xff] }
 0x271   : > { %v1973_v2 = vadd.f32 %v1972_v41, %v1904_v19  ;;  %2011 = vmatmul.bf16.gmra.mxu1 %v4844_v61 }
 0x272   : > { %2080 = vmatmul.bf16.gmra.mxu2 %v4845_v59  ;;  %2149 = vmatmul.bf16.gmra.mxu3 %v4846_v48 }
 0x275   : > { %v2041_v23 = vpop.f32.mrf.mxu2  ;;  %v2110_v38 = vpop.f32.mrf.mxu3 }
 0x276   : > { %v2042_v3 = vadd.f32 %v2041_v23, %v1973_v2  ;;  %v1905_v52 = vpop.f32.mrf.mxu0  ;;  %v1974_v11 = vpop.f32.mrf.mxu1  ;;  %v4853_v2 = vld [vmem:[#allocation46_spill] sm:$0xff] }
 0x277   : > { %v1906_v47 = vadd.f32 %v1905_v52, %v4847_v10  ;;  %v4854_v10 = vld [vmem:[#allocation47_spill] sm:$0xff] }
 0x278   : > { %v4382_v12 = vadd.f32 %v2110_v38, %v2042_v3 }
 0x279   : > { %v1975_v24 = vadd.f32 %v1974_v11, %v1906_v47 }
 0x27d   : > { %v2043_v0 = vpop.f32.mrf.mxu2  ;;  %v2112_v42 = vpop.f32.mrf.mxu3 }
 0x27e   : > { %v2044_v40 = vadd.f32 %v2043_v0, %v1975_v24  ;;  %v1908_v46 = vpop.f32.mrf.mxu0  ;;  %v1977_v15 = vpop.f32.mrf.mxu1 }
 0x27f   : > { %v1909_v43 = vadd.f32 %v1908_v46, %v4848_v25  ;;  %v4857_v46 = vld [vmem:[#allocation50_spill] sm:$0xff]  ;;  %v4858_v25 = vld [vmem:[#allocation51_spill] sm:$0xff] }
 0x280   : > { %v4385_v4 = vadd.f32 %v2112_v42, %v2044_v40  ;;  %1947 = vmatmul.bf16.gmra.mxu0 %v4849_v45  ;;  %v4855_v40 = vld [vmem:[#allocation48_spill] sm:$0xff]  ;;  %v4856_v42 = vld [vmem:[#allocation49_spill] sm:$0xff] }
 0x281   : > { %v1978_v39 = vadd.f32 %v1977_v15, %v1909_v43  ;;  %2016 = vmatmul.bf16.gmra.mxu1 %v4850_v5  ;;  %v4859_v5 = vld [vmem:[#allocation52_spill] sm:$0xff] }
 0x282   : > { %2085 = vmatmul.bf16.gmra.mxu2 %v4851_v27  ;;  %2154 = vmatmul.bf16.gmra.mxu3 %v4852_v31 }
 0x285   : > { %v2046_v29 = vpop.f32.mrf.mxu2  ;;  %v2115_v19 = vpop.f32.mrf.mxu3 }
 0x286   : > { %v2047_v18 = vadd.f32 %v2046_v29, %v1978_v39  ;;  %v1910_v41 = vpop.f32.mrf.mxu0  ;;  %v1979_v61 = vpop.f32.mrf.mxu1 }
 0x287   : > { %v1911_v54 = vadd.f32 %v1910_v41, %v4853_v2 }
 0x288   : > { %v4392_v59 = vadd.f32 %v2115_v19, %v2047_v18 }
 0x289   : > { %v1980_v48 = vadd.f32 %v1979_v61, %v1911_v54  ;;  %v4860_v61 = vld [vmem:[#allocation53_spill] sm:$0xff] }
 0x28d   : > { %v2048_v23 = vpop.f32.mrf.mxu2  ;;  %v2117_v38 = vpop.f32.mrf.mxu3 }
 0x28e   : > { %v2049_v3 = vadd.f32 %v2048_v23, %v1980_v48  ;;  %v1913_v52 = vpop.f32.mrf.mxu0  ;;  %v1982_v11 = vpop.f32.mrf.mxu1 }
 0x28f   : > { %v1914_v47 = vadd.f32 %v1913_v52, %v4854_v10  ;;  %v4861_v52 = vld [vmem:[#allocation54_spill] sm:$0xff]  ;;  %v4862_v10 = vld [vmem:[#allocation55_spill] sm:$0xff] }
 0x290   : > { %v4395_v24 = vadd.f32 %v2117_v38, %v2049_v3  ;;  %2168 = vmatmul.bf16.vlgmr.msrb.gmra.mxu0 %v4855_v40 }
 0x291   : > { %v1983_v0 = vadd.f32 %v1982_v11, %v1914_v47  ;;  %2237 = vmatmul.bf16.vlgmr.msrb.gmra.mxu1 %v4856_v42  ;;  %v4863_v47 = vld [vmem:[#allocation56_spill] sm:$0xff]  ;;  %v4864_v11 = vld [vmem:[#allocation57_spill] sm:$0xff] }
 0x292   : > { %2306 = vmatmul.bf16.vlgmr.msrb.gmra.mxu2 %v4857_v46  ;;  %2375 = vmatmul.bf16.vlgmr.msrb.gmra.mxu3 %v4858_v25  ;;  %v4865_v25 = vld [vmem:[#allocation58_spill] sm:$0xff] }
 0x295   : > { %v2051_v43 = vpop.f32.mrf.mxu2  ;;  %v2120_v39 = vpop.f32.mrf.mxu3 }
 0x296   : > { %v2052_v15 = vadd.f32 %v2051_v43, %v1983_v0  ;;  %v1915_v45 = vpop.f32.mrf.mxu0  ;;  %v1984_v31 = vpop.f32.mrf.mxu1 }
 0x297   : > { %v1916_v27 = vadd.f32 %v1915_v45, %v4859_v5 }
 0x298   : > { %v4402_v29 = vadd.f32 %v2120_v39, %v2052_v15 }
 0x299   : > { %v1985_v18 = vadd.f32 %v1984_v31, %v1916_v27 }
 0x29d   : > { %v2053_v19 = vpop.f32.mrf.mxu2  ;;  %v2122_v2 = vpop.f32.mrf.mxu3 }
 0x29e   : > { %v2054_v41 = vadd.f32 %v2053_v19, %v1985_v18  ;;  %v1918_v54 = vpop.f32.mrf.mxu0  ;;  %v1987_v23 = vpop.f32.mrf.mxu1  ;;  %v4866_v19 = vld [vmem:[#allocation59_spill] sm:$0xff] }
 0x29f   : > { %v1919_v48 = vadd.f32 %v1918_v54, %v4860_v61 }
 0x2a0   : > { %v4405_v3 = vadd.f32 %v2122_v2, %v2054_v41  ;;  %2173 = vmatmul.bf16.gmra.mxu0 %v4861_v52  ;;  %v4870_v52 = vld [vmem:[#allocation63_spill] sm:$0xff] }
 0x2a1   : > { %v1988_v38 = vadd.f32 %v1987_v23, %v1919_v48  ;;  %2242 = vmatmul.bf16.gmra.mxu1 %v4862_v10  ;;  %v4867_v48 = vld [vmem:[#allocation60_spill] sm:$0xff]  ;;  %v4868_v23 = vld [vmem:[#allocation61_spill] sm:$0xff] }
 0x2a2   : > { %2311 = vmatmul.bf16.gmra.mxu2 %v4863_v47  ;;  %2380 = vmatmul.bf16.gmra.mxu3 %v4864_v11 }
 0x2a5   : > { %v2056_v0 = vpop.f32.mrf.mxu2  ;;  %v2125_v42 = vpop.f32.mrf.mxu3 }
 0x2a6   : > { %v2057_v40 = vadd.f32 %v2056_v0, %v1988_v38  ;;  %v1920_v46 = vpop.f32.mrf.mxu0  ;;  %v1989_v15 = vpop.f32.mrf.mxu1  ;;  %v4869_v38 = vld [vmem:[#allocation62_spill] sm:$0xff] }
 0x2a7   : > { %v1921_v43 = vadd.f32 %v1920_v46, %v4865_v25 }
 0x2a8   : > { %v4412_v39 = vadd.f32 %v2125_v42, %v2057_v40  ;;  %v4871_v40 = vld [vmem:[#allocation64_spill] sm:$0xff] }
 0x2a9   : > { %v1990_v45 = vadd.f32 %v1989_v15, %v1921_v43 }
 0x2ad   : > { %v2058_v5 = vpop.f32.mrf.mxu2  ;;  %v2127_v31 = vpop.f32.mrf.mxu3 }
 0x2ae   : > { %v2059_v27 = vadd.f32 %v2058_v5, %v1990_v45  ;;  %v1923_v18 = vpop.f32.mrf.mxu0  ;;  %v1992_v2 = vpop.f32.mrf.mxu1 }
 0x2af   : > { %v1924_v41 = vadd.f32 %v1923_v18, %v4866_v19 }
 0x2b0   : > { %v4415_v54 = vadd.f32 %v2127_v31, %v2059_v27  ;;  %2178 = vmatmul.bf16.gmra.mxu0 %v4867_v48  ;;  %v4872_v31 = vld [vmem:[#allocation65_spill] sm:$0xff]  ;;  %v4873_v48 = vld [vmem:[#allocation66_spill] sm:$0xff] }
 0x2b1   : > { %v1993_v61 = vadd.f32 %v1992_v2, %v1924_v41  ;;  %2247 = vmatmul.bf16.gmra.mxu1 %v4868_v23  ;;  %v4875_v23 = vld [vmem:[#allocation68_spill] sm:$0xff] }
 0x2b2   : > { %2316 = vmatmul.bf16.gmra.mxu2 %v4869_v38  ;;  %2385 = vmatmul.bf16.gmra.mxu3 %v4870_v52  ;;  %v4876_v38 = vld [vmem:[#allocation69_spill] sm:$0xff] }
 0x2b5   : > { %v2061_v10 = vpop.f32.mrf.mxu2  ;;  %v2130_v11 = vpop.f32.mrf.mxu3 }
 0x2b6   : > { %v2062_v47 = vadd.f32 %v2061_v10, %v1993_v61  ;;  %v1925_v0 = vpop.f32.mrf.mxu0  ;;  %v1994_v46 = vpop.f32.mrf.mxu1  ;;  %v4874_v61 = vld [vmem:[#allocation67_spill] sm:$0xff] }
 0x2b7   : > { %v1926_v42 = vadd.f32 %v1925_v0, %v4871_v40  ;;  %v4877_v0 = vld [vmem:[#allocation70_spill] sm:$0xff] }
 0x2b8   : > { %v4422_v25 = vadd.f32 %v2130_v11, %v2062_v47 }
 0x2b9   : > { %v1995_v43 = vadd.f32 %v1994_v46, %v1926_v42 }
 0x2bd   : > { %v2063_v15 = vpop.f32.mrf.mxu2  ;;  %v2132_v5 = vpop.f32.mrf.mxu3 }
 0x2be   : > { %v2064_v45 = vadd.f32 %v2063_v15, %v1995_v43  ;;  %v1928_v27 = vpop.f32.mrf.mxu0  ;;  %v1997_v19 = vpop.f32.mrf.mxu1 }
 0x2bf   : > { %v1929_v18 = vadd.f32 %v1928_v27, %v4872_v31  ;;  %v4878_v31 = vld [vmem:[#allocation71_spill] sm:$0xff] }
 0x2c0   : > { %v4425_v41 = vadd.f32 %v2132_v5, %v2064_v45  ;;  %2183 = vmatmul.bf16.gmra.mxu0 %v4873_v48 }
 0x2c1   : > { %v1998_v2 = vadd.f32 %v1997_v19, %v1929_v18  ;;  %2252 = vmatmul.bf16.gmra.mxu1 %v4874_v61 }
 0x2c2   : > { %2321 = vmatmul.bf16.gmra.mxu2 %v4875_v23  ;;  %2390 = vmatmul.bf16.gmra.mxu3 %v4876_v38  ;;  %v4879_v23 = vld [vmem:[#allocation72_spill] sm:$0xff]  ;;  %v4881_v38 = vld [vmem:[#allocation74_spill] sm:$0xff] }
 0x2c5   : > { %v2066_v52 = vpop.f32.mrf.mxu2  ;;  %v2135_v47 = vpop.f32.mrf.mxu3 }
 0x2c6   : > { %v2067_v10 = vadd.f32 %v2066_v52, %v1998_v2  ;;  %v1930_v11 = vpop.f32.mrf.mxu0  ;;  %v1999_v42 = vpop.f32.mrf.mxu1  ;;  %v4880_v2 = vld [vmem:[#allocation73_spill] sm:$0xff]  ;;  %v4882_v52 = vld [vmem:[#allocation75_spill] sm:$0xff] }
 0x2c7   : > { %v1931_v40 = vadd.f32 %v1930_v11, %v4877_v0 }
 0x2c8   : > { %v4432_v46 = vadd.f32 %v2135_v47, %v2067_v10 }
 0x2c9   : > { %v2000_v43 = vadd.f32 %v1999_v42, %v1931_v40  ;;  %v4883_v40 = vld [vmem:[#allocation76_spill] sm:$0xff] }
 0x2cd   : > { %v2068_v15 = vpop.f32.mrf.mxu2  ;;  %v2137_v5 = vpop.f32.mrf.mxu3 }
 0x2ce   : > { %v2069_v45 = vadd.f32 %v2068_v15, %v2000_v43  ;;  %v1933_v27 = vpop.f32.mrf.mxu0  ;;  %v2002_v19 = vpop.f32.mrf.mxu1 }
 0x2cf   : > { %v1934_v18 = vadd.f32 %v1933_v27, %v4878_v31 }
 0x2d0   : > { %v4435_v48 = vadd.f32 %v2137_v5, %v2069_v45  ;;  %2188 = vmatmul.bf16.gmra.mxu0 %v4879_v23 }
 0x2d1   : > { %v2003_v61 = vadd.f32 %v2002_v19, %v1934_v18  ;;  %2257 = vmatmul.bf16.gmra.mxu1 %v4880_v2  ;;  %v4884_v19 = vld [vmem:[#allocation77_spill] sm:$0xff] }
 0x2d2   : > { %2326 = vmatmul.bf16.gmra.mxu2 %v4881_v38  ;;  %2395 = vmatmul.bf16.gmra.mxu3 %v4882_v52 }
 0x2d5   : > { %v2071_v10 = vpop.f32.mrf.mxu2  ;;  %v2140_v11 = vpop.f32.mrf.mxu3 }
 0x2d6   : > { %v2072_v47 = vadd.f32 %v2071_v10, %v2003_v61  ;;  %v1935_v0 = vpop.f32.mrf.mxu0  ;;  %v2004_v43 = vpop.f32.mrf.mxu1  ;;  %v4886_v61 = vld [vmem:[#allocation79_spill] sm:$0xff]  ;;  %v4887_v10 = vld [vmem:[#allocation80_spill] sm:$0xff] }
 0x2d7   : > { %v1936_v42 = vadd.f32 %v1935_v0, %v4883_v40  ;;  %v4888_v0 = vld [vmem:[#allocation81_spill] sm:$0xff] }
 0x2d8   : > { %v4442_v15 = vadd.f32 %v2140_v11, %v2072_v47 }
 0x2d9   : > { %v2005_v45 = vadd.f32 %v2004_v43, %v1936_v42  ;;  %v4889_v43 = vld [vmem:[#allocation82_spill] sm:$0xff] }
 0x2dd   : > { %v2073_v5 = vpop.f32.mrf.mxu2  ;;  %v2142_v31 = vpop.f32.mrf.mxu3 }
 0x2de   : > { %v2074_v27 = vadd.f32 %v2073_v5, %v2005_v45  ;;  %v1938_v18 = vpop.f32.mrf.mxu0  ;;  %v2007_v2 = vpop.f32.mrf.mxu1 }
 0x2df   : > { %v1939_v23 = vadd.f32 %v1938_v18, %v4884_v19 }
 0x2e0   : > { %v4445_v38 = vadd.f32 %v2142_v31, %v2074_v27  ;;  %2193 = vmatmul.bf16.gmra.mxu0 %v4885_v21 }
 0x2e1   : > { %v2008_v52 = vadd.f32 %v2007_v2, %v1939_v23  ;;  %2262 = vmatmul.bf16.gmra.mxu1 %v4886_v61  ;;  %v4890_v2 = vld [vmem:[#allocation83_spill] sm:$0xff] }
 0x2e2   : > { %2331 = vmatmul.bf16.gmra.mxu2 %v4887_v10  ;;  %2400 = vmatmul.bf16.gmra.mxu3 %v4888_v0 }
 0x2e5   : > { %v2076_v47 = vpop.f32.mrf.mxu2  ;;  %v2145_v40 = vpop.f32.mrf.mxu3 }
 0x2e6   : > { %v2077_v11 = vadd.f32 %v2076_v47, %v2008_v52  ;;  %v1940_v42 = vpop.f32.mrf.mxu0  ;;  %v2009_v5 = vpop.f32.mrf.mxu1  ;;  %v4892_v52 = vld [vmem:[#allocation85_spill] sm:$0xff]  ;;  %v4893_v47 = vld [vmem:[#allocation86_spill] sm:$0xff] }
 0x2e7   : > { %v1941_v45 = vadd.f32 %v1940_v42, %v4889_v43  ;;  %v4894_v42 = vld [vmem:[#allocation87_spill] sm:$0xff] }
 0x2e8   : > { %v4452_v18 = vadd.f32 %v2145_v40, %v2077_v11 }
 0x2e9   : > { %v2010_v27 = vadd.f32 %v2009_v5, %v1941_v45  ;;  %v4895_v5 = vld [vmem:[#allocation88_spill] sm:$0xff] }
 0x2ed   : > { %v2078_v31 = vpop.f32.mrf.mxu2  ;;  %v2147_v23 = vpop.f32.mrf.mxu3 }
 0x2ee   : > { %v2079_v19 = vadd.f32 %v2078_v31, %v2010_v27  ;;  %v1943_v21 = vpop.f32.mrf.mxu0  ;;  %v2012_v55 = vpop.f32.mrf.mxu1 }
 0x2ef   : > { %v1944_v61 = vadd.f32 %v1943_v21, %v4890_v2 }
 0x2f0   : > { %v4455_v10 = vadd.f32 %v2147_v23, %v2079_v19  ;;  %2198 = vmatmul.bf16.gmra.mxu0 %v4891_v53 }
 0x2f1   : > { %v2013_v0 = vadd.f32 %v2012_v55, %v1944_v61  ;;  %2267 = vmatmul.bf16.gmra.mxu1 %v4892_v52  ;;  %v4896_v61 = vld [vmem:[#allocation89_spill] sm:$0xff] }
 0x2f2   : > { %2336 = vmatmul.bf16.gmra.mxu2 %v4893_v47  ;;  %2405 = vmatmul.bf16.gmra.mxu3 %v4894_v42 }
 0x2f5   : > { %v2081_v11 = vpop.f32.mrf.mxu2  ;;  %v2150_v43 = vpop.f32.mrf.mxu3 }
 0x2f6   : > { %v2082_v40 = vadd.f32 %v2081_v11, %v2013_v0  ;;  %v1945_v45 = vpop.f32.mrf.mxu0  ;;  %v2014_v31 = vpop.f32.mrf.mxu1  ;;  %v4898_v0 = vld [vmem:[#allocation91_spill] sm:$0xff]  ;;  %v4899_v11 = vld [vmem:[#allocation92_spill] sm:$0xff] }
 0x2f7   : > { %v1946_v27 = vadd.f32 %v1945_v45, %v4895_v5  ;;  %v4900_v45 = vld [vmem:[#allocation93_spill] sm:$0xff] }
 0x2f8   : > { %v4462_v21 = vadd.f32 %v2150_v43, %v2082_v40 }
 0x2f9   : > { %v2015_v19 = vadd.f32 %v2014_v31, %v1946_v27  ;;  %v4901_v31 = vld [vmem:[#allocation95_spill] sm:$0xff] }
 0x2fd   : > { %v2083_v23 = vpop.f32.mrf.mxu2  ;;  %v2152_v2 = vpop.f32.mrf.mxu3 }
 0x2fe   : > { %v2084_v55 = vadd.f32 %v2083_v23, %v2015_v19  ;;  %v1948_v53 = vpop.f32.mrf.mxu0  ;;  %v2017_v1 = vpop.f32.mrf.mxu1 }
 0x2ff   : > { %v1949_v52 = vadd.f32 %v1948_v53, %v4896_v61 }
 0x300   : > { %v4465_v47 = vadd.f32 %v2152_v2, %v2084_v55  ;;  %2203 = vmatmul.bf16.gmra.mxu0 %v4897_v28 }
 0x301   : > { %v2018_v42 = vadd.f32 %v2017_v1, %v1949_v52  ;;  %2272 = vmatmul.bf16.gmra.mxu1 %v4898_v0 }
 0x302   : > { %2341 = vmatmul.bf16.gmra.mxu2 %v4899_v11  ;;  %2410 = vmatmul.bf16.gmra.mxu3 %v4900_v45  ;;  %v4903_v45 = vld [vmem:[#allocation97_spill] sm:$0xff] }
 0x305   : > { %v2086_v40 = vpop.f32.mrf.mxu2  ;;  %v2155_v5 = vpop.f32.mrf.mxu3 }
 0x306   : > { %v2087_v43 = vadd.f32 %v2086_v40, %v2018_v42  ;;  %v1950_v27 = vpop.f32.mrf.mxu0  ;;  %v2019_v23 = vpop.f32.mrf.mxu1  ;;  %v4904_v42 = vld [vmem:[#allocation98_spill] sm:$0xff]  ;;  %v4905_v40 = vld [vmem:[#allocation99_spill] sm:$0xff] }
 0x307   : > { %v1951_v19 = vadd.f32 %v1950_v27, %v4901_v31  ;;  %v4906_v27 = vld [vmem:[#allocation100_spill] sm:$0xff] }
 0x308   : > { %v4472_v53 = vadd.f32 %v2155_v5, %v2087_v43 }
 0x309   : > { %v2020_v55 = vadd.f32 %v2019_v23, %v1951_v19 }
 0x30d   : > { %v2088_v2 = vpop.f32.mrf.mxu2  ;;  %v2157_v28 = vpop.f32.mrf.mxu3 }
 0x30e   : > { %v2089_v1 = vadd.f32 %v2088_v2, %v2020_v55  ;;  %v2169_v61 = vpop.f32.mrf.mxu0  ;;  %v2238_v52 = vpop.f32.mrf.mxu1 }
 0x30f   : > { %v2170_v11 = vadd.f32 %v2169_v61, %v4354_v17 }
 0x310   : > { %v4474_v0 = vadd.f32 %v2157_v28, %v2089_v1  ;;  %2208 = vmatmul.bf16.gmra.mxu0 %v4903_v45  ;;  %v4907_v28 = vld [vmem:[#allocation102_spill] sm:$0xff] }
 0x311   : > { %2277 = vmatmul.bf16.gmra.mxu1 %v4904_v42  ;;  %v2239_v43 = vadd.f32 %v2238_v52, %v2170_v11  ;;  %v2436_v17 = vmax.f32 %v4907_v28, 0.0 }
 0x312   : > { %4902 = vst [vmem:[#allocation16_spill] sm:$0xff] %v4474_v0  ;;  %2346 = vmatmul.bf16.gmra.mxu2 %v4905_v40  ;;  %2415 = vmatmul.bf16.gmra.mxu3 %v4906_v27 }
 0x315   : > { %v2307_v5 = vpop.f32.mrf.mxu2  ;;  %v2376_v19 = vpop.f32.mrf.mxu3 }
 0x316   : > { %v2308_v31 = vadd.f32 %v2307_v5, %v2239_v43  ;;  %v2171_v23 = vpop.f32.mrf.mxu0  ;;  %v2240_v55 = vpop.f32.mrf.mxu1 }
 0x317   : > { %v2172_v1 = vadd.f32 %v2171_v23, %v4363_v34  ;;  %v2438_v34 = vmax.f32 %v4163_v60, 0.0  ;;  %v2440_v60 = vmax.f32 %v4172_v36, 0.0  ;;  %v4911_v36 = vld [vmem:[#allocation105_spill] sm:$0xff] }
 0x318   : > { %v2377_v2 = vadd.f32 %v2376_v19, %v2308_v31 }
 0x319   : > { %v2241_v0 = vadd.f32 %v2240_v55, %v2172_v1 }
 0x31a   : > { %v2437_v61 = vmax.f32 %v2377_v2, 0.0 }
 0x31c   : > { %v2484_v45 = vpack.c.bf16 %v2437_v61, %v2436_v17 }
 0x31d   : > { %v2309_v42 = vpop.f32.mrf.mxu2  ;;  %v2378_v11 = vpop.f32.mrf.mxu3 }
 0x31e   : > { %2508 = vst [vmem:[%s4484_s1] sm:$0xff] %v2484_v45  ;;  %v2310_v52 = vadd.f32 %v2309_v42, %v2241_v0  ;;  %v2174_v40 = vpop.f32.mrf.mxu0  ;;  %v2243_v27 = vpop.f32.mrf.mxu1 }
 0x31f   : > { %v2175_v5 = vadd.f32 %v2174_v40, %v4372_v44 }
 0x320   : > { %v2379_v43 = vadd.f32 %v2378_v11, %v2310_v52  ;;  %2213 = vmatmul.bf16.gmra.mxu0 %v4154_v8 }
 0x321   : > { %2282 = vmatmul.bf16.gmra.mxu1 %v4156_v63  ;;  %v2244_v0 = vadd.f32 %v2243_v27, %v2175_v5  ;;  %v4908_v27 = vld [vmem:[#allocation103_spill] sm:$0xff] }
 0x322   : > { %v2439_v31 = vmax.f32 %v2379_v43, 0.0  ;;  %2351 = vmatmul.bf16.gmra.mxu2 %v4158_v7  ;;  %2420 = vmatmul.bf16.gmra.mxu3 %v4161_v26  ;;  %v4909_v43 = vld [vmem:[#allocation107_spill] sm:$0xff] }
 0x323   : > { %v2442_v5 = vmax.f32 %v4909_v43, 0.0 }
 0x324   : > { %v2485_v19 = vpack.c.bf16 %v2439_v31, %v2438_v34  ;;  %v4910_v34 = vld [vmem:[#allocation104_spill] sm:$0xff]  ;;  %v4912_v31 = vld [vmem:[#allocation106_spill] sm:$0xff] }
 0x325   : > { %v2312_v23 = vpop.f32.mrf.mxu2  ;;  %v2381_v2 = vpop.f32.mrf.mxu3 }
 0x326   : > { %2509 = vst [vmem:[%s4484_s1 + $0x8] sm:$0xff] %v2485_v19  ;;  %v2313_v55 = vadd.f32 %v2312_v23, %v2244_v0  ;;  %v2176_v1 = vpop.f32.mrf.mxu0  ;;  %v2245_v44 = vpop.f32.mrf.mxu1 }
 0x327   : > { %v2177_v8 = vadd.f32 %v2176_v1, %v4375_v6 }
 0x328   : > { %v2382_v28 = vadd.f32 %v2381_v2, %v2313_v55 }
 0x329   : > { %v2246_v61 = vadd.f32 %v2245_v44, %v2177_v8  ;;  %v2444_v8 = vmax.f32 %v4196_v57, 0.0  ;;  %v4913_v57 = vld [vmem:[#allocation108_spill] sm:$0xff] }
 0x32a   : > { %v2441_v17 = vmax.f32 %v2382_v28, 0.0 }
 0x32c   : > { %v2486_v63 = vpack.c.bf16 %v2441_v17, %v2440_v60 }
 0x32d   : > { %v2314_v7 = vpop.f32.mrf.mxu2  ;;  %v2383_v45 = vpop.f32.mrf.mxu3 }
 0x32e   : > { %2510 = vst [vmem:[%s4484_s1 + $0x10] sm:$0xff] %v2486_v63  ;;  %v2315_v26 = vadd.f32 %v2314_v7, %v2246_v61  ;;  %v2179_v42 = vpop.f32.mrf.mxu0  ;;  %v2248_v52 = vpop.f32.mrf.mxu1 }
 0x32f   : > { %v2180_v40 = vadd.f32 %v2179_v42, %v4382_v12 }
 0x330   : > { %v2384_v11 = vadd.f32 %v2383_v45, %v2315_v26  ;;  %2218 = vmatmul.bf16.gmra.mxu0 %v4908_v27 }
 0x331   : > { %2287 = vmatmul.bf16.gmra.mxu1 %v4910_v34  ;;  %v2249_v0 = vadd.f32 %v2248_v52, %v2180_v40  ;;  %v2446_v40 = vmax.f32 %v4209_v37, 0.0  ;;  %v2448_v37 = vmax.f32 %v4216_v35, 0.0 }
 0x332   : > { %v2443_v6 = vmax.f32 %v2384_v11, 0.0  ;;  %2356 = vmatmul.bf16.gmra.mxu2 %v4911_v36  ;;  %2425 = vmatmul.bf16.gmra.mxu3 %v4912_v31 }
 0x334   : > { %v2487_v19 = vpack.c.bf16 %v2443_v6, %v2442_v5 }
 0x335   : > { %v2317_v23 = vpop.f32.mrf.mxu2  ;;  %v2386_v2 = vpop.f32.mrf.mxu3 }
 0x336   : > { %2511 = vst [vmem:[%s4484_s1 + $0x18] sm:$0xff] %v2487_v19  ;;  %v2318_v55 = vadd.f32 %v2317_v23, %v2249_v0  ;;  %v2181_v1 = vpop.f32.mrf.mxu0  ;;  %v2250_v12 = vpop.f32.mrf.mxu1 }
 0x337   : > { %v2182_v28 = vadd.f32 %v2181_v1, %v4385_v4 }
 0x338   : > { %v2387_v44 = vadd.f32 %v2386_v2, %v2318_v55 }
 0x339   : > { %v2251_v63 = vadd.f32 %v2250_v12, %v2182_v28  ;;  %v2450_v28 = vmax.f32 %v4225_v13, 0.0 }
 0x33a   : > { %v2445_v60 = vmax.f32 %v2387_v44, 0.0 }
 0x33c   : > { %v2488_v17 = vpack.c.bf16 %v2445_v60, %v2444_v8 }
 0x33d   : > { %v2319_v61 = vpop.f32.mrf.mxu2  ;;  %v2388_v26 = vpop.f32.mrf.mxu3 }
 0x33e   : > { %2512 = vst [vmem:[%s4484_s1 + $0x20] sm:$0xff] %v2488_v17  ;;  %v2320_v7 = vadd.f32 %v2319_v61, %v2251_v63  ;;  %v2184_v45 = vpop.f32.mrf.mxu0  ;;  %v2253_v42 = vpop.f32.mrf.mxu1 }
 0x33f   : > { %v2185_v11 = vadd.f32 %v2184_v45, %v4392_v59 }
 0x340   : > { %v2389_v52 = vadd.f32 %v2388_v26, %v2320_v7  ;;  %2223 = vmatmul.bf16.gmra.mxu0 %v4200_v58 }
 0x341   : > { %2292 = vmatmul.bf16.gmra.mxu1 %v4202_v22  ;;  %v2254_v43 = vadd.f32 %v2253_v42, %v2185_v11  ;;  %v2452_v42 = vmax.f32 %v4234_v49, 0.0 }
 0x342   : > { %v2447_v4 = vmax.f32 %v2389_v52, 0.0  ;;  %2361 = vmatmul.bf16.gmra.mxu2 %v4204_v16  ;;  %2430 = vmatmul.bf16.gmra.mxu3 %v4913_v57 }
 0x344   : > { %v2489_v27 = vpack.c.bf16 %v2447_v4, %v2446_v40 }
 0x345   : > { %v2322_v5 = vpop.f32.mrf.mxu2  ;;  %v2391_v34 = vpop.f32.mrf.mxu3 }
 0x346   : > { %2513 = vst [vmem:[%s4484_s1 + $0x28] sm:$0xff] %v2489_v27  ;;  %v2323_v6 = vadd.f32 %v2322_v5, %v2254_v43  ;;  %v2186_v36 = vpop.f32.mrf.mxu0  ;;  %v2255_v59 = vpop.f32.mrf.mxu1 }
 0x347   : > { %v2187_v58 = vadd.f32 %v2186_v36, %v4395_v24 }
 0x348   : > { %v2392_v31 = vadd.f32 %v2391_v34, %v2323_v6  ;;  %v2454_v6 = vmax.f32 %v4237_v62, 0.0 }
 0x349   : > { %v2256_v16 = vadd.f32 %v2255_v59, %v2187_v58 }
 0x34a   : > { %v2449_v19 = vmax.f32 %v2392_v31, 0.0 }
 0x34c   : > { %v2490_v22 = vpack.c.bf16 %v2449_v19, %v2448_v37 }
 0x34d   : > { %v2324_v0 = vpop.f32.mrf.mxu2  ;;  %v2393_v55 = vpop.f32.mrf.mxu3 }
 0x34e   : > { %2514 = vst [vmem:[%s4484_s1 + $0x30] sm:$0xff] %v2490_v22  ;;  %v2325_v23 = vadd.f32 %v2324_v0, %v2256_v16  ;;  %v2189_v2 = vpop.f32.mrf.mxu0  ;;  %v2258_v1 = vpop.f32.mrf.mxu1  ;;  %v2456_v16 = vmax.f32 %v4250_v20, 0.0 }
 0x34f   : > { %v2190_v44 = vadd.f32 %v2189_v2, %v4402_v29 }
 0x350   : > { %v2394_v12 = vadd.f32 %v2393_v55, %v2325_v23 }
 0x351   : > { %v2259_v60 = vadd.f32 %v2258_v1, %v2190_v44 }
 0x352   : > { %v2451_v8 = vmax.f32 %v2394_v12, 0.0 }
 0x354   : > { %v2491_v24 = vpack.c.bf16 %v2451_v8, %v2450_v28  ;;  %v2458_v8 = vmax.f32 %v4255_v51, 0.0 }
 0x355   : > { %v2327_v35 = vpop.f32.mrf.mxu2  ;;  %v2396_v63 = vpop.f32.mrf.mxu3 }
 0x356   : > { %2515 = vst [vmem:[%s4484_s1 + $0x38] sm:$0xff] %v2491_v24  ;;  %v2328_v17 = vadd.f32 %v2327_v35, %v2259_v60  ;;  %v2191_v61 = vpop.f32.mrf.mxu0  ;;  %v2260_v7 = vpop.f32.mrf.mxu1 }
 0x357   : > { %v2192_v45 = vadd.f32 %v2191_v61, %v4405_v3 }
 0x358   : > { %v2397_v26 = vadd.f32 %v2396_v63, %v2328_v17 }
 0x359   : > { %v2261_v11 = vadd.f32 %v2260_v7, %v2192_v45  ;;  %v2460_v45 = vmax.f32 %v4262_v32, 0.0 }
 0x35a   : > { %v2453_v52 = vmax.f32 %v2397_v26, 0.0 }
 0x35c   : > { %v2492_v29 = vpack.c.bf16 %v2453_v52, %v2452_v42 }
 0x35d   : > { %v2329_v13 = vpop.f32.mrf.mxu2  ;;  %v2398_v4 = vpop.f32.mrf.mxu3 }
 0x35e   : > { %2516 = vst [vmem:[%s4484_s1 + $0x40] sm:$0xff] %v2492_v29  ;;  %v2330_v40 = vadd.f32 %v2329_v13, %v2261_v11  ;;  %v2194_v57 = vpop.f32.mrf.mxu0  ;;  %v2263_v27 = vpop.f32.mrf.mxu1 }
 0x35f   : > { %v2195_v5 = vadd.f32 %v2194_v57, %v4412_v39 }
 0x360   : > { %v2399_v43 = vadd.f32 %v2398_v4, %v2330_v40 }
 0x361   : > { %v2264_v36 = vadd.f32 %v2263_v27, %v2195_v5  ;;  %v2462_v27 = vmax.f32 %v4271_v14, 0.0 }
 0x362   : > { %v2455_v34 = vmax.f32 %v2399_v43, 0.0 }
 0x364   : > { %v2493_v3 = vpack.c.bf16 %v2455_v34, %v2454_v6 }
 0x365   : > { %v2332_v49 = vpop.f32.mrf.mxu2  ;;  %v2401_v31 = vpop.f32.mrf.mxu3 }
 0x366   : > { %2517 = vst [vmem:[%s4484_s1 + $0x48] sm:$0xff] %v2493_v3  ;;  %v2333_v59 = vadd.f32 %v2332_v49, %v2264_v36  ;;  %v2196_v58 = vpop.f32.mrf.mxu0  ;;  %v2265_v37 = vpop.f32.mrf.mxu1 }
 0x367   : > { %v2197_v22 = vadd.f32 %v2196_v58, %v4415_v54 }
 0x368   : > { %v2402_v19 = vadd.f32 %v2401_v31, %v2333_v59  ;;  %v2464_v31 = vmax.f32 %v4280_v9, 0.0 }
 0x369   : > { %v2266_v23 = vadd.f32 %v2265_v37, %v2197_v22 }
 0x36a   : > { %v2457_v0 = vmax.f32 %v2402_v19, 0.0 }
 0x36c   : > { %v2494_v39 = vpack.c.bf16 %v2457_v0, %v2456_v16 }
 0x36d   : > { %v2334_v62 = vpop.f32.mrf.mxu2  ;;  %v2403_v2 = vpop.f32.mrf.mxu3 }
 0x36e   : > { %2518 = vst [vmem:[%s4484_s1 + $0x50] sm:$0xff] %v2494_v39  ;;  %v2335_v55 = vadd.f32 %v2334_v62, %v2266_v23  ;;  %v2199_v1 = vpop.f32.mrf.mxu0  ;;  %v2268_v12 = vpop.f32.mrf.mxu1  ;;  %v2466_v62 = vmax.f32 %v4283_v50, 0.0 }
 0x36f   : > { %v2200_v28 = vadd.f32 %v2199_v1, %v4422_v25 }
 0x370   : > { %v2404_v44 = vadd.f32 %v2403_v2, %v2335_v55 }
 0x371   : > { %v2269_v60 = vadd.f32 %v2268_v12, %v2200_v28 }
 0x372   : > { %v2459_v24 = vmax.f32 %v2404_v44, 0.0 }
 0x374   : > { %v2495_v54 = vpack.c.bf16 %v2459_v24, %v2458_v8 }
 0x375   : > { %v2337_v20 = vpop.f32.mrf.mxu2  ;;  %v2406_v17 = vpop.f32.mrf.mxu3 }
 0x376   : > { %2519 = vst [vmem:[%s4484_s1 + $0x58] sm:$0xff] %v2495_v54  ;;  %v2338_v35 = vadd.f32 %v2337_v20, %v2269_v60  ;;  %v2201_v63 = vpop.f32.mrf.mxu0  ;;  %v2270_v61 = vpop.f32.mrf.mxu1  ;;  %v2468_v54 = vmax.f32 %v4296_v30, 0.0 }
 0x377   : > { %v2202_v26 = vadd.f32 %v2201_v63, %v4425_v41 }
 0x378   : > { %v2407_v7 = vadd.f32 %v2406_v17, %v2338_v35 }
 0x379   : > { %v2271_v52 = vadd.f32 %v2270_v61, %v2202_v26 }
 0x37a   : > { %v2461_v42 = vmax.f32 %v2407_v7, 0.0 }
 0x37c   : > { %v2496_v25 = vpack.c.bf16 %v2461_v42, %v2460_v45  ;;  %v2470_v45 = vmax.f32 %v4301_v33, 0.0 }
 0x37d   : > { %v2339_v51 = vpop.f32.mrf.mxu2  ;;  %v2408_v11 = vpop.f32.mrf.mxu3 }
 0x37e   : > { %2520 = vst [vmem:[%s4484_s1 + $0x60] sm:$0xff] %v2496_v25  ;;  %v2340_v29 = vadd.f32 %v2339_v51, %v2271_v52  ;;  %v2204_v13 = vpop.f32.mrf.mxu0  ;;  %v2273_v40 = vpop.f32.mrf.mxu1 }
 0x37f   : > { %v2205_v57 = vadd.f32 %v2204_v13, %v4432_v46 }
 0x380   : > { %v2409_v4 = vadd.f32 %v2408_v11, %v2340_v29 }
 0x381   : > { %v2274_v5 = vadd.f32 %v2273_v40, %v2205_v57 }
 0x382   : > { %v2463_v43 = vmax.f32 %v2409_v4, 0.0  ;;  %v2472_v4 = vmax.f32 %v4308_v56, 0.0 }
 0x384   : > { %v2497_v41 = vpack.c.bf16 %v2463_v43, %v2462_v27 }
 0x385   : > { %v2342_v32 = vpop.f32.mrf.mxu2  ;;  %v2411_v34 = vpop.f32.mrf.mxu3 }
 0x386   : > { %2521 = vst [vmem:[%s4484_s1 + $0x68] sm:$0xff] %v2497_v41  ;;  %v2343_v6 = vadd.f32 %v2342_v32, %v2274_v5  ;;  %v2206_v3 = vpop.f32.mrf.mxu0  ;;  %v2275_v36 = vpop.f32.mrf.mxu1 }
 0x387   : > { %v2207_v59 = vadd.f32 %v2206_v3, %v4435_v48  ;;  %v4914_v3 = vld [vmem:[#allocation11_spill] sm:$0xff] }
 0x388   : > { %v2412_v49 = vadd.f32 %v2411_v34, %v2343_v6 }
 0x389   : > { %v2276_v37 = vadd.f32 %v2275_v36, %v2207_v59  ;;  %v2474_v36 = vmax.f32 %v4914_v3, 0.0 }
 0x38a   : > { %v2465_v58 = vmax.f32 %v2412_v49, 0.0 }
 0x38c   : > { %v2498_v46 = vpack.c.bf16 %v2465_v58, %v2464_v31 }
 0x38d   : > { %v2344_v14 = vpop.f32.mrf.mxu2  ;;  %v2413_v22 = vpop.f32.mrf.mxu3 }
 0x38e   : > { %2522 = vst [vmem:[%s4484_s1 + $0x70] sm:$0xff] %v2498_v46  ;;  %v2345_v19 = vadd.f32 %v2344_v14, %v2276_v37  ;;  %v2209_v16 = vpop.f32.mrf.mxu0  ;;  %v2278_v0 = vpop.f32.mrf.mxu1 }
 0x38f   : > { %v2210_v23 = vadd.f32 %v2209_v16, %v4442_v15 }
 0x390   : > { %v2414_v39 = vadd.f32 %v2413_v22, %v2345_v19  ;;  %v4915_v22 = vld [vmem:[#allocation12_spill] sm:$0xff] }
 0x391   : > { %v2279_v2 = vadd.f32 %v2278_v0, %v2210_v23  ;;  %v2476_v16 = vmax.f32 %v4915_v22, 0.0 }
 0x392   : > { %v2467_v55 = vmax.f32 %v2414_v39, 0.0 }
 0x394   : > { %v2499_v48 = vpack.c.bf16 %v2467_v55, %v2466_v62 }
 0x395   : > { %v2347_v9 = vpop.f32.mrf.mxu2  ;;  %v2416_v12 = vpop.f32.mrf.mxu3 }
 0x396   : > { %2523 = vst [vmem:[%s4484_s1 + $0x78] sm:$0xff] %v2499_v48  ;;  %v2348_v1 = vadd.f32 %v2347_v9, %v2279_v2  ;;  %v2211_v44 = vpop.f32.mrf.mxu0  ;;  %v2280_v28 = vpop.f32.mrf.mxu1 }
 0x397   : > { %v2212_v24 = vadd.f32 %v2211_v44, %v4445_v38 }
 0x398   : > { %v2417_v8 = vadd.f32 %v2416_v12, %v2348_v1  ;;  %v4916_v12 = vld [vmem:[#allocation13_spill] sm:$0xff] }
 0x399   : > { %v2281_v20 = vadd.f32 %v2280_v28, %v2212_v24  ;;  %v2478_v44 = vmax.f32 %v4916_v12, 0.0 }
 0x39a   : > { %v2469_v60 = vmax.f32 %v2417_v8, 0.0 }
 0x39c   : > { %v2500_v15 = vpack.c.bf16 %v2469_v60, %v2468_v54 }
 0x39d   : > { %v2349_v50 = vpop.f32.mrf.mxu2  ;;  %v2418_v17 = vpop.f32.mrf.mxu3 }
 0x39e   : > { %2524 = vst [vmem:[%s4484_s1 + $0x80] sm:$0xff] %v2500_v15  ;;  %v2350_v35 = vadd.f32 %v2349_v50, %v2281_v20  ;;  %v2214_v63 = vpop.f32.mrf.mxu0  ;;  %v2283_v61 = vpop.f32.mrf.mxu1  ;;  %v4917_v50 = vld [vmem:[#allocation16_spill] sm:$0xff] }
 0x39f   : > { %v2215_v26 = vadd.f32 %v2214_v63, %v4452_v18 }
 0x3a0   : > { %v2419_v7 = vadd.f32 %v2418_v17, %v2350_v35  ;;  %v4918_v17 = vld [vmem:[#allocation14_spill] sm:$0xff] }
 0x3a1   : > { %v2284_v25 = vadd.f32 %v2283_v61, %v2215_v26  ;;  %v2480_v63 = vmax.f32 %v4918_v17, 0.0 }
 0x3a2   : > { %v2471_v42 = vmax.f32 %v2419_v7, 0.0 }
 0x3a4   : > { %v2501_v38 = vpack.c.bf16 %v2471_v42, %v2470_v45 }
 0x3a5   : > { %v2352_v30 = vpop.f32.mrf.mxu2  ;;  %v2421_v51 = vpop.f32.mrf.mxu3 }
 0x3a6   : > { %2525 = vst [vmem:[%s4484_s1 + $0x88] sm:$0xff] %v2501_v38  ;;  %v2353_v52 = vadd.f32 %v2352_v30, %v2284_v25  ;;  %v2216_v29 = vpop.f32.mrf.mxu0  ;;  %v2285_v11 = vpop.f32.mrf.mxu1  ;;  %v4919_v30 = vld [vmem:[#allocation15_spill] sm:$0xff] }
 0x3a7   : > { %v2217_v40 = vadd.f32 %v2216_v29, %v4455_v10 }
 0x3a8   : > { %v2422_v13 = vadd.f32 %v2421_v51, %v2353_v52  ;;  %v2482_v52 = vmax.f32 %v4919_v30, 0.0 }
 0x3a9   : > { %v2286_v27 = vadd.f32 %v2285_v11, %v2217_v40 }
 0x3aa   : > { %v2473_v57 = vmax.f32 %v2422_v13, 0.0 }
 0x3ac   : > { %v2502_v18 = vpack.c.bf16 %v2473_v57, %v2472_v4 }
 0x3ad   : > { %v2354_v33 = vpop.f32.mrf.mxu2  ;;  %v2423_v41 = vpop.f32.mrf.mxu3 }
 0x3ae   : > { %2526 = vst [vmem:[%s4484_s1 + $0x90] sm:$0xff] %v2502_v18  ;;  %v2355_v43 = vadd.f32 %v2354_v33, %v2286_v27  ;;  %v2219_v5 = vpop.f32.mrf.mxu0  ;;  %v2288_v32 = vpop.f32.mrf.mxu1 }
 0x3af   : > { %v2220_v34 = vadd.f32 %v2219_v5, %v4462_v21 }
 0x3b0   : > { %v2424_v6 = vadd.f32 %v2423_v41, %v2355_v43 }
 0x3b1   : > { %v2289_v59 = vadd.f32 %v2288_v32, %v2220_v34 }
 0x3b2   : > { %v2475_v49 = vmax.f32 %v2424_v6, 0.0 }
 0x3b4   : > { %v2503_v10 = vpack.c.bf16 %v2475_v49, %v2474_v36 }
 0x3b5   : > { %v2357_v56 = vpop.f32.mrf.mxu2  ;;  %v2426_v58 = vpop.f32.mrf.mxu3 }
 0x3b6   : > { %2527 = vst [vmem:[%s4484_s1 + $0x98] sm:$0xff] %v2503_v10  ;;  %v2358_v31 = vadd.f32 %v2357_v56, %v2289_v59  ;;  %v2221_v46 = vpop.f32.mrf.mxu0  ;;  %v2290_v37 = vpop.f32.mrf.mxu1 }
 0x3b7   : > { %v2222_v19 = vadd.f32 %v2221_v46, %v4465_v47 }
 0x3b8   : > { %v2427_v14 = vadd.f32 %v2426_v58, %v2358_v31 }
 0x3b9   : > { %v2291_v39 = vadd.f32 %v2290_v37, %v2222_v19 }
 0x3ba   : > { %v2477_v0 = vmax.f32 %v2427_v14, 0.0 }
 0x3bc   : > { %v2504_v21 = vpack.c.bf16 %v2477_v0, %v2476_v16 }
 0x3bd   : > { %v2359_v23 = vpop.f32.mrf.mxu2  ;;  %v2428_v55 = vpop.f32.mrf.mxu3 }
 0x3be   : > { %2528 = vst [vmem:[%s4484_s1 + $0xa0] sm:$0xff] %v2504_v21  ;;  %v2360_v62 = vadd.f32 %v2359_v23, %v2291_v39  ;;  %v2224_v48 = vpop.f32.mrf.mxu0  ;;  %v2293_v1 = vpop.f32.mrf.mxu1 }
 0x3bf   : > { %v2225_v9 = vadd.f32 %v2224_v48, %v4472_v53 }
 0x3c0   : > { %v2429_v2 = vadd.f32 %v2428_v55, %v2360_v62 }
 0x3c1   : > { %v2294_v8 = vadd.f32 %v2293_v1, %v2225_v9 }
 0x3c2   : > { %v2479_v28 = vmax.f32 %v2429_v2, 0.0 }
 0x3c4   : > { %v2505_v47 = vpack.c.bf16 %v2479_v28, %v2478_v44 }
 0x3c5   : > { %v2362_v24 = vpop.f32.mrf.mxu2  ;;  %v2431_v60 = vpop.f32.mrf.mxu3 }
 0x3c6   : > { %2529 = vst [vmem:[%s4484_s1 + $0xa8] sm:$0xff] %v2505_v47  ;;  %v2363_v54 = vadd.f32 %v2362_v24, %v2294_v8  ;;  %v2226_v15 = vpop.f32.mrf.mxu0  ;;  %v2295_v61 = vpop.f32.mrf.mxu1 }
 0x3c7   : > { %v2227_v35 = vadd.f32 %v2226_v15, %v4917_v50 }
 0x3c8   : > { %v2432_v20 = vadd.f32 %v2431_v60, %v2363_v54 }
 0x3c9   : > { %v2296_v26 = vadd.f32 %v2295_v61, %v2227_v35 }
 0x3ca   : > { %v2481_v53 = vmax.f32 %v2432_v20, 0.0 }
 0x3cc   : > { %v2506_v7 = vpack.c.bf16 %v2481_v53, %v2480_v63 }
 0x3cd   : > { %v2364_v45 = vpop.f32.mrf.mxu2  ;;  %v2433_v38 = vpop.f32.mrf.mxu3 }
 0x3ce   : > { %2530 = vst [vmem:[%s4484_s1 + $0xb0] sm:$0xff] %v2506_v7  ;;  %v2365_v42 = vadd.f32 %v2364_v45, %v2296_v26 }
 0x3d0   : > { %v2434_v25 = vadd.f32 %v2433_v38, %v2365_v42 }
 0x3d2   : > { %v2483_v51 = vmax.f32 %v2434_v25, 0.0 }
 0x3d4   : > { %v2507_v29 = vpack.c.bf16 %v2483_v51, %v2482_v52 }
 0x3d6   : > { %2531 = vst [vmem:[%s4484_s1 + $0xb8] sm:$0xff] %v2507_v29 }
 0x3d7   : > { %3314 = shalt.err (!%p3311_p0)
}
 0x3d8   : > { %s3381_s6 = smov 128   ;;  %s3382_s9 = smov 8  }
 0x3d9   : > { %3150 = dma.vmem_to_hbm [thread:$0]  (%p3482_p5), %s2548_s10, 3072, %s2550_s15, %s2533_s24, %s3381_s6, %s3381_s6, %s3382_s9  }
 0x3da PF: > { %s2564_s11 = sand.u32 1, %s3353_s12   ;;  %p3161_p3 = pnand %p2651_p11, %p3452_p6 }
 0x3db   : > { %s2565_s19 = scalar_lea.sflag [#allocation4], %s2564_s11 }
 0x3dc   : > { %p3162_p7 = pneg %p3161_p3 }
 0x3de   : > { %3348 = dma.done.wait (%p3162_p7), %s2565_s19, 3072  }
 0x3df   : > { %3350 = vsyncadd (%p3162_p7), %s2565_s19, 4294964224  ;;  %s20_s17 = sadd.s32 1, %s3373_s17   ;;  %s4920_s12 = smov %s3357_s13 }
 0x3e0   : > { %p17_p9 = scmp.ge.s32.totalorder %s20_s17, 4   ;;  %s4921_s13 = smov %s3361_s14 }
 0x3e1   : > { %s4922_s14 = smov %s3491_s18  ;;  %s4923_s15 = smov %s3369_s16 }
 0x3e2   : > { %s4924_s16 = smov %s4926_s5  ;;  %19 = sbr.rel (!%p17_p9) target bundleno = 9 (0x9), region = 81 }
 0x3e7   :  { %2571 = vsyncpa [#allocation3], 1 }
 0x3e8   :  { %2573 = vsyncpa [#allocation3 + $0x1], 1 }
 0x3e9   :  { %2574 = vsyncpa [#allocation6], 1 }
 0x3ea   :  { %2575 = vsyncpa [#allocation4], 1 }
 0x3eb   :  { %2577 = vsyncpa [#allocation4 + $0x1], 1 }

</bundles_post_ra>
